<compile_context>
chip_gen: v5e
topology: v5e:2x2
jax: 0.10.0
libtpu: 0.0.40
codegen_flags: <defaults>
</compile_context>

<pallas_src>
import functools

import jax
import jax.numpy as jnp
from jax.experimental import pallas as pl
from jax.experimental.pallas import tpu as pltpu

LANE = 128
_VMEM_LIMIT = 8 * 1024 * 1024   # actual per-step footprint is ~2-3 MiB


def _round_up(n, m):
    return (n + m - 1) // m * m


def _pad_axis(a, size, axis=-1):
    pad = size - a.shape[axis]
    if pad == 0:
        return a
    widths = [(0, 0)] * a.ndim
    widths[axis] = (0, pad)
    return jnp.pad(a, widths)


def _hswish(v):
    return v * (jnp.clip(v + 3.0, 0.0, 6.0) * (1.0 / 6.0))


# ---------------------------------------------------------------------------
# Fused kernel: expand 1x1 + BN + h_swish + KxK depthwise + BN + SE
#               + h_swish + project 1x1 + BN + identity residual.
# grid=(B,)  — one image per step; channels are lane-dense (128-padded).
# ---------------------------------------------------------------------------

def _block_kernel(x_ref, w1_ref, b1_ref, wdw_ref, b2_ref,
                  wfc1_ref, bfc1_ref, wfc2_ref, bfc2_ref, w2_ref, b3_ref,
                  o_ref, *, K, H, W, inv_hw):
    HW = H * W
    hid_p = w1_ref.shape[1]

    x = x_ref[0]                                            # (HW, cin_p) bf16

    # --- 1x1 expand (BN1 scale folded into w1) + BN1 shift + h_swish -------
    y = jnp.dot(x, w1_ref[...], preferred_element_type=jnp.float32)
    y = _hswish(y + b1_ref[...])                            # (HW, hid_p) f32

    # --- KxK depthwise (stride 1, 'same'); BN2 scale folded into wdw -------
    # tap[f] = y[f + dy*W + dx] with image-border zero fill:
    #   circular sublane roll on the XLU + explicit (HW,1) validity mask so
    #   wrapped rows / off-row columns contribute zero. VPU accumulate.
    pad = (K - 1) // 2
    fi = jax.lax.broadcasted_iota(jnp.int32, (HW, 1), 0)    # dest flat index
    col = fi % W                                            # dest column
    wdw = wdw_ref[...]                                      # (K*K, hid_p) f32
    acc = jnp.zeros((HW, hid_p), jnp.float32)
    for ky in range(K):
        dy = ky - pad
        for kx in range(K):
            dx = kx - pad
            d = dy * W + dx                                 # src = dest + d
            t = ky * K + kx
            if d == 0:
                tap = y
            else:
                src = pltpu.roll(y, (-d) % HW, axis=0)      # src[f] = y[(f+d)%HW]
                valid = ((col + dx >= 0) & (col + dx < W)
                         & (fi + d >= 0) & (fi + d < HW))
                tap = jnp.where(valid, src, 0.0)
            acc = acc + tap * wdw[t:t + 1, :]
    y2 = acc + b2_ref[...]                                  # (HW, hid_p) f32, stays in VMEM

    # --- SE: global average pool + FC1 + ReLU + FC2 + h_sigmoid ------------
    pool = jnp.sum(y2, axis=0, keepdims=True) * inv_hw      # (1, hid_p) f32
    m8 = jnp.broadcast_to(pool.astype(jnp.bfloat16), (8, hid_p))
    h1 = jnp.dot(m8, wfc1_ref[...],
                 preferred_element_type=jnp.float32) + bfc1_ref[...]
    h1 = jnp.maximum(h1, 0.0)
    g = jnp.dot(h1.astype(jnp.bfloat16), wfc2_ref[...],
                preferred_element_type=jnp.float32) + bfc2_ref[...]
    gate = (jnp.clip(g + 3.0, 0.0, 6.0) * (1.0 / 6.0))[0:1, :]   # (1, hid_p)

    # --- SE channel scale + h_swish + 1x1 project + BN3 shift + residual ---
    z = _hswish(y2 * gate)
    out = jnp.dot(z.astype(jnp.bfloat16), w2_ref[...],
                  preferred_element_type=jnp.float32)
    out = out + b3_ref[...] + x.astype(jnp.float32)
    o_ref[...] = out.reshape(o_ref.shape).astype(o_ref.dtype)


# ---------------------------------------------------------------------------
# Wrapper (layout plumbing + BN-scale folding stays in plain JAX)
# ---------------------------------------------------------------------------

def inverted_residual_forward(x_nchw, params, *, kernel_size):
    B, Cin, H, W = x_nchw.shape
    hid = params["w_pw1"].shape[1]
    oup = params["w_pw2"].shape[1]
    red = params["w_fc1"].shape[1]
    HW = H * W
    assert Cin == oup, "identity-residual config (stride=1, inp==oup) only"

    cin_p = _round_up(Cin, LANE)
    hid_p = _round_up(hid, LANE)
    oup_p = _round_up(oup, LANE)
    red_p = _round_up(red, LANE)

    # NCHW -> NHWC (channel on the lane axis), flatten spatial, pad channels
    # to a lane-dense multiple of 128, bf16 HBM storage.  x_p doubles as the
    # residual input (Cin == oup).
    x = jnp.transpose(x_nchw, (0, 2, 3, 1)).reshape(B, HW, Cin)
    x_p = _pad_axis(x, cin_p).astype(jnp.bfloat16)

    # BN scales folded into the conv weights (f32 fold, then bf16 for MXU).
    w1 = params["w_pw1"] * params["bn1_scale"]
    w1_p = _pad_axis(_pad_axis(w1, hid_p, -1), cin_p, 0).astype(jnp.bfloat16)
    b1_p = _pad_axis(params["bn1_shift"], hid_p)
    wdw = params["w_dw"] * params["bn2_scale"]              # stays f32 (VPU)
    wdw_p = _pad_axis(wdw, hid_p)
    b2_p = _pad_axis(params["bn2_shift"], hid_p)
    wfc1_p = _pad_axis(_pad_axis(params["w_fc1"], red_p, -1), hid_p, 0).astype(jnp.bfloat16)
    bfc1_p = _pad_axis(params["b_fc1"], red_p)
    wfc2_p = _pad_axis(_pad_axis(params["w_fc2"], hid_p, -1), red_p, 0).astype(jnp.bfloat16)
    bfc2_p = _pad_axis(params["b_fc2"], hid_p)
    w2 = params["w_pw2"] * params["bn3_scale"]
    w2_p = _pad_axis(_pad_axis(w2, oup_p, -1), hid_p, 0).astype(jnp.bfloat16)
    b3_p = _pad_axis(params["bn3_shift"], oup_p)

    const = lambda b: (0, 0)
    out_p = pl.pallas_call(
        functools.partial(_block_kernel, K=kernel_size, H=H, W=W, inv_hw=1.0 / HW),
        grid=(B,),
        in_specs=[
            pl.BlockSpec((1, HW, cin_p), lambda b: (b, 0, 0)),
            pl.BlockSpec((cin_p, hid_p), const),
            pl.BlockSpec((1, hid_p), const),
            pl.BlockSpec((kernel_size * kernel_size, hid_p), const),
            pl.BlockSpec((1, hid_p), const),
            pl.BlockSpec((hid_p, red_p), const),
            pl.BlockSpec((1, red_p), const),
            pl.BlockSpec((red_p, hid_p), const),
            pl.BlockSpec((1, hid_p), const),
            pl.BlockSpec((hid_p, oup_p), const),
            pl.BlockSpec((1, oup_p), const),
        ],
        out_specs=pl.BlockSpec((1, HW, oup_p), lambda b: (b, 0, 0)),
        out_shape=jax.ShapeDtypeStruct((B, HW, oup_p), jnp.float32),
        compiler_params=pltpu.CompilerParams(
            dimension_semantics=("parallel",),
            vmem_limit_bytes=_VMEM_LIMIT),
    )(x_p, w1_p, b1_p, wdw_p, b2_p, wfc1_p, bfc1_p, wfc2_p, bfc2_p, w2_p, b3_p)

    out = out_p[..., :oup].reshape(B, H, W, oup)
    return jnp.transpose(out, (0, 3, 1, 2))                 # NCHW


# ---------------------------------------------------------------------------
# Pure-JAX reference (same math; inputs / matmul weights bf16-rounded to match
# the kernel's stored precision, everything else f32 HIGHEST)
# ---------------------------------------------------------------------------

def reference_forward(x_nchw, params, *, kernel_size):
    hp = jax.lax.Precision.HIGHEST
    bf = lambda a: a.astype(jnp.bfloat16).astype(jnp.float32)
    x = jnp.transpose(bf(x_nchw), (0, 2, 3, 1))
    B, H, W, Cin = x.shape
    hid = params["w_pw1"].shape[1]

    y = jnp.dot(x.reshape(-1, Cin), bf(params["w_pw1"]), precision=hp)
    y = y * params["bn1_scale"] + params["bn1_shift"]
    y = y * jnp.clip(y + 3.0, 0.0, 6.0) / 6.0
    y = y.reshape(B, H, W, hid)

    pad = (kernel_size - 1) // 2
    yp = jnp.pad(y, ((0, 0), (pad, pad), (pad, pad), (0, 0)))
    acc = jnp.zeros_like(y)
    for ky in range(kernel_size):
        for kx in range(kernel_size):
            acc = acc + yp[:, ky:ky + H, kx:kx + W, :] * params["w_dw"][ky * kernel_size + kx]
    y = acc * params["bn2_scale"] + params["bn2_shift"]

    m = jnp.mean(y, axis=(1, 2))
    h = jnp.maximum(jnp.dot(m, bf(params["w_fc1"]), precision=hp) + params["b_fc1"], 0.0)
    g = jnp.clip(jnp.dot(h, bf(params["w_fc2"]), precision=hp) + params["b_fc2"] + 3.0, 0.0, 6.0) / 6.0
    z = y * g[:, None, None, :]
    z = z * jnp.clip(z + 3.0, 0.0, 6.0) / 6.0

    out = jnp.dot(z.reshape(-1, hid), bf(params["w_pw2"]), precision=hp)
    out = out * params["bn3_scale"] + params["bn3_shift"]
    out = out.reshape(B, H, W, -1) + x
    return jnp.transpose(out, (0, 3, 1, 2))


# ---------------------------------------------------------------------------
# Deterministic parameter construction
# ---------------------------------------------------------------------------

def _make_bn(key, c):
    k1, k2, k3, k4 = jax.random.split(key, 4)
    gamma = 1.0 + 0.1 * jax.random.normal(k1, (c,), jnp.float32)
    beta = 0.1 * jax.random.normal(k2, (c,), jnp.float32)
    mean = 0.1 * jax.random.normal(k3, (c,), jnp.float32)
    var = 0.9 + 0.2 * jax.random.uniform(k4, (c,), jnp.float32)
    scale = gamma / jnp.sqrt(var + 1e-5)
    shift = beta - mean * scale
    return scale.reshape(1, c), shift.reshape(1, c)


def make_params(key, inp, hidden_dim, oup, kernel_size):
    ks = jax.random.split(key, 10)
    red = hidden_dim // 4
    p = {}
    p["w_pw1"] = 0.2 * jax.random.normal(ks[0], (inp, hidden_dim), jnp.float32)
    p["bn1_scale"], p["bn1_shift"] = _make_bn(ks[1], hidden_dim)
    p["w_dw"] = 0.2 * jax.random.normal(
        ks[2], (kernel_size * kernel_size, hidden_dim), jnp.float32)
    p["bn2_scale"], p["bn2_shift"] = _make_bn(ks[3], hidden_dim)
    p["w_fc1"] = 0.3 * jax.random.normal(ks[4], (hidden_dim, red), jnp.float32)
    p["b_fc1"] = 0.1 * jax.random.normal(ks[5], (1, red), jnp.float32)
    p["w_fc2"] = 0.3 * jax.random.normal(ks[6], (red, hidden_dim), jnp.float32)
    p["b_fc2"] = 0.1 * jax.random.normal(ks[7], (1, hidden_dim), jnp.float32)
    p["w_pw2"] = 0.2 * jax.random.normal(ks[8], (hidden_dim, oup), jnp.float32)
    p["bn3_scale"], p["bn3_shift"] = _make_bn(ks[9], oup)
    return p


if __name__ == "__main__":
    key = jax.random.PRNGKey(0)
    kp, kx = jax.random.split(key)

    B, inp, H, W = 2, 8, 16, 16
    hidden_dim, oup, kernel_size = 16, 8, 3   # stride=1, use_se=True, use_hs=True

    params = make_params(kp, inp, hidden_dim, oup, kernel_size)
    x = jax.random.normal(kx, (B, inp, H, W), jnp.float32)

    fwd = jax.jit(functools.partial(inverted_residual_forward,
                                    kernel_size=kernel_size))
    out = jax.block_until_ready(fwd(x, params))
    assert out.shape == (B, oup, H, W), out.shape

    ref = reference_forward(x, params, kernel_size=kernel_size)
    max_err = float(jnp.max(jnp.abs(out - ref)))
    assert max_err < 5e-2, f"max abs error {max_err}"

    print("KERNEL_OK")
</pallas_src>

<mosaic_0001>
module attributes {stable_mosaic.version = 11 : i64} {
  func.func @_block_kernel(%arg0: i32, %arg1: memref<1x256x128xbf16, #tpu.memory_space<vmem>>, %arg2: memref<128x128xbf16, #tpu.memory_space<vmem>>, %arg3: memref<1x128xf32, #tpu.memory_space<vmem>>, %arg4: memref<9x128xf32, #tpu.memory_space<vmem>>, %arg5: memref<1x128xf32, #tpu.memory_space<vmem>>, %arg6: memref<128x128xbf16, #tpu.memory_space<vmem>>, %arg7: memref<1x128xf32, #tpu.memory_space<vmem>>, %arg8: memref<128x128xbf16, #tpu.memory_space<vmem>>, %arg9: memref<1x128xf32, #tpu.memory_space<vmem>>, %arg10: memref<128x128xbf16, #tpu.memory_space<vmem>>, %arg11: memref<1x128xf32, #tpu.memory_space<vmem>>, %arg12: memref<1x256x128xf32, #tpu.memory_space<vmem>>) attributes {dimension_semantics = [#tpu.dimension_semantics<parallel>], iteration_bounds = array<i64: 2>, scalar_prefetch = 0 : i64, scratch_operands = 0 : i64, tpu.core_type = #tpu.core_type<tc>, window_params = [{transform_indices = @transform_0, window_bounds = array<i64: 1, 256, 128>}, {pipeline_mode = #tpu.pipeline_mode<synchronous>, transform_indices = @transform_1, window_bounds = array<i64: 128, 128>}, {pipeline_mode = #tpu.pipeline_mode<synchronous>, transform_indices = @transform_2, window_bounds = array<i64: 1, 128>}, {pipeline_mode = #tpu.pipeline_mode<synchronous>, transform_indices = @transform_3, window_bounds = array<i64: 9, 128>}, {pipeline_mode = #tpu.pipeline_mode<synchronous>, transform_indices = @transform_4, window_bounds = array<i64: 1, 128>}, {pipeline_mode = #tpu.pipeline_mode<synchronous>, transform_indices = @transform_5, window_bounds = array<i64: 128, 128>}, {pipeline_mode = #tpu.pipeline_mode<synchronous>, transform_indices = @transform_6, window_bounds = array<i64: 1, 128>}, {pipeline_mode = #tpu.pipeline_mode<synchronous>, transform_indices = @transform_7, window_bounds = array<i64: 128, 128>}, {pipeline_mode = #tpu.pipeline_mode<synchronous>, transform_indices = @transform_8, window_bounds = array<i64: 1, 128>}, {pipeline_mode = #tpu.pipeline_mode<synchronous>, transform_indices = @transform_9, window_bounds = array<i64: 128, 128>}, {pipeline_mode = #tpu.pipeline_mode<synchronous>, transform_indices = @transform_10, window_bounds = array<i64: 1, 128>}, {transform_indices = @transform_11, window_bounds = array<i64: 1, 256, 128>}]} {
    %c0 = arith.constant 0 : index
    %c0_0 = arith.constant 0 : index
    %c0_1 = arith.constant 0 : index
    %0 = vector.load %arg1[%c0, %c0_0, %c0_1] : memref<1x256x128xbf16, #tpu.memory_space<vmem>>, vector<1x256x128xbf16>
    %1 = vector.shape_cast %0 : vector<1x256x128xbf16> to vector<256x128xbf16>
    %c0_2 = arith.constant 0 : index
    %c0_3 = arith.constant 0 : index
    %2 = vector.load %arg2[%c0_2, %c0_3] : memref<128x128xbf16, #tpu.memory_space<vmem>>, vector<128x128xbf16>
    %cst = arith.constant dense<0.000000e+00> : vector<256x128xf32>
    %3 = tpu.matmul %1, %2, %cst {dimension_numbers = #tpu.dot_dimension_numbers<[1], [0], [0], [1], [0, 0, 1, 1], [], []>} : vector<256x128xbf16>, vector<128x128xbf16>, vector<256x128xf32> -> vector<256x128xf32>
    %c0_4 = arith.constant 0 : index
    %c0_5 = arith.constant 0 : index
    %4 = vector.load %arg3[%c0_4, %c0_5] : memref<1x128xf32, #tpu.memory_space<vmem>>, vector<1x128xf32>
    %5 = vector.broadcast %4 : vector<1x128xf32> to vector<256x128xf32>
    %6 = arith.addf %3, %5 : vector<256x128xf32>
    %cst_6 = arith.constant 3.000000e+00 : f32
    %7 = vector.broadcast %cst_6 : f32 to vector<256x128xf32>
    %8 = arith.addf %6, %7 : vector<256x128xf32>
    %cst_7 = arith.constant 0.000000e+00 : f32
    %cst_8 = arith.constant 6.000000e+00 : f32
    %9 = vector.broadcast %cst_7 : f32 to vector<256x128xf32>
    %10 = arith.maximumf %9, %8 : vector<256x128xf32>
    %11 = vector.broadcast %cst_8 : f32 to vector<256x128xf32>
    %12 = arith.minimumf %11, %10 : vector<256x128xf32>
    %cst_9 = arith.constant 0.166666672 : f32
    %13 = vector.broadcast %cst_9 : f32 to vector<256x128xf32>
    %14 = arith.mulf %12, %13 : vector<256x128xf32>
    %15 = arith.mulf %6, %14 : vector<256x128xf32>
    %16 = tpu.iota {dimensions = array<i32: 0>} : vector<256x1xi32>
    %c16_i32 = arith.constant 16 : i32
    %c0_i32 = arith.constant 0 : i32
    %17 = arith.cmpi eq, %c16_i32, %c0_i32 : i32
    %c1_i32 = arith.constant 1 : i32
    %18 = arith.select %17, %c1_i32, %c16_i32 : i32
    %19 = vector.broadcast %18 : i32 to vector<256x1xi32>
    %20 = arith.remsi %16, %19 : vector<256x1xi32>
    %c0_i32_10 = arith.constant 0 : i32
    %21 = vector.broadcast %c0_i32_10 : i32 to vector<256x1xi32>
    %22 = arith.cmpi ne, %20, %21 : vector<256x1xi32>
    %c0_i32_11 = arith.constant 0 : i32
    %23 = vector.broadcast %c0_i32_11 : i32 to vector<256x1xi32>
    %24 = arith.cmpi slt, %20, %23 : vector<256x1xi32>
    %c0_i32_12 = arith.constant 0 : i32
    %25 = arith.cmpi slt, %18, %c0_i32_12 : i32
    %26 = vector.broadcast %25 : i1 to vector<256x1xi1>
    %27 = vector.broadcast %26 : vector<256x1xi1> to vector<256x1xi1>
    %28 = arith.xori %24, %27 : vector<256x1xi1>
    %29 = arith.andi %28, %22 : vector<256x1xi1>
    %30 = vector.broadcast %18 : i32 to vector<256x1xi32>
    %31 = arith.addi %20, %30 : vector<256x1xi32>
    %32 = arith.select %29, %31, %20 : vector<256x1xi1>, vector<256x1xi32>
    %c0_13 = arith.constant 0 : index
    %c0_14 = arith.constant 0 : index
    %33 = vector.load %arg4[%c0_13, %c0_14] : memref<9x128xf32, #tpu.memory_space<vmem>>, vector<9x128xf32>
    %cst_15 = arith.constant 0.000000e+00 : f32
    %34 = vector.broadcast %cst_15 : f32 to vector<256x128xf32>
    %c17_i32 = arith.constant 17 : i32
    %35 = tpu.dynamic_rotate %15 by %c17_i32 dim 0 : vector<256x128xf32>, i32 -> vector<256x128xf32>
    %c-1_i32 = arith.constant -1 : i32
    %36 = vector.broadcast %c-1_i32 : i32 to vector<256x1xi32>
    %37 = arith.addi %32, %36 : vector<256x1xi32>
    %c0_i32_16 = arith.constant 0 : i32
    %38 = vector.broadcast %c0_i32_16 : i32 to vector<256x1xi32>
    %39 = arith.cmpi sge, %37, %38 : vector<256x1xi32>
    %c-1_i32_17 = arith.constant -1 : i32
    %40 = vector.broadcast %c-1_i32_17 : i32 to vector<256x1xi32>
    %41 = arith.addi %32, %40 : vector<256x1xi32>
    %c16_i32_18 = arith.constant 16 : i32
    %42 = vector.broadcast %c16_i32_18 : i32 to vector<256x1xi32>
    %43 = arith.cmpi slt, %41, %42 : vector<256x1xi32>
    %44 = arith.andi %39, %43 : vector<256x1xi1>
    %c-17_i32 = arith.constant -17 : i32
    %45 = vector.broadcast %c-17_i32 : i32 to vector<256x1xi32>
    %46 = arith.addi %16, %45 : vector<256x1xi32>
    %c0_i32_19 = arith.constant 0 : i32
    %47 = vector.broadcast %c0_i32_19 : i32 to vector<256x1xi32>
    %48 = arith.cmpi sge, %46, %47 : vector<256x1xi32>
    %49 = arith.andi %44, %48 : vector<256x1xi1>
    %c-17_i32_20 = arith.constant -17 : i32
    %50 = vector.broadcast %c-17_i32_20 : i32 to vector<256x1xi32>
    %51 = arith.addi %16, %50 : vector<256x1xi32>
    %c256_i32 = arith.constant 256 : i32
    %52 = vector.broadcast %c256_i32 : i32 to vector<256x1xi32>
    %53 = arith.cmpi slt, %51, %52 : vector<256x1xi32>
    %54 = arith.andi %49, %53 : vector<256x1xi1>
    %cst_21 = arith.constant 0.000000e+00 : f32
    %55 = vector.shape_cast %54 : vector<256x1xi1> to vector<256x1xi1>
    %56 = vector.broadcast %55 : vector<256x1xi1> to vector<256x128xi1>
    %57 = vector.broadcast %cst_21 : f32 to vector<256x128xf32>
    %58 = arith.select %56, %35, %57 : vector<256x128xi1>, vector<256x128xf32>
    %59 = vector.extract_strided_slice %33 {offsets = [0, 0], sizes = [1, 128], strides = [1, 1]} : vector<9x128xf32> to vector<1x128xf32>
    %60 = vector.broadcast %59 : vector<1x128xf32> to vector<256x128xf32>
    %61 = arith.mulf %58, %60 : vector<256x128xf32>
    %62 = arith.addf %34, %61 : vector<256x128xf32>
    %c16_i32_22 = arith.constant 16 : i32
    %63 = tpu.dynamic_rotate %15 by %c16_i32_22 dim 0 : vector<256x128xf32>, i32 -> vector<256x128xf32>
    %c0_i32_23 = arith.constant 0 : i32
    %64 = vector.broadcast %c0_i32_23 : i32 to vector<256x1xi32>
    %65 = arith.addi %32, %64 : vector<256x1xi32>
    %c0_i32_24 = arith.constant 0 : i32
    %66 = vector.broadcast %c0_i32_24 : i32 to vector<256x1xi32>
    %67 = arith.cmpi sge, %65, %66 : vector<256x1xi32>
    %c0_i32_25 = arith.constant 0 : i32
    %68 = vector.broadcast %c0_i32_25 : i32 to vector<256x1xi32>
    %69 = arith.addi %32, %68 : vector<256x1xi32>
    %c16_i32_26 = arith.constant 16 : i32
    %70 = vector.broadcast %c16_i32_26 : i32 to vector<256x1xi32>
    %71 = arith.cmpi slt, %69, %70 : vector<256x1xi32>
    %72 = arith.andi %67, %71 : vector<256x1xi1>
    %c-16_i32 = arith.constant -16 : i32
    %73 = vector.broadcast %c-16_i32 : i32 to vector<256x1xi32>
    %74 = arith.addi %16, %73 : vector<256x1xi32>
    %c0_i32_27 = arith.constant 0 : i32
    %75 = vector.broadcast %c0_i32_27 : i32 to vector<256x1xi32>
    %76 = arith.cmpi sge, %74, %75 : vector<256x1xi32>
    %77 = arith.andi %72, %76 : vector<256x1xi1>
    %c-16_i32_28 = arith.constant -16 : i32
    %78 = vector.broadcast %c-16_i32_28 : i32 to vector<256x1xi32>
    %79 = arith.addi %16, %78 : vector<256x1xi32>
    %c256_i32_29 = arith.constant 256 : i32
    %80 = vector.broadcast %c256_i32_29 : i32 to vector<256x1xi32>
    %81 = arith.cmpi slt, %79, %80 : vector<256x1xi32>
    %82 = arith.andi %77, %81 : vector<256x1xi1>
    %cst_30 = arith.constant 0.000000e+00 : f32
    %83 = vector.shape_cast %82 : vector<256x1xi1> to vector<256x1xi1>
    %84 = vector.broadcast %83 : vector<256x1xi1> to vector<256x128xi1>
    %85 = vector.broadcast %cst_30 : f32 to vector<256x128xf32>
    %86 = arith.select %84, %63, %85 : vector<256x128xi1>, vector<256x128xf32>
    %87 = vector.extract_strided_slice %33 {offsets = [1, 0], sizes = [1, 128], strides = [1, 1]} : vector<9x128xf32> to vector<1x128xf32>
    %88 = vector.broadcast %87 : vector<1x128xf32> to vector<256x128xf32>
    %89 = arith.mulf %86, %88 : vector<256x128xf32>
    %90 = arith.addf %62, %89 : vector<256x128xf32>
    %c15_i32 = arith.constant 15 : i32
    %91 = tpu.dynamic_rotate %15 by %c15_i32 dim 0 : vector<256x128xf32>, i32 -> vector<256x128xf32>
    %c1_i32_31 = arith.constant 1 : i32
    %92 = vector.broadcast %c1_i32_31 : i32 to vector<256x1xi32>
    %93 = arith.addi %32, %92 : vector<256x1xi32>
    %c0_i32_32 = arith.constant 0 : i32
    %94 = vector.broadcast %c0_i32_32 : i32 to vector<256x1xi32>
    %95 = arith.cmpi sge, %93, %94 : vector<256x1xi32>
    %c1_i32_33 = arith.constant 1 : i32
    %96 = vector.broadcast %c1_i32_33 : i32 to vector<256x1xi32>
    %97 = arith.addi %32, %96 : vector<256x1xi32>
    %c16_i32_34 = arith.constant 16 : i32
    %98 = vector.broadcast %c16_i32_34 : i32 to vector<256x1xi32>
    %99 = arith.cmpi slt, %97, %98 : vector<256x1xi32>
    %100 = arith.andi %95, %99 : vector<256x1xi1>
    %c-15_i32 = arith.constant -15 : i32
    %101 = vector.broadcast %c-15_i32 : i32 to vector<256x1xi32>
    %102 = arith.addi %16, %101 : vector<256x1xi32>
    %c0_i32_35 = arith.constant 0 : i32
    %103 = vector.broadcast %c0_i32_35 : i32 to vector<256x1xi32>
    %104 = arith.cmpi sge, %102, %103 : vector<256x1xi32>
    %105 = arith.andi %100, %104 : vector<256x1xi1>
    %c-15_i32_36 = arith.constant -15 : i32
    %106 = vector.broadcast %c-15_i32_36 : i32 to vector<256x1xi32>
    %107 = arith.addi %16, %106 : vector<256x1xi32>
    %c256_i32_37 = arith.constant 256 : i32
    %108 = vector.broadcast %c256_i32_37 : i32 to vector<256x1xi32>
    %109 = arith.cmpi slt, %107, %108 : vector<256x1xi32>
    %110 = arith.andi %105, %109 : vector<256x1xi1>
    %cst_38 = arith.constant 0.000000e+00 : f32
    %111 = vector.shape_cast %110 : vector<256x1xi1> to vector<256x1xi1>
    %112 = vector.broadcast %111 : vector<256x1xi1> to vector<256x128xi1>
    %113 = vector.broadcast %cst_38 : f32 to vector<256x128xf32>
    %114 = arith.select %112, %91, %113 : vector<256x128xi1>, vector<256x128xf32>
    %115 = vector.extract_strided_slice %33 {offsets = [2, 0], sizes = [1, 128], strides = [1, 1]} : vector<9x128xf32> to vector<1x128xf32>
    %116 = vector.broadcast %115 : vector<1x128xf32> to vector<256x128xf32>
    %117 = arith.mulf %114, %116 : vector<256x128xf32>
    %118 = arith.addf %90, %117 : vector<256x128xf32>
    %c1_i32_39 = arith.constant 1 : i32
    %119 = tpu.dynamic_rotate %15 by %c1_i32_39 dim 0 : vector<256x128xf32>, i32 -> vector<256x128xf32>
    %c-1_i32_40 = arith.constant -1 : i32
    %120 = vector.broadcast %c-1_i32_40 : i32 to vector<256x1xi32>
    %121 = arith.addi %32, %120 : vector<256x1xi32>
    %c0_i32_41 = arith.constant 0 : i32
    %122 = vector.broadcast %c0_i32_41 : i32 to vector<256x1xi32>
    %123 = arith.cmpi sge, %121, %122 : vector<256x1xi32>
    %c-1_i32_42 = arith.constant -1 : i32
    %124 = vector.broadcast %c-1_i32_42 : i32 to vector<256x1xi32>
    %125 = arith.addi %32, %124 : vector<256x1xi32>
    %c16_i32_43 = arith.constant 16 : i32
    %126 = vector.broadcast %c16_i32_43 : i32 to vector<256x1xi32>
    %127 = arith.cmpi slt, %125, %126 : vector<256x1xi32>
    %128 = arith.andi %123, %127 : vector<256x1xi1>
    %c-1_i32_44 = arith.constant -1 : i32
    %129 = vector.broadcast %c-1_i32_44 : i32 to vector<256x1xi32>
    %130 = arith.addi %16, %129 : vector<256x1xi32>
    %c0_i32_45 = arith.constant 0 : i32
    %131 = vector.broadcast %c0_i32_45 : i32 to vector<256x1xi32>
    %132 = arith.cmpi sge, %130, %131 : vector<256x1xi32>
    %133 = arith.andi %128, %132 : vector<256x1xi1>
    %c-1_i32_46 = arith.constant -1 : i32
    %134 = vector.broadcast %c-1_i32_46 : i32 to vector<256x1xi32>
    %135 = arith.addi %16, %134 : vector<256x1xi32>
    %c256_i32_47 = arith.constant 256 : i32
    %136 = vector.broadcast %c256_i32_47 : i32 to vector<256x1xi32>
    %137 = arith.cmpi slt, %135, %136 : vector<256x1xi32>
    %138 = arith.andi %133, %137 : vector<256x1xi1>
    %cst_48 = arith.constant 0.000000e+00 : f32
    %139 = vector.shape_cast %138 : vector<256x1xi1> to vector<256x1xi1>
    %140 = vector.broadcast %139 : vector<256x1xi1> to vector<256x128xi1>
    %141 = vector.broadcast %cst_48 : f32 to vector<256x128xf32>
    %142 = arith.select %140, %119, %141 : vector<256x128xi1>, vector<256x128xf32>
    %143 = vector.extract_strided_slice %33 {offsets = [3, 0], sizes = [1, 128], strides = [1, 1]} : vector<9x128xf32> to vector<1x128xf32>
    %144 = vector.broadcast %143 : vector<1x128xf32> to vector<256x128xf32>
    %145 = arith.mulf %142, %144 : vector<256x128xf32>
    %146 = arith.addf %118, %145 : vector<256x128xf32>
    %147 = vector.extract_strided_slice %33 {offsets = [4, 0], sizes = [1, 128], strides = [1, 1]} : vector<9x128xf32> to vector<1x128xf32>
    %148 = vector.broadcast %147 : vector<1x128xf32> to vector<256x128xf32>
    %149 = arith.mulf %15, %148 : vector<256x128xf32>
    %150 = arith.addf %146, %149 : vector<256x128xf32>
    %c255_i32 = arith.constant 255 : i32
    %151 = tpu.dynamic_rotate %15 by %c255_i32 dim 0 : vector<256x128xf32>, i32 -> vector<256x128xf32>
    %c1_i32_49 = arith.constant 1 : i32
    %152 = vector.broadcast %c1_i32_49 : i32 to vector<256x1xi32>
    %153 = arith.addi %32, %152 : vector<256x1xi32>
    %c0_i32_50 = arith.constant 0 : i32
    %154 = vector.broadcast %c0_i32_50 : i32 to vector<256x1xi32>
    %155 = arith.cmpi sge, %153, %154 : vector<256x1xi32>
    %c1_i32_51 = arith.constant 1 : i32
    %156 = vector.broadcast %c1_i32_51 : i32 to vector<256x1xi32>
    %157 = arith.addi %32, %156 : vector<256x1xi32>
    %c16_i32_52 = arith.constant 16 : i32
    %158 = vector.broadcast %c16_i32_52 : i32 to vector<256x1xi32>
    %159 = arith.cmpi slt, %157, %158 : vector<256x1xi32>
    %160 = arith.andi %155, %159 : vector<256x1xi1>
    %c1_i32_53 = arith.constant 1 : i32
    %161 = vector.broadcast %c1_i32_53 : i32 to vector<256x1xi32>
    %162 = arith.addi %16, %161 : vector<256x1xi32>
    %c0_i32_54 = arith.constant 0 : i32
    %163 = vector.broadcast %c0_i32_54 : i32 to vector<256x1xi32>
    %164 = arith.cmpi sge, %162, %163 : vector<256x1xi32>
    %165 = arith.andi %160, %164 : vector<256x1xi1>
    %c1_i32_55 = arith.constant 1 : i32
    %166 = vector.broadcast %c1_i32_55 : i32 to vector<256x1xi32>
    %167 = arith.addi %16, %166 : vector<256x1xi32>
    %c256_i32_56 = arith.constant 256 : i32
    %168 = vector.broadcast %c256_i32_56 : i32 to vector<256x1xi32>
    %169 = arith.cmpi slt, %167, %168 : vector<256x1xi32>
    %170 = arith.andi %165, %169 : vector<256x1xi1>
    %cst_57 = arith.constant 0.000000e+00 : f32
    %171 = vector.shape_cast %170 : vector<256x1xi1> to vector<256x1xi1>
    %172 = vector.broadcast %171 : vector<256x1xi1> to vector<256x128xi1>
    %173 = vector.broadcast %cst_57 : f32 to vector<256x128xf32>
    %174 = arith.select %172, %151, %173 : vector<256x128xi1>, vector<256x128xf32>
    %175 = vector.extract_strided_slice %33 {offsets = [5, 0], sizes = [1, 128], strides = [1, 1]} : vector<9x128xf32> to vector<1x128xf32>
    %176 = vector.broadcast %175 : vector<1x128xf32> to vector<256x128xf32>
    %177 = arith.mulf %174, %176 : vector<256x128xf32>
    %178 = arith.addf %150, %177 : vector<256x128xf32>
    %c241_i32 = arith.constant 241 : i32
    %179 = tpu.dynamic_rotate %15 by %c241_i32 dim 0 : vector<256x128xf32>, i32 -> vector<256x128xf32>
    %c-1_i32_58 = arith.constant -1 : i32
    %180 = vector.broadcast %c-1_i32_58 : i32 to vector<256x1xi32>
    %181 = arith.addi %32, %180 : vector<256x1xi32>
    %c0_i32_59 = arith.constant 0 : i32
    %182 = vector.broadcast %c0_i32_59 : i32 to vector<256x1xi32>
    %183 = arith.cmpi sge, %181, %182 : vector<256x1xi32>
    %c-1_i32_60 = arith.constant -1 : i32
    %184 = vector.broadcast %c-1_i32_60 : i32 to vector<256x1xi32>
    %185 = arith.addi %32, %184 : vector<256x1xi32>
    %c16_i32_61 = arith.constant 16 : i32
    %186 = vector.broadcast %c16_i32_61 : i32 to vector<256x1xi32>
    %187 = arith.cmpi slt, %185, %186 : vector<256x1xi32>
    %188 = arith.andi %183, %187 : vector<256x1xi1>
    %c15_i32_62 = arith.constant 15 : i32
    %189 = vector.broadcast %c15_i32_62 : i32 to vector<256x1xi32>
    %190 = arith.addi %16, %189 : vector<256x1xi32>
    %c0_i32_63 = arith.constant 0 : i32
    %191 = vector.broadcast %c0_i32_63 : i32 to vector<256x1xi32>
    %192 = arith.cmpi sge, %190, %191 : vector<256x1xi32>
    %193 = arith.andi %188, %192 : vector<256x1xi1>
    %c15_i32_64 = arith.constant 15 : i32
    %194 = vector.broadcast %c15_i32_64 : i32 to vector<256x1xi32>
    %195 = arith.addi %16, %194 : vector<256x1xi32>
    %c256_i32_65 = arith.constant 256 : i32
    %196 = vector.broadcast %c256_i32_65 : i32 to vector<256x1xi32>
    %197 = arith.cmpi slt, %195, %196 : vector<256x1xi32>
    %198 = arith.andi %193, %197 : vector<256x1xi1>
    %cst_66 = arith.constant 0.000000e+00 : f32
    %199 = vector.shape_cast %198 : vector<256x1xi1> to vector<256x1xi1>
    %200 = vector.broadcast %199 : vector<256x1xi1> to vector<256x128xi1>
    %201 = vector.broadcast %cst_66 : f32 to vector<256x128xf32>
    %202 = arith.select %200, %179, %201 : vector<256x128xi1>, vector<256x128xf32>
    %203 = vector.extract_strided_slice %33 {offsets = [6, 0], sizes = [1, 128], strides = [1, 1]} : vector<9x128xf32> to vector<1x128xf32>
    %204 = vector.broadcast %203 : vector<1x128xf32> to vector<256x128xf32>
    %205 = arith.mulf %202, %204 : vector<256x128xf32>
    %206 = arith.addf %178, %205 : vector<256x128xf32>
    %c240_i32 = arith.constant 240 : i32
    %207 = tpu.dynamic_rotate %15 by %c240_i32 dim 0 : vector<256x128xf32>, i32 -> vector<256x128xf32>
    %c0_i32_67 = arith.constant 0 : i32
    %208 = vector.broadcast %c0_i32_67 : i32 to vector<256x1xi32>
    %209 = arith.addi %32, %208 : vector<256x1xi32>
    %c0_i32_68 = arith.constant 0 : i32
    %210 = vector.broadcast %c0_i32_68 : i32 to vector<256x1xi32>
    %211 = arith.cmpi sge, %209, %210 : vector<256x1xi32>
    %c0_i32_69 = arith.constant 0 : i32
    %212 = vector.broadcast %c0_i32_69 : i32 to vector<256x1xi32>
    %213 = arith.addi %32, %212 : vector<256x1xi32>
    %c16_i32_70 = arith.constant 16 : i32
    %214 = vector.broadcast %c16_i32_70 : i32 to vector<256x1xi32>
    %215 = arith.cmpi slt, %213, %214 : vector<256x1xi32>
    %216 = arith.andi %211, %215 : vector<256x1xi1>
    %c16_i32_71 = arith.constant 16 : i32
    %217 = vector.broadcast %c16_i32_71 : i32 to vector<256x1xi32>
    %218 = arith.addi %16, %217 : vector<256x1xi32>
    %c0_i32_72 = arith.constant 0 : i32
    %219 = vector.broadcast %c0_i32_72 : i32 to vector<256x1xi32>
    %220 = arith.cmpi sge, %218, %219 : vector<256x1xi32>
    %221 = arith.andi %216, %220 : vector<256x1xi1>
    %c16_i32_73 = arith.constant 16 : i32
    %222 = vector.broadcast %c16_i32_73 : i32 to vector<256x1xi32>
    %223 = arith.addi %16, %222 : vector<256x1xi32>
    %c256_i32_74 = arith.constant 256 : i32
    %224 = vector.broadcast %c256_i32_74 : i32 to vector<256x1xi32>
    %225 = arith.cmpi slt, %223, %224 : vector<256x1xi32>
    %226 = arith.andi %221, %225 : vector<256x1xi1>
    %cst_75 = arith.constant 0.000000e+00 : f32
    %227 = vector.shape_cast %226 : vector<256x1xi1> to vector<256x1xi1>
    %228 = vector.broadcast %227 : vector<256x1xi1> to vector<256x128xi1>
    %229 = vector.broadcast %cst_75 : f32 to vector<256x128xf32>
    %230 = arith.select %228, %207, %229 : vector<256x128xi1>, vector<256x128xf32>
    %231 = vector.extract_strided_slice %33 {offsets = [7, 0], sizes = [1, 128], strides = [1, 1]} : vector<9x128xf32> to vector<1x128xf32>
    %232 = vector.broadcast %231 : vector<1x128xf32> to vector<256x128xf32>
    %233 = arith.mulf %230, %232 : vector<256x128xf32>
    %234 = arith.addf %206, %233 : vector<256x128xf32>
    %c239_i32 = arith.constant 239 : i32
    %235 = tpu.dynamic_rotate %15 by %c239_i32 dim 0 : vector<256x128xf32>, i32 -> vector<256x128xf32>
    %c1_i32_76 = arith.constant 1 : i32
    %236 = vector.broadcast %c1_i32_76 : i32 to vector<256x1xi32>
    %237 = arith.addi %32, %236 : vector<256x1xi32>
    %c0_i32_77 = arith.constant 0 : i32
    %238 = vector.broadcast %c0_i32_77 : i32 to vector<256x1xi32>
    %239 = arith.cmpi sge, %237, %238 : vector<256x1xi32>
    %c1_i32_78 = arith.constant 1 : i32
    %240 = vector.broadcast %c1_i32_78 : i32 to vector<256x1xi32>
    %241 = arith.addi %32, %240 : vector<256x1xi32>
    %c16_i32_79 = arith.constant 16 : i32
    %242 = vector.broadcast %c16_i32_79 : i32 to vector<256x1xi32>
    %243 = arith.cmpi slt, %241, %242 : vector<256x1xi32>
    %244 = arith.andi %239, %243 : vector<256x1xi1>
    %c17_i32_80 = arith.constant 17 : i32
    %245 = vector.broadcast %c17_i32_80 : i32 to vector<256x1xi32>
    %246 = arith.addi %16, %245 : vector<256x1xi32>
    %c0_i32_81 = arith.constant 0 : i32
    %247 = vector.broadcast %c0_i32_81 : i32 to vector<256x1xi32>
    %248 = arith.cmpi sge, %246, %247 : vector<256x1xi32>
    %249 = arith.andi %244, %248 : vector<256x1xi1>
    %c17_i32_82 = arith.constant 17 : i32
    %250 = vector.broadcast %c17_i32_82 : i32 to vector<256x1xi32>
    %251 = arith.addi %16, %250 : vector<256x1xi32>
    %c256_i32_83 = arith.constant 256 : i32
    %252 = vector.broadcast %c256_i32_83 : i32 to vector<256x1xi32>
    %253 = arith.cmpi slt, %251, %252 : vector<256x1xi32>
    %254 = arith.andi %249, %253 : vector<256x1xi1>
    %cst_84 = arith.constant 0.000000e+00 : f32
    %255 = vector.shape_cast %254 : vector<256x1xi1> to vector<256x1xi1>
    %256 = vector.broadcast %255 : vector<256x1xi1> to vector<256x128xi1>
    %257 = vector.broadcast %cst_84 : f32 to vector<256x128xf32>
    %258 = arith.select %256, %235, %257 : vector<256x128xi1>, vector<256x128xf32>
    %259 = vector.extract_strided_slice %33 {offsets = [8, 0], sizes = [1, 128], strides = [1, 1]} : vector<9x128xf32> to vector<1x128xf32>
    %260 = vector.broadcast %259 : vector<1x128xf32> to vector<256x128xf32>
    %261 = arith.mulf %258, %260 : vector<256x128xf32>
    %262 = arith.addf %234, %261 : vector<256x128xf32>
    %c0_85 = arith.constant 0 : index
    %c0_86 = arith.constant 0 : index
    %263 = vector.load %arg5[%c0_85, %c0_86] : memref<1x128xf32, #tpu.memory_space<vmem>>, vector<1x128xf32>
    %264 = vector.broadcast %263 : vector<1x128xf32> to vector<256x128xf32>
    %265 = arith.addf %262, %264 : vector<256x128xf32>
    %cst_87 = arith.constant dense<0.000000e+00> : vector<128xf32>
    %266 = vector.multi_reduction <add>, %265, %cst_87 [0] : vector<256x128xf32> to vector<128xf32>
    %267 = vector.shape_cast %266 : vector<128xf32> to vector<1x128xf32>
    %cst_88 = arith.constant 3.906250e-03 : f32
    %268 = vector.broadcast %cst_88 : f32 to vector<1x128xf32>
    %269 = arith.mulf %267, %268 : vector<1x128xf32>
    %270 = arith.truncf %269 : vector<1x128xf32> to vector<1x128xbf16>
    %271 = vector.shape_cast %270 : vector<1x128xbf16> to vector<1x128xbf16>
    %272 = vector.broadcast %271 : vector<1x128xbf16> to vector<8x128xbf16>
    %c0_89 = arith.constant 0 : index
    %c0_90 = arith.constant 0 : index
    %273 = vector.load %arg6[%c0_89, %c0_90] : memref<128x128xbf16, #tpu.memory_space<vmem>>, vector<128x128xbf16>
    %cst_91 = arith.constant dense<0.000000e+00> : vector<8x128xf32>
    %274 = tpu.matmul %272, %273, %cst_91 {dimension_numbers = #tpu.dot_dimension_numbers<[1], [0], [0], [1], [0, 0, 1, 1], [], []>} : vector<8x128xbf16>, vector<128x128xbf16>, vector<8x128xf32> -> vector<8x128xf32>
    %c0_92 = arith.constant 0 : index
    %c0_93 = arith.constant 0 : index
    %275 = vector.load %arg7[%c0_92, %c0_93] : memref<1x128xf32, #tpu.memory_space<vmem>>, vector<1x128xf32>
    %276 = vector.broadcast %275 : vector<1x128xf32> to vector<8x128xf32>
    %277 = arith.addf %274, %276 : vector<8x128xf32>
    %cst_94 = arith.constant 0.000000e+00 : f32
    %278 = vector.broadcast %cst_94 : f32 to vector<8x128xf32>
    %279 = arith.maximumf %277, %278 : vector<8x128xf32>
    %280 = arith.truncf %279 : vector<8x128xf32> to vector<8x128xbf16>
    %c0_95 = arith.constant 0 : index
    %c0_96 = arith.constant 0 : index
    %281 = vector.load %arg8[%c0_95, %c0_96] : memref<128x128xbf16, #tpu.memory_space<vmem>>, vector<128x128xbf16>
    %cst_97 = arith.constant dense<0.000000e+00> : vector<8x128xf32>
    %282 = tpu.matmul %280, %281, %cst_97 {dimension_numbers = #tpu.dot_dimension_numbers<[1], [0], [0], [1], [0, 0, 1, 1], [], []>} : vector<8x128xbf16>, vector<128x128xbf16>, vector<8x128xf32> -> vector<8x128xf32>
    %c0_98 = arith.constant 0 : index
    %c0_99 = arith.constant 0 : index
    %283 = vector.load %arg9[%c0_98, %c0_99] : memref<1x128xf32, #tpu.memory_space<vmem>>, vector<1x128xf32>
    %284 = vector.broadcast %283 : vector<1x128xf32> to vector<8x128xf32>
    %285 = arith.addf %282, %284 : vector<8x128xf32>
    %cst_100 = arith.constant 3.000000e+00 : f32
    %286 = vector.broadcast %cst_100 : f32 to vector<8x128xf32>
    %287 = arith.addf %285, %286 : vector<8x128xf32>
    %cst_101 = arith.constant 0.000000e+00 : f32
    %cst_102 = arith.constant 6.000000e+00 : f32
    %288 = vector.broadcast %cst_101 : f32 to vector<8x128xf32>
    %289 = arith.maximumf %288, %287 : vector<8x128xf32>
    %290 = vector.broadcast %cst_102 : f32 to vector<8x128xf32>
    %291 = arith.minimumf %290, %289 : vector<8x128xf32>
    %cst_103 = arith.constant 0.166666672 : f32
    %292 = vector.broadcast %cst_103 : f32 to vector<8x128xf32>
    %293 = arith.mulf %291, %292 : vector<8x128xf32>
    %294 = vector.extract_strided_slice %293 {offsets = [0, 0], sizes = [1, 128], strides = [1, 1]} : vector<8x128xf32> to vector<1x128xf32>
    %295 = vector.broadcast %294 : vector<1x128xf32> to vector<256x128xf32>
    %296 = arith.mulf %265, %295 : vector<256x128xf32>
    %cst_104 = arith.constant 3.000000e+00 : f32
    %297 = vector.broadcast %cst_104 : f32 to vector<256x128xf32>
    %298 = arith.addf %296, %297 : vector<256x128xf32>
    %cst_105 = arith.constant 0.000000e+00 : f32
    %cst_106 = arith.constant 6.000000e+00 : f32
    %299 = vector.broadcast %cst_105 : f32 to vector<256x128xf32>
    %300 = arith.maximumf %299, %298 : vector<256x128xf32>
    %301 = vector.broadcast %cst_106 : f32 to vector<256x128xf32>
    %302 = arith.minimumf %301, %300 : vector<256x128xf32>
    %cst_107 = arith.constant 0.166666672 : f32
    %303 = vector.broadcast %cst_107 : f32 to vector<256x128xf32>
    %304 = arith.mulf %302, %303 : vector<256x128xf32>
    %305 = arith.mulf %296, %304 : vector<256x128xf32>
    %306 = arith.truncf %305 : vector<256x128xf32> to vector<256x128xbf16>
    %c0_108 = arith.constant 0 : index
    %c0_109 = arith.constant 0 : index
    %307 = vector.load %arg10[%c0_108, %c0_109] : memref<128x128xbf16, #tpu.memory_space<vmem>>, vector<128x128xbf16>
    %cst_110 = arith.constant dense<0.000000e+00> : vector<256x128xf32>
    %308 = tpu.matmul %306, %307, %cst_110 {dimension_numbers = #tpu.dot_dimension_numbers<[1], [0], [0], [1], [0, 0, 1, 1], [], []>} : vector<256x128xbf16>, vector<128x128xbf16>, vector<256x128xf32> -> vector<256x128xf32>
    %c0_111 = arith.constant 0 : index
    %c0_112 = arith.constant 0 : index
    %309 = vector.load %arg11[%c0_111, %c0_112] : memref<1x128xf32, #tpu.memory_space<vmem>>, vector<1x128xf32>
    %310 = vector.broadcast %309 : vector<1x128xf32> to vector<256x128xf32>
    %311 = arith.addf %308, %310 : vector<256x128xf32>
    %312 = arith.extf %1 : vector<256x128xbf16> to vector<256x128xf32>
    %313 = arith.addf %311, %312 : vector<256x128xf32>
    %314 = vector.shape_cast %313 : vector<256x128xf32> to vector<1x256x128xf32>
    %c0_113 = arith.constant 0 : index
    %c0_114 = arith.constant 0 : index
    %c0_115 = arith.constant 0 : index
    %315 = vector.load %arg12[%c0_113, %c0_114, %c0_115] : memref<1x256x128xf32, #tpu.memory_space<vmem>>, vector<1x256x128xf32>
    tpu.vector_store %arg12[%c0_113, %c0_114, %c0_115], %314 {strides = array<i32>} : memref<1x256x128xf32, #tpu.memory_space<vmem>>, vector<1x256x128xf32>,
    return
  }
  func.func @transform_0(%arg0: i32) -> (i32, i32, i32) {
    %c0_i32 = arith.constant 0 : i32
    %c0_i32_0 = arith.constant 0 : i32
    %c0_i32_1 = arith.constant 0 : i32
    return %arg0, %c0_i32, %c0_i32_0 : i32, i32, i32
  }
  func.func @transform_1(%arg0: i32) -> (i32, i32) {
    %c0_i32 = arith.constant 0 : i32
    %c0_i32_0 = arith.constant 0 : i32
    %c0_i32_1 = arith.constant 0 : i32
    return %c0_i32, %c0_i32_0 : i32, i32
  }
  func.func @transform_2(%arg0: i32) -> (i32, i32) {
    %c0_i32 = arith.constant 0 : i32
    %c0_i32_0 = arith.constant 0 : i32
    %c0_i32_1 = arith.constant 0 : i32
    return %c0_i32, %c0_i32_0 : i32, i32
  }
  func.func @transform_3(%arg0: i32) -> (i32, i32) {
    %c0_i32 = arith.constant 0 : i32
    %c0_i32_0 = arith.constant 0 : i32
    %c0_i32_1 = arith.constant 0 : i32
    return %c0_i32, %c0_i32_0 : i32, i32
  }
  func.func @transform_4(%arg0: i32) -> (i32, i32) {
    %c0_i32 = arith.constant 0 : i32
    %c0_i32_0 = arith.constant 0 : i32
    %c0_i32_1 = arith.constant 0 : i32
    return %c0_i32, %c0_i32_0 : i32, i32
  }
  func.func @transform_5(%arg0: i32) -> (i32, i32) {
    %c0_i32 = arith.constant 0 : i32
    %c0_i32_0 = arith.constant 0 : i32
    %c0_i32_1 = arith.constant 0 : i32
    return %c0_i32, %c0_i32_0 : i32, i32
  }
  func.func @transform_6(%arg0: i32) -> (i32, i32) {
    %c0_i32 = arith.constant 0 : i32
    %c0_i32_0 = arith.constant 0 : i32
    %c0_i32_1 = arith.constant 0 : i32
    return %c0_i32, %c0_i32_0 : i32, i32
  }
  func.func @transform_7(%arg0: i32) -> (i32, i32) {
    %c0_i32 = arith.constant 0 : i32
    %c0_i32_0 = arith.constant 0 : i32
    %c0_i32_1 = arith.constant 0 : i32
    return %c0_i32, %c0_i32_0 : i32, i32
  }
  func.func @transform_8(%arg0: i32) -> (i32, i32) {
    %c0_i32 = arith.constant 0 : i32
    %c0_i32_0 = arith.constant 0 : i32
    %c0_i32_1 = arith.constant 0 : i32
    return %c0_i32, %c0_i32_0 : i32, i32
  }
  func.func @transform_9(%arg0: i32) -> (i32, i32) {
    %c0_i32 = arith.constant 0 : i32
    %c0_i32_0 = arith.constant 0 : i32
    %c0_i32_1 = arith.constant 0 : i32
    return %c0_i32, %c0_i32_0 : i32, i32
  }
  func.func @transform_10(%arg0: i32) -> (i32, i32) {
    %c0_i32 = arith.constant 0 : i32
    %c0_i32_0 = arith.constant 0 : i32
    %c0_i32_1 = arith.constant 0 : i32
    return %c0_i32, %c0_i32_0 : i32, i32
  }
  func.func @transform_11(%arg0: i32) -> (i32, i32, i32) {
    %c0_i32 = arith.constant 0 : i32
    %c0_i32_0 = arith.constant 0 : i32
    %c0_i32_1 = arith.constant 0 : i32
    return %arg0, %c0_i32, %c0_i32_0 : i32, i32, i32
  }
}

</mosaic_0001>

<bundles_post_ra>
// kernel: inverted_residual_forward.1
= control target key start
LH: loop header
LB: loop body
LE: loop exit
PB: predicated region body
PF: predicated region fallthrough
CT: control target
= control target key end

     0   :  { %s5480_s17 = smov 0   ;;  %s7647_s0 = inlined_call_operand.vmem [shape: bf16[2,256,128], index: 0, kind: input, shape index: {}]   ;;  %s7648_s1 = inlined_call_operand.vmem [shape: bf16[128,128], index: 1, kind: input, shape index: {}]   ;;  %s7649_s2 = inlined_call_operand.vmem [shape: f32[1,128], index: 2, kind: input, shape index: {}]   ;;  %s7650_s3 = inlined_call_operand.vmem [shape: f32[9,128], index: 3, kind: input, shape index: {}]   ;;  %s7651_s4 = inlined_call_operand.vmem [shape: f32[1,128], index: 4, kind: input, shape index: {}]   ;;  %s7652_s5 = inlined_call_operand.vmem [shape: bf16[128,128], index: 5, kind: input, shape index: {}]   ;;  %s7653_s6 = inlined_call_operand.vmem [shape: f32[1,128], index: 6, kind: input, shape index: {}]   ;;  %s7654_s7 = inlined_call_operand.vmem [shape: bf16[128,128], index: 7, kind: input, shape index: {}]   ;;  %s7655_s8 = inlined_call_operand.vmem [shape: f32[1,128], index: 8, kind: input, shape index: {}]   ;;  %s7656_s9 = inlined_call_operand.vmem [shape: bf16[128,128], index: 9, kind: input, shape index: {}]   ;;  %s7657_s10 = inlined_call_operand.vmem [shape: f32[1,128], index: 10, kind: input, shape index: {}]   ;;  %s7658_s11 = inlined_call_operand.vmem [shape: f32[2,256,128], index: 11, kind: output, shape index: {}]  }
   0x1 LB: > { %s5125_s18 = sadd.s32 4294967295, %s5418_s17   ;;  %p5129_p0 = scmp.ge.s32.totalorder %s5418_s17, 1  ;;  %s5418_s17 = sphi %s5480_s17, %s21_s17  }
   0x2   : > { %p337_p1 = scmp.lt.s32.totalorder %s5418_s17, 3 }
   0x4   : > { %p338_p2 = pnand %p5129_p0, %p337_p1 }
   0x6   : > { %341 = sbr.rel (%p338_p2) target bundleno = 1090 (0x442), region = 64 }
   0xb   : > { %v5353_v0 = vld [vmem:[%s7648_s1 + $0x38] sm:$0xff]  ;;  %v5352_v1 = vld [vmem:[%s7648_s1 + $0x30] sm:$0xff]  ;;  %v5351_v2 = vld [vmem:[%s7648_s1 + $0x28] sm:$0xff]  ;;  %p377_p3 = scmp.lt.s32.totalorder %s5125_s18, 1  ;;  %v832_v38 = vlaneseq }
   0xc   : > { %583 = vmatpush.bf16.msra.mxu0 %v5353_v0  ;;  %5378 = vmatpush.bf16.msra.mxu1 %v5353_v0  ;;  %v5350_v3 = vld [vmem:[%s7648_s1 + $0x20] sm:$0xff]  ;;  %v5349_v4 = vld [vmem:[%s7648_s1 + $0x18] sm:$0xff]  ;;  %v5348_v5 = vld [vmem:[%s7648_s1 + $0x10] sm:$0xff] }
   0xd   : > { %s8010_s18 = smov (!%p377_p3, %s5125_s18), 1  ;;  %v5347_v6 = vld [vmem:[%s7648_s1 + $0x8] sm:$0xff]  ;;  %v5346_v7 = vld [vmem:[%s7648_s1] sm:$0xff]  ;;  %v5545_v43 = vshrl.u32 %v832_v38, 7 }
   0xe   : > { %s5328_s14 = sshll.u32 %s8010_s18, 7  ;;  %v5538_v23 = vld [vmem:[%s7649_s2] ss:$0 sm:$0xff]  ;;  %s5329_s28 = sshll.u32 %s8010_s18, 8 }
   0xf   : > { %s5518_s21 = scalar_lea.vmem %s7647_s0, %s5328_s14  ;;  %7765 = vst [vmem:[#allocation2_spill] sm:$0xff] %v5538_v23  ;;  %v5550_v44 = vld [vmem:[%s7650_s3] sm:$0xff]  ;;  %v837_v49 = vadd.s32 32, %v5545_v43  ;;  %v836_v57 = vadd.s32 24, %v5545_v43  ;;  %vm1283_vm0 = vcmp.lt.s32.totalorder %v5545_v43, 1  ;;  %vm2214_vm1 = vcmp.lt.s32.totalorder %v5545_v43, 7  ;;  %s7565_s12 = scalar_lea.vmem %s7658_s11, %s5329_s28 }
  0x10   : > { %584 = vmatpush.bf16.msra.mxu0 %v5352_v1  ;;  %5379 = vmatpush.bf16.msra.mxu1 %v5352_v1  ;;  %v5330_v8 = vld [vmem:[%s5518_s21] sm:$0xff]  ;;  %v5339_v9 = vld [vmem:[%s5518_s21 + $0x48] sm:$0xff]  ;;  %v5340_v11 = vld [vmem:[%s5518_s21 + $0x50] sm:$0xff]  ;;  %v5558_v56 = vperm.slane %v5550_v44, 1  ;;  %v5565_v63 = vperm.slane %v5550_v44, 0 }
  0x11   : > { %v5331_v10 = vld [vmem:[%s5518_s21 + $0x8] sm:$0xff]  ;;  %v5332_v12 = vld [vmem:[%s5518_s21 + $0x10] sm:$0xff]  ;;  %v5341_v13 = vld [vmem:[%s5518_s21 + $0x58] sm:$0xff]  ;;  %v897_v0 = vand.u32 15, %v837_v49 }
  0x12   : > { %v5333_v14 = vld [vmem:[%s5518_s21 + $0x18] sm:$0xff]  ;;  %v5342_v15 = vld [vmem:[%s5518_s21 + $0x60] sm:$0xff]  ;;  %v5343_v17 = vld [vmem:[%s5518_s21 + $0x68] sm:$0xff]  ;;  %7768 = vst [vmem:[#allocation5_spill] sm:$0xff] %v5565_v63 }
  0x13   : > { %v5334_v16 = vld [vmem:[%s5518_s21 + $0x20] sm:$0xff]  ;;  %v5335_v18 = vld [vmem:[%s5518_s21 + $0x28] sm:$0xff]  ;;  %v5344_v19 = vld [vmem:[%s5518_s21 + $0x70] sm:$0xff] }
  0x14   : > { %585 = vmatpush.bf16.msra.mxu0 %v5351_v2  ;;  %5380 = vmatpush.bf16.msra.mxu1 %v5351_v2  ;;  %v5336_v20 = vld [vmem:[%s5518_s21 + $0x30] sm:$0xff]  ;;  %v5345_v21 = vld [vmem:[%s5518_s21 + $0x78] sm:$0xff]  ;;  %v5338_v24 = vld [vmem:[%s5518_s21 + $0x40] sm:$0xff] }
  0x15   : > { %v5337_v22 = vld [vmem:[%s5518_s21 + $0x38] sm:$0xff] }
  0x18   : > { %586 = vmatpush.bf16.msra.mxu0 %v5350_v3  ;;  %5381 = vmatpush.bf16.msra.mxu1 %v5350_v3 }
  0x1c   : > { %587 = vmatpush.bf16.msra.mxu0 %v5349_v4  ;;  %5382 = vmatpush.bf16.msra.mxu1 %v5349_v4 }
  0x20   : > { %588 = vmatpush.bf16.msra.mxu0 %v5348_v5  ;;  %5383 = vmatpush.bf16.msra.mxu1 %v5348_v5  ;;  %v890_v5 = vand.u32 15, %v836_v57 }
  0x24   : > { %589 = vmatpush.bf16.msra.mxu0 %v5347_v6  ;;  %5384 = vmatpush.bf16.msra.mxu1 %v5347_v6  ;;  %v854_v6 = vadd.s32 168, %v5545_v43 }
  0x28   : > { %590 = vmatpush.bf16.msra.mxu0 %v5346_v7  ;;  %5385 = vmatpush.bf16.msra.mxu1 %v5346_v7  ;;  %v855_v7 = vadd.s32 176, %v5545_v43 }
  0x2b   : > { %591 = vmatmul.bf16.vlgmr.msra.gmra.mxu0 %v5330_v8  ;;  %636 = vmatmul.bf16.vlgmr.msra.gmra.mxu1 %v5339_v9 }
  0x3b   : > { %596 = vmatmul.bf16.gmra.mxu0 %v5331_v10  ;;  %641 = vmatmul.bf16.gmra.mxu1 %v5340_v11 }
  0x4b   : > { %601 = vmatmul.bf16.gmra.mxu0 %v5332_v12  ;;  %646 = vmatmul.bf16.gmra.mxu1 %v5341_v13 }
  0x5b   : > { %606 = vmatmul.bf16.gmra.mxu0 %v5333_v14  ;;  %651 = vmatmul.bf16.gmra.mxu1 %v5342_v15  ;;  %v5581_v15 = vadd.s32 4294967295, %v897_v0 }
  0x5d   : > { %vm1352_vm2 = vcmp.ge.s32.totalorder %v5581_v15, 0 }
  0x6b   : > { %611 = vmatmul.bf16.gmra.mxu0 %v5334_v16  ;;  %656 = vmatmul.bf16.gmra.mxu1 %v5343_v17 }
  0x7b   : > { %616 = vmatmul.bf16.gmra.mxu0 %v5335_v18  ;;  %661 = vmatmul.bf16.gmra.mxu1 %v5344_v19 }
  0x8b   : > { %621 = vmatmul.bf16.gmra.mxu0 %v5336_v20  ;;  %666 = vmatmul.bf16.gmra.mxu1 %v5345_v21 }
  0x9b   : > { %626 = vmatmul.bf16.gmra.mxu0 %v5337_v22 }
  0xa8   : > { %v592_v25 = vpop.f32.mrf.mxu0  ;;  %v637_v26 = vpop.f32.mrf.mxu1 }
  0xa9   : > { %v593_v27 = vadd.f32 %v5538_v23, %v592_v25  ;;  %v638_v28 = vadd.f32 %v5538_v23, %v637_v26  ;;  %v1023_v25 = vand.u32 15, %v855_v7 }
  0xab   : > { %v672_v29 = vadd.f32 3.0, %v593_v27  ;;  %631 = vmatmul.bf16.gmra.mxu0 %v5338_v24  ;;  %v690_v30 = vadd.f32 3.0, %v638_v28  ;;  %v5600_v24 = vadd.s32 1, %v890_v5  ;;  %v5621_v38 = vadd.s32 4294967295, %v1023_v25 }
  0xac   : > { %v838_v25 = vadd.s32 40, %v5545_v43 }
  0xad   : > { %v704_v31 = vmax.f32 %v672_v29, 0.0  ;;  %v722_v32 = vmax.f32 %v690_v30, 0.0  ;;  %vm2314_vm3 = vcmp.lt.s32.totalorder %v5600_v24, 16  ;;  %vm1370_vm4 = vcmp.ge.s32.totalorder %v5621_v38, 0 }
  0xaf   : > { %v736_v37 = vmin.f32 %v704_v31, 6.0  ;;  %v754_v41 = vmin.f32 %v722_v32, 6.0 }
  0xb0   : > { %v594_v33 = vpop.f32.mrf.mxu0  ;;  %v639_v34 = vpop.f32.mrf.mxu1 }
  0xb1   : > { %v595_v35 = vadd.f32 %v5538_v23, %v594_v33  ;;  %v640_v36 = vadd.f32 %v5538_v23, %v639_v34  ;;  %v768_v42 = vmul.f32 0.16666667, %v736_v37  ;;  %v786_v47 = vmul.f32 0.16666667, %v754_v41 }
  0xb2   : > { %v1016_v33 = vand.u32 15, %v854_v6 }
  0xb3   : > { %v673_v39 = vadd.f32 3.0, %v595_v35  ;;  %v691_v40 = vadd.f32 3.0, %v640_v36  ;;  %v5555_v55 = vmul.f32 %v768_v42, %v593_v27  ;;  %v5561_v62 = vmul.f32 %v786_v47, %v638_v28 }
  0xb5   : > { %v705_v45 = vmax.f32 %v673_v39, 0.0  ;;  %v723_v46 = vmax.f32 %v691_v40, 0.0  ;;  %7766 = vst [vmem:[#allocation3_spill] sm:$0xff] %v5555_v55  ;;  %v7662_v4 = vrot.slane %v5555_v55, 7  ;;  %v7661_v8 = vrot.slane %v5555_v55, 1 }
  0xb6   : > { %7767 = vst [vmem:[#allocation4_spill] sm:$0xff] %v5561_v62  ;;  %v7660_v12 = vrot.slane %v5561_v62, 7  ;;  %v7659_v17 = vrot.slane %v5561_v62, 1 }
  0xb7   : > { %v737_v51 = vmin.f32 %v705_v45, 6.0  ;;  %v755_v52 = vmin.f32 %v723_v46, 6.0  ;;  %v5629_v45 = vadd.s32 1, %v1016_v33  ;;  %v5696_v33 = vperm.slane %v5550_v44, 3 }
  0xb8   : > { %v597_v48 = vpop.f32.mrf.mxu0  ;;  %v642_v50 = vpop.f32.mrf.mxu1 }
  0xb9   : > { %v598_v53 = vadd.f32 %v5538_v23, %v597_v48  ;;  %v643_v54 = vadd.f32 %v5538_v23, %v642_v50  ;;  %v769_v58 = vmul.f32 0.16666667, %v737_v51  ;;  %v787_v59 = vmul.f32 0.16666667, %v755_v52 }
  0xba   : > { %vm2332_vm5 = vcmp.lt.s32.totalorder %v5629_v45, 16 }
  0xbb   : > { %v674_v60 = vadd.f32 3.0, %v598_v53  ;;  %v692_v61 = vadd.f32 3.0, %v643_v54  ;;  %v5567_v1 = vmul.f32 %v769_v58, %v595_v35  ;;  %v5570_v2 = vmul.f32 %v787_v59, %v640_v36 }
  0xbd   : > { %7769 = vst [vmem:[#allocation6_spill] sm:$0xff] %v5570_v2  ;;  %v706_v3 = vmax.f32 %v674_v60, 0.0  ;;  %v1252_v9 = vrot.slane %v5567_v1, 7  ;;  %v2183_v10 = vrot.slane %v5567_v1, 1  ;;  %v724_v11 = vmax.f32 %v692_v61, 0.0 }
  0xbe   : > { %v1270_v13 = vrot.slane %v5570_v2, 7  ;;  %v2201_v14 = vrot.slane %v5570_v2, 1  ;;  %v2121_v22 = vmul.f32 %v5558_v56, %v5567_v1  ;;  %v2139_v32 = vmul.f32 %v5558_v56, %v5570_v2 }
  0xbf   : > { %v5588_v18 = vsel %vm1283_vm0, %v7662_v4, %v1252_v9  ;;  %v5594_v19 = vsel %vm2214_vm1, %v7661_v8, %v2183_v10  ;;  %v738_v20 = vmin.f32 %v706_v3, 6.0  ;;  %v756_v29 = vmin.f32 %v724_v11, 6.0 }
  0xc0   : > { %v599_v16 = vpop.f32.mrf.mxu0  ;;  %7770 = vst [vmem:[#allocation7_spill] sm:$0xff] %v5588_v18  ;;  %v1704_v21 = vmul.f32 %v5565_v63, %v5588_v18  ;;  %v5606_v26 = vsel %vm1283_vm0, %v7660_v12, %v1270_v13  ;;  %v5612_v27 = vsel %vm2214_vm1, %v7659_v17, %v2201_v14  ;;  %v644_v35 = vpop.f32.mrf.mxu1 }
  0xc1   : > { %7771 = vst [vmem:[#allocation8_spill] sm:$0xff] %v5594_v19  ;;  %v770_v28 = vmul.f32 0.16666667, %v738_v20  ;;  %v1722_v31 = vmul.f32 %v5565_v63, %v5606_v26  ;;  %v788_v37 = vmul.f32 0.16666667, %v756_v29  ;;  %v600_v41 = vadd.f32 %v5538_v23, %v599_v16 }
  0xc2   : > { %7772 = vst [vmem:[#allocation9_spill] sm:$0xff] %v5606_v26  ;;  %v2153_v30 = vadd.f32 %v2121_v22, %v1704_v21  ;;  %v645_v46 = vadd.f32 %v5538_v23, %v644_v35  ;;  %v5686_v20 = vperm.slane %v5550_v44, 4 }
  0xc3   : > { %7773 = vst [vmem:[#allocation10_spill] sm:$0xff] %v5612_v27  ;;  %v5618_v34 = vmul.f32 %v770_v28, %v598_v53  ;;  %v2171_v36 = vadd.f32 %v2139_v32, %v1722_v31  ;;  %v5627_v42 = vmul.f32 %v788_v37, %v643_v54  ;;  %v5653_v53 = vperm.slane %v5550_v44, 2 }
  0xc4   : > { %v675_v58 = vadd.f32 3.0, %v600_v41  ;;  %v693_v61 = vadd.f32 3.0, %v645_v46  ;;  %7781 = vst [vmem:[#allocation18_spill] sm:$0xff] %v5686_v20  ;;  %v5693_v32 = vperm.slane %v5550_v44, 7 }
  0xc5   : > { %7774 = vst [vmem:[#allocation11_spill] sm:$0xff] %v5618_v34  ;;  %v1253_v39 = vrot.slane %v5618_v34, 7  ;;  %v2184_v40 = vrot.slane %v5618_v34, 1  ;;  %v1271_v51 = vrot.slane %v5627_v42, 7  ;;  %v2122_v57 = vmul.f32 %v5558_v56, %v5618_v34 }
  0xc6   : > { %7775 = vst [vmem:[#allocation12_spill] sm:$0xff] %v5627_v42  ;;  %v7663_v60 = vrot.slane %v5627_v42, 1  ;;  %v725_v31 = vmax.f32 %v693_v61, 0.0 }
  0xc7   : > { %v5636_v47 = vsel %vm1283_vm0, %v1252_v9, %v1253_v39  ;;  %v5642_v48 = vsel %vm2214_vm1, %v2183_v10, %v2184_v40  ;;  %7778 = vst [vmem:[#allocation15_spill] sm:$0xff] %v5653_v53  ;;  %v5662_v59 = vsel %vm1283_vm0, %v1270_v13, %v1271_v51  ;;  %v2140_v9 = vmul.f32 %v5558_v56, %v5627_v42 }
  0xc8   : > { %7776 = vst [vmem:[#allocation13_spill] sm:$0xff] %v5636_v47  ;;  %v1672_v49 = vsel %vm1352_vm2, %v5636_v47, 0.0  ;;  %v2602_v50 = vsel %vm2314_vm3, %v5642_v48, 0.0  ;;  %v602_v52 = vpop.f32.mrf.mxu0  ;;  %v1690_v5 = vsel %vm1370_vm4, %v5662_v59, 0.0  ;;  %v5680_v10 = vsel %vm2214_vm1, %v2201_v14, %v7663_v60  ;;  %v647_v16 = vpop.f32.mrf.mxu1 }
  0xc9   : > { %7777 = vst [vmem:[#allocation14_spill] sm:$0xff] %v5642_v48  ;;  %v1705_v54 = vmul.f32 %v5565_v63, %v1672_v49  ;;  %v2635_v3 = vmul.f32 %v5653_v53, %v2602_v50  ;;  %v603_v6 = vadd.f32 %v5538_v23, %v602_v52  ;;  %v1723_v7 = vmul.f32 %v5565_v63, %v1690_v5 }
  0xca   : > { %7779 = vst [vmem:[#allocation16_spill] sm:$0xff] %v5662_v59  ;;  %v2620_v11 = vsel %vm2332_vm5, %v5680_v10, 0.0  ;;  %v707_v13 = vmax.f32 %v675_v58, 0.0  ;;  %v5699_v37 = vadd.f32 %v5538_v23, %v647_v16  ;;  %v757_v50 = vmin.f32 %v725_v31, 6.0 }
  0xcb   : > { %v5666_v0 = vadd.f32 %v2122_v57, %v1705_v54  ;;  %7780 = vst [vmem:[#allocation17_spill] sm:$0xff] %v5680_v10  ;;  %v5688_v21 = vadd.f32 %v2140_v9, %v1723_v7  ;;  %v2653_v22 = vmul.f32 %v5653_v53, %v2620_v11  ;;  %v2667_v29 = vadd.f32 %v2635_v3, %v2153_v30 }
  0xcc   : > { %v739_v28 = vmin.f32 %v707_v13, 6.0  ;;  %v676_v14 = vadd.f32 3.0, %v603_v6  ;;  %v839_v54 = vadd.s32 48, %v5545_v43  ;;  %v5703_v57 = vperm.slane %v5550_v44, 5 }
  0xcd   : > { %v2685_v35 = vadd.f32 %v2653_v22, %v2171_v36  ;;  %v5706_v30 = vperm.slane %v5550_v44, 6  ;;  %v904_v58 = vand.u32 15, %v838_v25  ;;  %v694_v61 = vadd.f32 3.0, %v5699_v37 }
  0xce   : > { %v771_v49 = vmul.f32 0.16666667, %v739_v28  ;;  %v708_v52 = vmax.f32 %v676_v14, 0.0  ;;  %v789_v36 = vmul.f32 0.16666667, %v757_v50  ;;  %v856_v7 = vadd.s32 184, %v5545_v43 }
  0xcf   : > { %v5713_v9 = vadd.s32 8, %v5545_v43  ;;  %v5716_v11 = vadd.s32 136, %v5545_v43  ;;  %v5719_v13 = vadd.s32 144, %v5545_v43  ;;  %v5722_v44 = vadd.s32 152, %v5545_v43 }
  0xd0   : > { %v5709_v3 = vmul.f32 %v771_v49, %v600_v41  ;;  %v740_v5 = vmin.f32 %v708_v52, 6.0  ;;  %v911_v22 = vand.u32 15, %v839_v54  ;;  %v857_v25 = vadd.s32 192, %v5545_v43 }
  0xd1   : > { %7783 = vst [vmem:[#allocation20_spill] sm:$0xff] %v5713_v9  ;;  %v5728_v28 = vadd.s32 160, %v5545_v43  ;;  %v5730_v31 = vmul.f32 %v789_v36, %v645_v46  ;;  %v5732_v14 = vadd.s32 1, %v904_v58  ;;  %v726_v49 = vmax.f32 %v694_v61, 0.0 }
  0xd2   : > { %7782 = vst [vmem:[#allocation19_spill] sm:$0xff] %v5709_v3  ;;  %v1254_v16 = vrot.slane %v5709_v3, 7  ;;  %v2185_v41 = vrot.slane %v5709_v3, 1  ;;  %v772_v54 = vmul.f32 0.16666667, %v740_v5  ;;  %v1030_v17 = vand.u32 15, %v856_v7 }
  0xd3   : > { %7784 = vst [vmem:[#allocation21_spill] sm:$0xff] %v5730_v31  ;;  %v2123_v58 = vmul.f32 %v5558_v56, %v5709_v3  ;;  %v3021_v36 = vmul.f32 %v5686_v20, %v5709_v3  ;;  %v5757_v12 = vadd.s32 4294967295, %v911_v22  ;;  %v1037_v5 = vand.u32 15, %v857_v25 }
  0xd4   : > { %v5738_v50 = vsel %vm1283_vm0, %v1253_v39, %v1254_v16  ;;  %v5744_v52 = vsel %vm2214_vm1, %v2184_v40, %v2185_v41  ;;  %v1272_v40 = vrot.slane %v5730_v31, 7  ;;  %v2203_v4 = vrot.slane %v5730_v31, 1 }
  0xd5   : > { %7785 = vst [vmem:[#allocation22_spill] sm:$0xff] %v5738_v50  ;;  %v1706_v46 = vmul.f32 %v5565_v63, %v5738_v50  ;;  %v2636_v61 = vmul.f32 %v5653_v53, %v5744_v52  ;;  %v2956_v39 = vmul.f32 %v5696_v33, %v5738_v50  ;;  %v758_v60 = vmin.f32 %v726_v49, 6.0 }
  0xd6   : > { %7786 = vst [vmem:[#allocation23_spill] sm:$0xff] %v5744_v52  ;;  %v5766_v47 = vsel %vm1283_vm0, %v1271_v51, %v1272_v40  ;;  %v2141_v3 = vmul.f32 %v5558_v56, %v5730_v31  ;;  %v5770_v50 = vmul.f32 %v772_v54, %v603_v6  ;;  %v995_v54 = vand.u32 15, %v5719_v13 }
  0xd7   : > { %v5759_v7 = vadd.f32 %v2123_v58, %v1706_v46  ;;  %v2988_v8 = vadd.f32 %v2956_v39, %v2667_v29  ;;  %7787 = vst [vmem:[#allocation24_spill] sm:$0xff] %v5766_v47  ;;  %v2668_v22 = vadd.f32 %v2636_v61, %v5666_v0  ;;  %v1724_v29 = vmul.f32 %v5565_v63, %v5766_v47 }
  0xd8   : > { %7788 = vst [vmem:[#allocation25_spill] sm:$0xff] %v5770_v50  ;;  %v7789_v46 = vrot.slane %v5627_v42, 1  ;;  %v2974_v51 = vmul.f32 %v5696_v33, %v5766_v47  ;;  %v876_v58 = vand.u32 15, %v5713_v9  ;;  %vm1354_vm6 = vcmp.ge.s32.totalorder %v5757_v12, 0  ;;  %v604_v9 = vpop.f32.mrf.mxu0 }
  0xd9   : > { %v3053_v25 = vadd.f32 %v3021_v36, %v2988_v8  ;;  %v2173_v8 = vadd.f32 %v2141_v3, %v1724_v29  ;;  %v3039_v61 = vmul.f32 %v5686_v20, %v5730_v31  ;;  %v7670_v39 = vrot.slane %v5770_v50, 7  ;;  %v649_v29 = vpop.f32.mrf.mxu1 }
  0xda   : > { %v5779_v49 = vsel %vm2214_vm1, %v7789_v46, %v2203_v4  ;;  %v3006_v0 = vadd.f32 %v2974_v51, %v2685_v35  ;;  %v7671_v36 = vrot.slane %v5770_v50, 1  ;;  %vm2316_vm7 = vcmp.lt.s32.totalorder %v5732_v14, 16 }
  0xdb   : > { %7790 = vst [vmem:[#allocation26_spill] sm:$0xff] %v5779_v49  ;;  %v790_v46 = vmul.f32 0.16666667, %v758_v60  ;;  %v5792_v47 = vadd.s32 4294967295, %v1037_v5  ;;  %v2654_v13 = vmul.f32 %v5653_v53, %v5779_v49  ;;  %v5800_v35 = vsel %vm1283_vm0, %v1254_v16, %v7670_v39 }
  0xdc   : > { %v3071_v6 = vadd.f32 %v3039_v61, %v3006_v0  ;;  %7791 = vst [vmem:[#allocation27_spill] sm:$0xff] %v5800_v35  ;;  %v5802_v3 = vadd.s32 1, %v1030_v17  ;;  %v1674_v60 = vsel %vm1354_vm6, %v5800_v35, 0.0  ;;  %v5811_v5 = vsel %vm2214_vm1, %v2185_v41, %v7671_v36 }
  0xdd   : > { %7792 = vst [vmem:[#allocation28_spill] sm:$0xff] %v5811_v5  ;;  %v2924_v51 = vsel %vm1352_vm2, %v5800_v35, 0.0  ;;  %v5817_v16 = vmul.f32 %v790_v46, %v5699_v37  ;;  %v1707_v17 = vmul.f32 %v5565_v63, %v1674_v60  ;;  %v2124_v0 = vmul.f32 %v5558_v56, %v5770_v50 }
  0xde   : > { %v2604_v61 = vsel %vm2316_vm7, %v5811_v5, 0.0  ;;  %v2957_v39 = vmul.f32 %v5696_v33, %v2924_v51  ;;  %v5826_v41 = vadd.s32 1, %v876_v58  ;;  %v3309_v36 = vsel %vm2314_vm3, %v5811_v5, 0.0 }
  0xdf   : > { %7793 = vst [vmem:[#allocation29_spill] sm:$0xff] %v5817_v16  ;;  %v7676_v37 = vrot.slane %v5817_v16, 7  ;;  %vm1372_vm8 = vcmp.ge.s32.totalorder %v5792_v47, 0  ;;  %v5833_v46 = vadd.f32 %v2124_v0, %v1707_v17  ;;  %v2637_v60 = vmul.f32 %v5653_v53, %v2604_v61 }
  0xe0   : > { %7794 = vst [vmem:[#allocation30_spill] sm:$0xff] %v5826_v41  ;;  %v2989_v35 = vadd.f32 %v2957_v39, %v2668_v22  ;;  %v3022_v31 = vmul.f32 %v5686_v20, %v5770_v50  ;;  %v7677_v51 = vrot.slane %v5817_v16, 1  ;;  %vm2334_vm9 = vcmp.lt.s32.totalorder %v5802_v3, 16 }
  0xe1   : > { %v5842_v58 = vsel %vm1283_vm0, %v1272_v40, %v7676_v37  ;;  %v2686_v49 = vadd.f32 %v2654_v13, %v5688_v21  ;;  %v3342_v0 = vmul.f32 %v5703_v57, %v3309_v36  ;;  %v2142_v61 = vmul.f32 %v5558_v56, %v5817_v16  ;;  %v652_v59 = vpop.f32.mrf.mxu1 }
  0xe2   : > { %7795 = vst [vmem:[#allocation31_spill] sm:$0xff] %v5842_v58  ;;  %v5847_v17 = vadd.f32 %v3022_v31, %v2989_v35  ;;  %v1692_v22 = vsel %vm1372_vm8, %v5842_v58, 0.0  ;;  %v2942_v39 = vsel %vm1370_vm4, %v5842_v58, 0.0  ;;  %v5863_v21 = vsel %vm2214_vm1, %v2203_v4, %v7677_v51  ;;  %v607_v58 = vpop.f32.mrf.mxu0 }
  0xe3   : > { %v1725_v40 = vmul.f32 %v5565_v63, %v1692_v22  ;;  %7796 = vst [vmem:[#allocation32_spill] sm:$0xff] %v5863_v21  ;;  %v2975_v31 = vmul.f32 %v5696_v33, %v2942_v39  ;;  %v1002_v36 = vand.u32 15, %v5722_v44  ;;  %v2622_v13 = vsel %vm2334_vm9, %v5863_v21, 0.0 }
  0xe4   : > { %v3040_v35 = vmul.f32 %v5686_v20, %v5817_v16  ;;  %v3327_v22 = vsel %vm2332_vm5, %v5863_v21, 0.0  ;;  %v2655_v4 = vmul.f32 %v5653_v53, %v2622_v13  ;;  %v1009_v44 = vand.u32 15, %v5728_v28 }
  0xe5   : > { %v5875_v37 = vadd.f32 %v2142_v61, %v1725_v40  ;;  %v3007_v51 = vadd.f32 %v2975_v31, %v2686_v49  ;;  %v3360_v39 = vmul.f32 %v5703_v57, %v3327_v22  ;;  %v605_v5 = vadd.f32 %v5538_v23, %v604_v9 }
  0xe6   : > { %v5882_v52 = vadd.f32 %v2637_v60, %v5759_v7  ;;  %v5884_v10 = vadd.f32 %v3342_v0, %v3053_v25  ;;  %v5886_v42 = vadd.s32 4294967295, %v995_v54  ;;  %v650_v61 = vadd.f32 %v5538_v23, %v649_v29 }
  0xe7   : > { %v5888_v40 = vadd.f32 %v3040_v35, %v3007_v51  ;;  %v5891_v49 = vadd.f32 %v2655_v4, %v2173_v8  ;;  %v677_v31 = vadd.f32 3.0, %v605_v5  ;;  %v5893_v13 = vadd.f32 %v3360_v39, %v3071_v6 }
  0xe8   : > { %7797 = vst [vmem:[#allocation33_spill] sm:$0xff] %v5886_v42  ;;  %v5896_v28 = vadd.f32 %v5538_v23, %v607_v58  ;;  %v840_v9 = vadd.s32 56, %v5545_v43  ;;  %v695_v7 = vadd.f32 3.0, %v650_v61  ;;  %v841_v25 = vadd.s32 64, %v5545_v43 }
  0xe9   : > { %v5901_v54 = vadd.f32 %v5538_v23, %v652_v59  ;;  %v858_v60 = vadd.s32 200, %v5545_v43  ;;  %v5904_v51 = vadd.s32 4294967295, %v1009_v44  ;;  %v709_v8 = vmax.f32 %v677_v31, 0.0 }
  0xea   : > { %v678_v29 = vadd.f32 3.0, %v5896_v28  ;;  %v859_v6 = vadd.s32 208, %v5545_v43  ;;  %v727_v0 = vmax.f32 %v695_v7, 0.0  ;;  %v918_v58 = vand.u32 15, %v840_v9 }
  0xeb   : > { %7798 = vst [vmem:[#allocation34_spill] sm:$0xff] %v5904_v51  ;;  %v925_v35 = vand.u32 15, %v841_v25  ;;  %v696_v22 = vadd.f32 3.0, %v5901_v54  ;;  %v7799_v4 = vand.u32 15, %v5716_v11  ;;  %v5913_v59 = vadd.s32 1, %v1002_v36 }
  0xec   : > { %v741_v21 = vmin.f32 %v709_v8, 6.0  ;;  %v710_v34 = vmax.f32 %v678_v29, 0.0  ;;  %v759_v44 = vmin.f32 %v727_v0, 6.0  ;;  %v1044_v31 = vand.u32 15, %v858_v60  ;;  %v609_v29 = vpop.f32.mrf.mxu0 }
  0xed   : > { %v5911_v39 = vadd.s32 1, %v7799_v4  ;;  %7801 = vst [vmem:[#allocation36_spill] sm:$0xff] %v5913_v59  ;;  %v728_v26 = vmax.f32 %v696_v22, 0.0  ;;  %v1051_v27 = vand.u32 15, %v859_v6  ;;  %v5917_v48 = vmul.f32 %v5558_v56, %v5555_v55 }
  0xee   : > { %v5921_v9 = vmul.f32 %v5686_v20, %v5555_v55  ;;  %v773_v7 = vmul.f32 0.16666667, %v741_v21  ;;  %v742_v11 = vmin.f32 %v710_v34, 6.0  ;;  %v791_v25 = vmul.f32 0.16666667, %v759_v44  ;;  %v654_v21 = vpop.f32.mrf.mxu1 }
  0xef   : > { %7800 = vst [vmem:[#allocation35_spill] sm:$0xff] %v5911_v39  ;;  %v5923_v4 = vadd.s32 4294967295, %v925_v35  ;;  %v5925_v36 = vadd.s32 1, %v918_v58  ;;  %v760_v8 = vmin.f32 %v728_v26, 6.0  ;;  %v5929_v60 = vmul.f32 %v5558_v56, %v5561_v62 }
  0xf0   : > { %7802 = vst [vmem:[#allocation37_spill] sm:$0xff] %v5917_v48  ;;  %v5933_v6 = vmul.f32 %v5686_v20, %v5561_v62  ;;  %v5937_v0 = vmul.f32 %v5693_v32, %v5561_v62  ;;  %v805_v34 = vmul.f32 %v773_v7, %v605_v5  ;;  %v5939_v35 = vmul.f32 %v791_v25, %v650_v61 }
  0xf1   : > { %7803 = vst [vmem:[#allocation38_spill] sm:$0xff] %v5921_v9  ;;  %v774_v58 = vmul.f32 0.16666667, %v742_v11  ;;  %v5941_v22 = vadd.s32 4294967295, %v1051_v27  ;;  %v5943_v26 = vadd.s32 1, %v1044_v31  ;;  %v5946_v48 = vadd.f32 %v5538_v23, %v609_v29 }
  0xf2   : > { %7804 = vst [vmem:[#allocation39_spill] sm:$0xff] %v5925_v36  ;;  %v1256_v44 = vrot.slane %v805_v34, 7  ;;  %v2187_v9 = vrot.slane %v805_v34, 1  ;;  %vm1356_vm10 = vcmp.ge.s32.totalorder %v5923_v4, 0  ;;  %vm2318_vm11 = vcmp.lt.s32.totalorder %v5925_v36, 16 }
  0xf3   : > { %7805 = vst [vmem:[#allocation40_spill] sm:$0xff] %v5929_v60  ;;  %v792_v60 = vmul.f32 0.16666667, %v760_v8  ;;  %v5954_v27 = vadd.f32 %v5538_v23, %v654_v21  ;;  %v7808_v61 = vrot.slane %v5770_v50, 7  ;;  %v7809_v7 = vrot.slane %v5770_v50, 1 }
  0xf4   : > { %7806 = vst [vmem:[#allocation41_spill] sm:$0xff] %v5933_v6  ;;  %v2125_v6 = vmul.f32 %v5558_v56, %v805_v34  ;;  %v3023_v25 = vmul.f32 %v5686_v20, %v805_v34  ;;  %v3983_v8 = vmul.f32 %v5693_v32, %v805_v34  ;;  %v2143_v5 = vmul.f32 %v5558_v56, %v5939_v35 }
  0xf5   : > { %7807 = vst [vmem:[#allocation42_spill] sm:$0xff] %v5937_v0  ;;  %v1310_v31 = vsel %vm1283_vm0, %v7808_v61, %v1256_v44  ;;  %v5964_v11 = vsel %vm2214_vm1, %v7809_v7, %v2187_v9  ;;  %v3041_v61 = vmul.f32 %v5686_v20, %v5939_v35  ;;  %v7810_v0 = vrot.slane %v5939_v35, 7 }
  0xf6   : > { %v1708_v29 = vmul.f32 %v5565_v63, %v1310_v31  ;;  %v2958_v21 = vmul.f32 %v5696_v33, %v1310_v31  ;;  %v2638_v62 = vmul.f32 %v5653_v53, %v5964_v11  ;;  %v3663_v7 = vmul.f32 %v5706_v30, %v1310_v31 }
  0xf7   : > { %v7811_v55 = vrot.slane %v5817_v16, 7  ;;  %v7812_v50 = vrot.slane %v5939_v35, 1  ;;  %v7813_v59 = vrot.slane %v5817_v16, 1  ;;  %v4001_v23 = vmul.f32 %v5693_v32, %v5939_v35 }
  0xf8   : > { %v5991_v18 = vadd.f32 %v2125_v6, %v1708_v29  ;;  %v2990_v19 = vadd.f32 %v2958_v21, %v5882_v52  ;;  %vm1374_vm12 = vcmp.ge.s32.totalorder %v5941_v22, 0  ;;  %v6010_v6 = vmul.f32 %v774_v58, %v5896_v28 }
  0xf9   : > { %v1292_v34 = vsel %vm1283_vm0, %v7811_v55, %v7810_v0  ;;  %v5989_v39 = vsel %vm2214_vm1, %v7813_v59, %v7812_v50  ;;  %v3343_v55 = vmul.f32 %v5703_v57, %v5964_v11  ;;  %v3695_v0 = vadd.f32 %v3663_v7, %v5884_v10 }
  0xfa   : > { %7814 = vst [vmem:[#allocation43_spill] sm:$0xff] %v5989_v39  ;;  %v1726_v31 = vmul.f32 %v5565_v63, %v1292_v34  ;;  %v2976_v16 = vmul.f32 %v5696_v33, %v1292_v34  ;;  %v3681_v2 = vmul.f32 %v5706_v30, %v1292_v34  ;;  %v6003_v50 = vadd.f32 %v3023_v25, %v2990_v19 }
  0xfb   : > { %v2656_v52 = vmul.f32 %v5653_v53, %v5989_v39  ;;  %v4015_v29 = vadd.f32 %v3983_v8, %v3695_v0  ;;  %v2670_v7 = vadd.f32 %v2638_v62, %v5833_v46  ;;  %vm2336_vm13 = vcmp.lt.s32.totalorder %v5943_v26, 16 }
  0xfc   : > { %v6005_v59 = vadd.f32 %v2143_v5, %v1726_v31  ;;  %v3008_v21 = vadd.f32 %v2976_v16, %v5891_v49  ;;  %v3713_v10 = vadd.f32 %v3681_v2, %v5893_v13  ;;  %v3361_v19 = vmul.f32 %v5703_v57, %v5989_v39  ;;  %v7841_v39 = vld [vmem:[#allocation36_spill] sm:$0xff] }
  0xfd   : > { %v7712_v5 = vrot.slane %v6010_v6, 7  ;;  %v2126_v25 = vmul.f32 %v5558_v56, %v6010_v6  ;;  %v7711_v28 = vrot.slane %v6010_v6, 1  ;;  %v3024_v2 = vmul.f32 %v5686_v20, %v6010_v6 }
  0xfe   : > { %v6022_v58 = vadd.f32 %v3041_v61, %v3008_v21  ;;  %v4033_v8 = vadd.f32 %v4001_v23, %v3713_v10  ;;  %v3375_v62 = vadd.f32 %v3343_v55, %v5847_v17  ;;  %v6036_v49 = vmul.f32 %v792_v60, %v5901_v54 }
  0xff   : > { %v1309_v16 = vsel %vm1283_vm0, %v1256_v44, %v7712_v5  ;;  %v2240_v46 = vsel %vm2214_vm1, %v2187_v9, %v7711_v28  ;;  %v2688_v23 = vadd.f32 %v2656_v52, %v5875_v37  ;;  %v6050_v9 = vld [vmem:[%s7650_s3 + $0x8] ss:$0 sm:$0xff]  ;;  %v3984_v34 = vmul.f32 %v5693_v32, %v6010_v6 }
 0x100   : > { %v1676_v13 = vsel %vm1356_vm10, %v1309_v16, 0.0  ;;  %v2606_v17 = vsel %vm2318_vm11, %v2240_v46, 0.0  ;;  %v2926_v61 = vsel %vm1354_vm6, %v1309_v16, 0.0  ;;  %v3311_v44 = vsel %vm2316_vm7, %v2240_v46, 0.0 }
 0x101   : > { %v1709_v54 = vmul.f32 %v5565_v63, %v1676_v13  ;;  %v2639_v37 = vmul.f32 %v5653_v53, %v2606_v17  ;;  %v2959_v60 = vmul.f32 %v5696_v33, %v2926_v61  ;;  %v3344_v31 = vmul.f32 %v5703_v57, %v3311_v44 }
 0x102   : > { %v3631_v55 = vsel %vm1352_vm2, %v1309_v16, 0.0  ;;  %v4271_v0 = vsel %vm2314_vm3, %v2240_v46, 0.0  ;;  %v7710_v52 = vrot.slane %v6036_v49, 7  ;;  %vm2312_vm14 = vcmp.lt.s32.totalorder %v5826_v41, 16 }
 0x103   : > { %v6063_v21 = vadd.f32 %v2126_v25, %v1709_v54  ;;  %v2991_v10 = vadd.f32 %v2959_v60, %v2670_v7  ;;  %v3664_v13 = vmul.f32 %v5706_v30, %v3631_v55  ;;  %v4304_v17 = vmul.f32 %v6050_v9, %v4271_v0 }
 0x104   : > { %v7815_v61 = vrot.slane %v5939_v35, 7  ;;  %v2144_v24 = vmul.f32 %v5558_v56, %v6036_v49  ;;  %v7709_v25 = vrot.slane %v6036_v49, 1  ;;  %v3393_v7 = vadd.f32 %v3361_v19, %v5888_v40 }
 0x105   : > { %v6078_v16 = vadd.f32 %v3024_v2, %v2991_v10  ;;  %v3696_v46 = vadd.f32 %v3664_v13, %v3375_v62  ;;  %v6080_v44 = vadd.f32 %v4304_v17, %v4015_v29  ;;  %v7816_v55 = vrot.slane %v5939_v35, 1 }
 0x106   : > { %v1291_v15 = vsel %vm1283_vm0, %v7815_v61, %v7710_v52  ;;  %v3042_v10 = vmul.f32 %v5686_v20, %v6036_v49  ;;  %vm7752_vm15 = vcmp.ge.s32.totalorder %v5904_v51, 0  ;;  %vm1366_vm2 = vcmp.ge.s32.totalorder %v5886_v42, 0  ;;  %v7836_v52 = vld [vmem:[#allocation11_spill] sm:$0xff] }
 0x107   : > { %v1694_v54 = vsel %vm1374_vm12, %v1291_v15, 0.0  ;;  %v2222_v0 = vsel %vm2214_vm1, %v7816_v55, %v7709_v25  ;;  %v2944_v40 = vsel %vm1372_vm8, %v1291_v15, 0.0  ;;  %v3649_v19 = vsel %vm1370_vm4, %v1291_v15, 0.0 }
 0x108   : > { %v1727_v60 = vmul.f32 %v5565_v63, %v1694_v54  ;;  %v6095_v29 = vadd.f32 %v3984_v34, %v3696_v46  ;;  %v2624_v2 = vsel %vm2336_vm13, %v2222_v0, 0.0  ;;  %v2977_v62 = vmul.f32 %v5696_v33, %v2944_v40  ;;  %v612_v40 = vpop.f32.mrf.mxu0 }
 0x109   : > { %v2657_v13 = vmul.f32 %v5653_v53, %v2624_v2  ;;  %v3329_v17 = vsel %vm2334_vm9, %v2222_v0, 0.0  ;;  %v3682_v38 = vmul.f32 %v5706_v30, %v3649_v19  ;;  %v4002_v15 = vmul.f32 %v5693_v32, %v6036_v49 }
 0x10a   : > { %v6102_v35 = vadd.f32 %v2144_v24, %v1727_v60  ;;  %v3009_v34 = vadd.f32 %v2977_v62, %v2688_v23  ;;  %v3362_v61 = vmul.f32 %v5703_v57, %v3329_v17  ;;  %v4289_v46 = vsel %vm2332_vm5, %v2222_v0, 0.0 }
 0x10b   : > { %v3714_v24 = vadd.f32 %v3682_v38, %v3393_v7  ;;  %v4322_v54 = vmul.f32 %v6050_v9, %v4289_v46  ;;  %v679_v60 = vadd.f32 3.0, %v5946_v48  ;;  %v2671_v55 = vadd.f32 %v2639_v37, %v5991_v18  ;;  %v657_v38 = vpop.f32.mrf.mxu1  ;;  %v7819_v37 = vld [vmem:[#allocation6_spill] sm:$0xff] }
 0x10c   : > { %v6118_v19 = vadd.f32 %v3042_v10, %v3009_v34  ;;  %v3376_v23 = vadd.f32 %v3344_v31, %v6003_v50  ;;  %v697_v2 = vadd.f32 3.0, %v5954_v27  ;;  %v6123_v62 = vadd.f32 %v2657_v13, %v6005_v59  ;;  %v7821_v59 = vld [vmem:[#allocation2_spill] sm:$0xff]  ;;  %v7822_v13 = vld [vmem:[#allocation8_spill] sm:$0xff]  ;;  %v7824_v34 = vld [vmem:[#allocation7_spill] sm:$0xff] }
 0x10d   : > { %v6125_v45 = vadd.f32 %v4002_v15, %v3714_v24  ;;  %v6127_v0 = vadd.f32 %v4322_v54, %v4033_v8  ;;  %v711_v7 = vmax.f32 %v679_v60, 0.0  ;;  %v6130_v17 = vadd.f32 %v3362_v61, %v6022_v58  ;;  %v7827_v15 = vld [vmem:[#allocation14_spill] sm:$0xff] }
 0x10e   : > { %v6134_v18 = vmul.f32 %v5686_v20, %v5567_v1  ;;  %v6138_v50 = vmul.f32 %v5686_v20, %v7819_v37  ;;  %v729_v31 = vmax.f32 %v697_v2, 0.0  ;;  %v6141_v10 = vadd.f32 %v7821_v59, %v612_v40  ;;  %v7829_v2 = vld [vmem:[#allocation10_spill] sm:$0xff] }
 0x10f   : > { %7817 = vst [vmem:[#allocation44_spill] sm:$0xff] %v6127_v0  ;;  %v6145_v8 = vmul.f32 %v5653_v53, %v7822_v13  ;;  %v6149_v58 = vmul.f32 %v5696_v33, %v7824_v34  ;;  %v6153_v1 = vmul.f32 %v5693_v32, %v7819_v37  ;;  %v743_v61 = vmin.f32 %v711_v7, 6.0  ;;  %v7831_v37 = vld [vmem:[#allocation9_spill] sm:$0xff] }
 0x110   : > { %7818 = vst [vmem:[#allocation45_spill] sm:$0xff] %v6134_v18  ;;  %v3307_v46 = vsel %vm2312_vm14, %v7827_v15, 0.0  ;;  %v761_v24 = vmin.f32 %v729_v31, 6.0  ;;  %v680_v54 = vadd.f32 3.0, %v6141_v10  ;;  %v6160_v60 = vadd.f32 %v7821_v59, %v657_v38 }
 0x111   : > { %7820 = vst [vmem:[#allocation6_spill] sm:$0xff] %v6138_v50  ;;  %v6164_v40 = vmul.f32 %v5703_v57, %v7822_v13  ;;  %v6168_v34 = vmul.f32 %v5653_v53, %v7829_v2  ;;  %v6172_v7 = vmul.f32 %v5696_v33, %v7831_v37  ;;  %v775_v25 = vmul.f32 0.16666667, %v743_v61 }
 0x112   : > { %7823 = vst [vmem:[#allocation2_spill] sm:$0xff] %v6145_v8  ;;  %v6176_v31 = vmul.f32 %v5703_v57, %v7829_v2  ;;  %v6180_v38 = vmul.f32 %v5706_v30, %v7831_v37  ;;  %v6184_v13 = vmul.f32 %v6050_v9, %v7829_v2  ;;  %v793_v15 = vmul.f32 0.16666667, %v761_v24  ;;  %v7840_v37 = vld [vmem:[#allocation35_spill] sm:$0xff]  ;;  %v7842_v2 = vld [vmem:[#allocation12_spill] sm:$0xff] }
 0x113   : > { %7825 = vst [vmem:[#allocation8_spill] sm:$0xff] %v6149_v58  ;;  %v6188_v28 = vmul.f32 %v5686_v20, %v7836_v52  ;;  %v6191_v5 = vmul.f32 %v5703_v57, %v3307_v46  ;;  %v6195_v61 = vmul.f32 %v5693_v32, %v7836_v52  ;;  %v6198_v0 = vmul.f32 %v775_v25, %v5946_v48 }
 0x114   : > { %7826 = vst [vmem:[#allocation7_spill] sm:$0xff] %v6153_v1  ;;  %vm7721_vm3 = vcmp.lt.s32.totalorder %v7840_v37, 16  ;;  %vm7720_vm4 = vcmp.lt.s32.totalorder %v7841_v39, 16  ;;  %v6204_v24 = vmul.f32 %v5686_v20, %v7842_v2  ;;  %v712_v46 = vmax.f32 %v680_v54, 0.0 }
 0x115   : > { %7828 = vst [vmem:[#allocation14_spill] sm:$0xff] %v6164_v40  ;;  %v698_v1 = vadd.f32 3.0, %v6160_v60  ;;  %v6215_v48 = vmul.f32 %v5693_v32, %v7842_v2  ;;  %v7716_v25 = vrot.slane %v6198_v0, 7  ;;  %v7846_v50 = vrot.slane %v6010_v6, 7 }
 0x116   : > { %7830 = vst [vmem:[#allocation10_spill] sm:$0xff] %v6168_v34  ;;  %v860_v54 = vadd.s32 216, %v5545_v43  ;;  %v744_v42 = vmin.f32 %v712_v46, 6.0 }
 0x117   : > { %7832 = vst [vmem:[#allocation9_spill] sm:$0xff] %v6172_v7  ;;  %v6231_v2 = vsel %vm1283_vm0, %v7846_v50, %v7716_v25  ;;  %v730_v50 = vmax.f32 %v698_v1, 0.0 }
 0x118   : > { %7833 = vst [vmem:[#allocation46_spill] sm:$0xff] %v6176_v31  ;;  %v7717_v31 = vrot.slane %v6198_v0, 1  ;;  %v2960_v7 = vmul.f32 %v5696_v33, %v6231_v2  ;;  %v3665_v25 = vmul.f32 %v5706_v30, %v6231_v2 }
 0x119   : > { %7834 = vst [vmem:[#allocation47_spill] sm:$0xff] %v6180_v38  ;;  %v7844_v38 = vld [vmem:[#allocation16_spill] sm:$0xff] }
 0x11a   : > { %7835 = vst [vmem:[#allocation48_spill] sm:$0xff] %v6184_v13  ;;  %v6207_v13 = vmul.f32 %v793_v15, %v5954_v27  ;;  %v2940_v52 = vsel %vm7752_vm15, %v7844_v38, 0.0  ;;  %v3645_v27 = vsel %vm1366_vm2, %v7844_v38, 0.0  ;;  %v861_v15 = vadd.s32 224, %v5545_v43 }
 0x11b   : > { %7837 = vst [vmem:[#allocation11_spill] sm:$0xff] %v6188_v28  ;;  %v6261_v28 = vadd.f32 %v2960_v7, %v2671_v55  ;;  %v6265_v8 = vadd.f32 %v3665_v25, %v3376_v23  ;;  %v776_v25 = vmul.f32 0.16666667, %v744_v42 }
 0x11c   : > { %7838 = vst [vmem:[#allocation49_spill] sm:$0xff] %v6191_v5  ;;  %v2145_v34 = vmul.f32 %v5558_v56, %v6207_v13  ;;  %v7850_v40 = vrot.slane %v6207_v13, 1  ;;  %v7851_v5 = vrot.slane %v6036_v49, 1 }
 0x11d   : > { %7839 = vst [vmem:[#allocation50_spill] sm:$0xff] %v6195_v61  ;;  %v7848_v61 = vrot.slane %v6207_v13, 7 }
 0x11e   : > { %7843 = vst [vmem:[#allocation12_spill] sm:$0xff] %v6204_v24  ;;  %v843_v24 = vadd.s32 80, %v5545_v43  ;;  %v2221_v46 = vsel %vm2214_vm1, %v7851_v5, %v7850_v40 }
 0x11f   : > { %7845 = vst [vmem:[#allocation16_spill] sm:$0xff] %v6215_v48  ;;  %v7847_v48 = vrot.slane %v6010_v6, 1  ;;  %v2658_v5 = vmul.f32 %v5653_v53, %v2221_v46  ;;  %v4323_v40 = vmul.f32 %v6050_v9, %v2221_v46  ;;  %v3363_v23 = vmul.f32 %v5703_v57, %v2221_v46 }
 0x121   : > { %v2239_v38 = vsel %vm2214_vm1, %v7847_v48, %v7717_v31  ;;  %v7849_v48 = vrot.slane %v6036_v49, 7  ;;  %v3043_v49 = vmul.f32 %v5686_v20, %v6207_v13 }
 0x122   : > { %v4305_v6 = vmul.f32 %v6050_v9, %v2239_v38  ;;  %v2640_v1 = vmul.f32 %v5653_v53, %v2239_v38  ;;  %v3345_v18 = vmul.f32 %v5703_v57, %v2239_v38 }
 0x123   : > { %v1290_v31 = vsel %vm1283_vm0, %v7849_v48, %v7848_v61 }
 0x124   : > { %v1728_v58 = vmul.f32 %v5565_v63, %v1290_v31  ;;  %v6268_v36 = vadd.f32 %v4305_v6, %v6095_v29  ;;  %v2978_v61 = vmul.f32 %v5696_v33, %v1290_v31  ;;  %v3683_v55 = vmul.f32 %v5706_v30, %v1290_v31  ;;  %v7853_v31 = vld [vmem:[#allocation17_spill] sm:$0xff] }
 0x125   : > { %v4003_v29 = vmul.f32 %v5693_v32, %v6207_v13  ;;  %v6284_v6 = vadd.f32 %v4323_v40, %v6125_v45  ;;  %v4285_v46 = vsel %vm7721_vm3, %v7853_v31, 0.0  ;;  %v1058_v45 = vand.u32 15, %v860_v54 }
 0x126   : > { %v6273_v48 = vadd.f32 %v2145_v34, %v1728_v58  ;;  %v3010_v7 = vadd.f32 %v2978_v61, %v6123_v62  ;;  %v3715_v38 = vadd.f32 %v3683_v55, %v6130_v17  ;;  %v6287_v58 = vadd.f32 %v2640_v1, %v6063_v21 }
 0x127   : > { %7852 = vst [vmem:[#allocation51_spill] sm:$0xff] %v6284_v6  ;;  %v6290_v34 = vadd.f32 %v3345_v18, %v6078_v16  ;;  %v3325_v62 = vsel %vm7720_vm4, %v7853_v31, 0.0  ;;  %v762_v17 = vmin.f32 %v730_v50, 6.0  ;;  %v1065_v55 = vand.u32 15, %v861_v15 }
 0x128   : > { %v6298_v42 = vadd.f32 %v3043_v49, %v3010_v7  ;;  %v6300_v61 = vadd.f32 %v4003_v29, %v3715_v38  ;;  %v2690_v21 = vadd.f32 %v2658_v5, %v6102_v35  ;;  %v6304_v16 = vmul.f32 %v5696_v33, %v2940_v52  ;;  %v7858_v52 = vld [vmem:[#allocation23_spill] sm:$0xff] }
 0x129   : > { %v6307_v18 = vmul.f32 %v5706_v30, %v3645_v27  ;;  %v842_v1 = vadd.s32 72, %v5545_v43  ;;  %v939_v40 = vand.u32 15, %v843_v24  ;;  %v6311_v31 = vmul.f32 %v5703_v57, %v3325_v62  ;;  %v7860_v27 = vld [vmem:[#allocation22_spill] sm:$0xff]  ;;  %v7862_v24 = vld [vmem:[#allocation19_spill] sm:$0xff] }
 0x12a   : > { %7854 = vst [vmem:[#allocation17_spill] sm:$0xff] %v6304_v16  ;;  %v6314_v50 = vmul.f32 %v776_v25, %v6141_v10  ;;  %v794_v49 = vmul.f32 0.16666667, %v762_v17  ;;  %v3395_v54 = vadd.f32 %v3363_v23, %v6118_v19  ;;  %v6318_v35 = vmul.f32 %v6050_v9, %v4285_v46  ;;  %v614_v10 = vpop.f32.mrf.mxu0  ;;  %v7865_v19 = vld [vmem:[#allocation28_spill] sm:$0xff]  ;;  %v7868_v62 = vld [vmem:[#allocation26_spill] sm:$0xff]  ;;  %v7870_v17 = vld [vmem:[#allocation21_spill] sm:$0xff] }
 0x12b   : > { %7855 = vst [vmem:[#allocation52_spill] sm:$0xff] %v6307_v18  ;;  %v6322_v15 = vmul.f32 %v5703_v57, %v7858_v52  ;;  %v6326_v5 = vmul.f32 %v5706_v30, %v7860_v27  ;;  %v6330_v7 = vmul.f32 %v5693_v32, %v7862_v24  ;;  %v6334_v29 = vmul.f32 %v6050_v9, %v7858_v52  ;;  %v7872_v52 = vld [vmem:[#allocation24_spill] sm:$0xff] }
 0x12c   : > { %7856 = vst [vmem:[#allocation53_spill] sm:$0xff] %v6311_v31  ;;  %v4269_v23 = vsel %vm2312_vm14, %v7865_v19, 0.0  ;;  %v6339_v25 = vadd.s32 4294967295, %v1065_v55  ;;  %v6341_v38 = vadd.s32 1, %v1058_v45  ;;  %v6345_v46 = vmul.f32 %v5703_v57, %v7868_v62  ;;  %v7874_v62 = vld [vmem:[#allocation25_spill] sm:$0xff] }
 0x12d   : > { %7857 = vst [vmem:[#allocation54_spill] sm:$0xff] %v6318_v35  ;;  %v6349_v27 = vmul.f32 %v5693_v32, %v7870_v17  ;;  %v932_v24 = vand.u32 15, %v842_v1  ;;  %v6351_v6 = vadd.s32 4294967295, %v939_v40  ;;  %v6355_v35 = vmul.f32 %v5706_v30, %v7872_v52  ;;  %v7877_v40 = vld [vmem:[#allocation31_spill] sm:$0xff] }
 0x12e   : > { %7859 = vst [vmem:[#allocation23_spill] sm:$0xff] %v6322_v15  ;;  %v7722_v55 = vrot.slane %v6314_v50, 7  ;;  %v6359_v45 = vmul.f32 %v794_v49, %v6160_v60  ;;  %v6362_v19 = vadd.f32 %v7821_v59, %v614_v10  ;;  %v6369_v1 = vmul.f32 %v6050_v9, %v4269_v23  ;;  %v659_v49 = vpop.f32.mrf.mxu1 }
 0x12f   : > { %7861 = vst [vmem:[#allocation22_spill] sm:$0xff] %v6326_v5  ;;  %v6374_v17 = vsel %vm7752_vm15, %v7877_v40, 0.0  ;;  %v6378_v52 = vmul.f32 %v6050_v9, %v5964_v11  ;;  %vm1376_vm5 = vcmp.ge.s32.totalorder %v6339_v25, 0  ;;  %vm2338_vm4 = vcmp.lt.s32.totalorder %v6341_v38, 16 }
 0x130   : > { %7863 = vst [vmem:[#allocation19_spill] sm:$0xff] %v6330_v7  ;;  %v7723_v60 = vrot.slane %v6359_v45, 7  ;;  %v1710_v10 = vmul.f32 %v5565_v63, %v6231_v2  ;;  %vm1358_vm3 = vcmp.ge.s32.totalorder %v6351_v6, 0  ;;  %v7880_v11 = vrot.slane %v6198_v0, 7  ;;  %v5361_v6 = vld [vmem:[%s7652_s5 + $0x38] sm:$0xff] }
 0x131   : > { %7864 = vst [vmem:[#allocation55_spill] sm:$0xff] %v6334_v29  ;;  %v7881_v59 = vrot.slane %v6207_v13, 7  ;;  %v7883_v23 = vrot.slane %v6207_v13, 1  ;;  %v3044_v47 = vmul.f32 %v5686_v20, %v6359_v45  ;;  %v4004_v29 = vmul.f32 %v5693_v32, %v6359_v45  ;;  %4508 = vmatpush.bf16.msrb.mxu1 %v5361_v6  ;;  %v7929_v6 = vld [vmem:[#allocation13_spill] sm:$0xff] }
 0x132   : > { %7866 = vst [vmem:[#allocation28_spill] sm:$0xff] %v6339_v25  ;;  %v1307_v40 = vsel %vm1283_vm0, %v7880_v11, %v7722_v55  ;;  %v2146_v11 = vmul.f32 %v5558_v56, %v6359_v45 }
 0x133   : > { %7867 = vst [vmem:[#allocation56_spill] sm:$0xff] %v6341_v38  ;;  %v1289_v2 = vsel %vm1283_vm0, %v7881_v59, %v7723_v60  ;;  %v6418_v59 = vld [vmem:[%s7649_s2] ss:$0 sm:$0xff] }
 0x134   : > { %7869 = vst [vmem:[#allocation57_spill] sm:$0xff] %v6345_v46  ;;  %v6366_v46 = vmul.f32 %v5693_v32, %v7874_v62  ;;  %v6388_v62 = vadd.s32 1, %v932_v24  ;;  %v1696_v18 = vsel %vm1376_vm5, %v1289_v2, 0.0  ;;  %v660_v13 = vadd.f32 %v6418_v59, %v659_v49 }
 0x135   : > { %7871 = vst [vmem:[#allocation21_spill] sm:$0xff] %v6349_v27  ;;  %v7882_v27 = vrot.slane %v6359_v45, 1  ;;  %v2946_v60 = vsel %vm1374_vm12, %v1289_v2, 0.0  ;;  %v3651_v51 = vsel %vm1372_vm8, %v1289_v2, 0.0 }
 0x136   : > { %7873 = vst [vmem:[#allocation24_spill] sm:$0xff] %v6355_v35  ;;  %v681_v35 = vadd.f32 3.0, %v6362_v19  ;;  %v2979_v16 = vmul.f32 %v5696_v33, %v2946_v60  ;;  %v699_v2 = vadd.f32 3.0, %v660_v13  ;;  %vm2320_vm8 = vcmp.lt.s32.totalorder %v6388_v62, 16 }
 0x137   : > { %7875 = vst [vmem:[#allocation25_spill] sm:$0xff] %v6366_v46  ;;  %v2220_v24 = vsel %vm2214_vm1, %v7883_v23, %v7882_v27  ;;  %v1729_v27 = vmul.f32 %v5565_v63, %v1696_v18  ;;  %v6436_v18 = vld [vmem:[%s7651_s4] ss:$0 sm:$0xff] }
 0x138   : > { %7876 = vst [vmem:[#allocation58_spill] sm:$0xff] %v6369_v1  ;;  %v2626_v55 = vsel %vm2338_vm4, %v2220_v24, 0.0  ;;  %v3331_v31 = vsel %vm2336_vm13, %v2220_v24, 0.0  ;;  %v4291_v49 = vsel %vm2334_vm9, %v2220_v24, 0.0  ;;  %v713_v60 = vmax.f32 %v681_v35, 0.0 }
 0x139   : > { %7878 = vst [vmem:[#allocation31_spill] sm:$0xff] %v6374_v17  ;;  %v2659_v23 = vmul.f32 %v5653_v53, %v2626_v55  ;;  %v3364_v39 = vmul.f32 %v5703_v57, %v3331_v31  ;;  %v6438_v55 = vadd.f32 %v2146_v11, %v1729_v27  ;;  %v3684_v17 = vmul.f32 %v5706_v30, %v3651_v51 }
 0x13a   : > { %7879 = vst [vmem:[#allocation59_spill] sm:$0xff] %v6378_v52  ;;  %v4324_v37 = vmul.f32 %v6050_v9, %v4291_v49  ;;  %v617_v52 = vpop.f32.mrf.mxu0  ;;  %v3011_v31 = vadd.f32 %v2979_v16, %v2690_v21  ;;  %v7885_v35 = vrot.slane %v6314_v50, 1  ;;  %v7886_v21 = vrot.slane %v6198_v0, 1 }
 0x13b   : > { %v6445_v3 = vadd.f32 %v2659_v23, %v6273_v48  ;;  %v3716_v24 = vadd.f32 %v3684_v17, %v3395_v54  ;;  %v3396_v51 = vadd.f32 %v3364_v39, %v6298_v42  ;;  %v731_v48 = vmax.f32 %v699_v2, 0.0 }
 0x13c   : > { %v6450_v11 = vadd.f32 %v4324_v37, %v6300_v61  ;;  %v2238_v16 = vsel %vm2214_vm1, %v7886_v21, %v7885_v35  ;;  %v6459_v27 = vadd.f32 %v3044_v47, %v3011_v31  ;;  %v6462_v54 = vadd.f32 %v6418_v59, %v617_v52 }
 0x13d   : > { %v6466_v17 = vadd.f32 %v6436_v18, %v6080_v44  ;;  %v4036_v39 = vadd.f32 %v4004_v29, %v3716_v24  ;;  %v745_v37 = vmin.f32 %v713_v60, 6.0  ;;  %v2127_v42 = vmul.f32 %v5558_v56, %v6198_v0 }
 0x13e   : > { %7884 = vst [vmem:[#allocation60_spill] sm:$0xff] %v6450_v11  ;;  %v1678_v61 = vsel %vm1358_vm3, %v1307_v40, 0.0  ;;  %v2928_v23 = vsel %vm1356_vm10, %v1307_v40, 0.0  ;;  %v763_v49 = vmin.f32 %v731_v48, 6.0  ;;  %v3025_v52 = vmul.f32 %v5686_v20, %v6198_v0 }
 0x13f   : > { %7887 = vst [vmem:[#allocation61_spill] sm:$0xff] %v6466_v17  ;;  %v3633_v44 = vsel %vm1354_vm6, %v1307_v40, 0.0  ;;  %v4273_v29 = vsel %vm2316_vm7, %v2238_v16, 0.0  ;;  %v682_v60 = vadd.f32 3.0, %v6462_v54  ;;  %v2159_v31 = vadd.f32 %v2127_v42, %v1710_v10 }
 0x140   : > { %v3985_v47 = vmul.f32 %v5693_v32, %v6198_v0  ;;  %v2608_v2 = vsel %vm2320_vm8, %v2238_v16, 0.0  ;;  %v795_v24 = vmul.f32 0.16666667, %v763_v49  ;;  %v1711_v35 = vmul.f32 %v5565_v63, %v1678_v61 }
 0x141   : > { %v2961_v21 = vmul.f32 %v5696_v33, %v2928_v23  ;;  %v3313_v12 = vsel %vm2318_vm11, %v2238_v16, 0.0  ;;  %v777_v40 = vmul.f32 0.16666667, %v745_v37  ;;  %v3057_v14 = vadd.f32 %v3025_v52, %v6261_v28  ;;  %v662_v52 = vpop.f32.mrf.mxu1 }
 0x142   : > { %v4017_v11 = vadd.f32 %v3985_v47, %v6265_v8  ;;  %v3666_v10 = vmul.f32 %v5706_v30, %v3633_v44  ;;  %v4306_v0 = vmul.f32 %v6050_v9, %v4273_v29  ;;  %v6496_v42 = vadd.f32 %v6436_v18, %v6268_v36  ;;  %v619_v46 = vpop.f32.mrf.mxu0 }
 0x143   : > { %v2128_v61 = vmul.f32 %v5558_v56, %v6314_v50  ;;  %v6500_v23 = vmul.f32 %v795_v24, %v660_v13  ;;  %v714_v49 = vmax.f32 %v682_v60, 0.0  ;;  %v2641_v16 = vmul.f32 %v5653_v53, %v2608_v2 }
 0x144   : > { %7889 = vst [vmem:[#allocation39_spill] sm:$0xff] %v6496_v42  ;;  %v3026_v28 = vmul.f32 %v5686_v20, %v6314_v50  ;;  %v3346_v8 = vmul.f32 %v5703_v57, %v3313_v12  ;;  %v3986_v37 = vmul.f32 %v5693_v32, %v6314_v50  ;;  %v2993_v36 = vadd.f32 %v2961_v21, %v6287_v58 }
 0x145   : > { %v6508_v44 = vadd.f32 %v2128_v61, %v1711_v35  ;;  %v6512_v29 = vmul.f32 %v777_v40, %v6362_v19  ;;  %v7727_v13 = vrot.slane %v6500_v23, 7  ;;  %v3698_v60 = vadd.f32 %v3666_v10, %v6290_v34 }
 0x146   : > { %v4338_v47 = vadd.f32 %v4306_v0, %v4017_v11  ;;  %v7729_v2 = vrot.slane %v6500_v23, 1  ;;  %v844_v24 = vadd.s32 88, %v5545_v43  ;;  %v7890_v12 = vrot.slane %v6359_v45, 7 }
 0x147   : > { %v2147_v58 = vmul.f32 %v5558_v56, %v6500_v23  ;;  %v746_v19 = vmin.f32 %v714_v49, 6.0  ;;  %v663_v21 = vadd.f32 %v6418_v59, %v662_v52  ;;  %v7891_v11 = vrot.slane %v6359_v45, 1 }
 0x148   : > { %v1288_v35 = vsel %vm1283_vm0, %v7890_v12, %v7727_v13  ;;  %v1260_v61 = vrot.slane %v6512_v29, 7  ;;  %v2191_v12 = vrot.slane %v6512_v29, 1  ;;  %v3045_v49 = vmul.f32 %v5686_v20, %v6500_v23 }
 0x149   : > { %v1730_v34 = vmul.f32 %v5565_v63, %v1288_v35  ;;  %v2219_v40 = vsel %vm2214_vm1, %v7891_v11, %v7729_v2  ;;  %v2980_v10 = vmul.f32 %v5696_v33, %v1288_v35  ;;  %v3685_v0 = vmul.f32 %v5706_v30, %v1288_v35 }
 0x14a   : > { %v4325_v52 = vmul.f32 %v6050_v9, %v2219_v40  ;;  %v4005_v11 = vmul.f32 %v5693_v32, %v6500_v23  ;;  %v6546_v2 = vadd.f32 %v3026_v28, %v2993_v36  ;;  %v778_v17 = vmul.f32 0.16666667, %v746_v19 }
 0x14b   : > { %v6541_v13 = vadd.f32 %v2147_v58, %v1730_v34  ;;  %v3012_v45 = vadd.f32 %v2980_v10, %v6445_v3  ;;  %v3717_v42 = vadd.f32 %v3685_v0, %v3396_v51  ;;  %v845_v1 = vadd.s32 96, %v5545_v43 }
 0x14c   : > { %v6548_v35 = vadd.f32 %v4325_v52, %v4036_v39  ;;  %v946_v58 = vand.u32 15, %v844_v24  ;;  %v700_v34 = vadd.f32 3.0, %v663_v21  ;;  %v4018_v15 = vadd.f32 %v3986_v37, %v3698_v60 }
 0x14d   : > { %v6551_v7 = vadd.f32 %v3045_v49, %v3012_v45  ;;  %v6553_v5 = vadd.f32 %v4005_v11, %v3717_v42  ;;  %v6556_v3 = vadd.f32 %v6436_v18, %v4338_v47  ;;  %v7894_v51 = vrot.slane %v6314_v50, 7  ;;  %v664_v45 = vpop.f32.mrf.mxu1  ;;  %v622_v11 = vpop.f32.mrf.mxu0 }
 0x14e   : > { %7892 = vst [vmem:[#allocation62_spill] sm:$0xff] %v6548_v35  ;;  %v2673_v28 = vadd.f32 %v2641_v16, %v2159_v31  ;;  %v7895_v36 = vrot.slane %v6314_v50, 1  ;;  %v3378_v10 = vadd.f32 %v3346_v8, %v3057_v14  ;;  %v2660_v42 = vmul.f32 %v5653_v53, %v2219_v40 }
 0x14f   : > { %7893 = vst [vmem:[#allocation63_spill] sm:$0xff] %v6556_v3  ;;  %v1306_v39 = vsel %vm1283_vm0, %v7894_v51, %v1260_v61  ;;  %v3365_v24 = vmul.f32 %v5703_v57, %v2219_v40  ;;  %v2129_v37 = vmul.f32 %v5558_v56, %v6512_v29  ;;  %v6572_v60 = vmul.f32 %v5686_v20, %v6512_v29 }
 0x150   : > { %v2237_v19 = vsel %vm2214_vm1, %v7895_v36, %v2191_v12  ;;  %v6575_v47 = vmul.f32 %v778_v17, %v6462_v54  ;;  %v953_v31 = vand.u32 15, %v845_v1  ;;  %v1712_v50 = vmul.f32 %v5565_v63, %v1306_v39 }
 0x151   : > { %v6580_v14 = vmul.f32 %v5693_v32, %v6512_v29  ;;  %v6582_v16 = vadd.s32 1, %v946_v58  ;;  %v732_v8 = vmax.f32 %v700_v34, 0.0  ;;  %v6585_v40 = vmul.f32 %v5653_v53, %v2237_v19 }
 0x152   : > { %v2962_v0 = vmul.f32 %v5696_v33, %v1306_v39  ;;  %v3667_v49 = vmul.f32 %v5706_v30, %v1306_v39  ;;  %v4307_v54 = vmul.f32 %v6050_v9, %v2237_v19  ;;  %v6591_v1 = vadd.s32 240, %v5545_v43 }
 0x153   : > { %7896 = vst [vmem:[#allocation64_spill] sm:$0xff] %v6582_v16  ;;  %v764_v17 = vmin.f32 %v732_v8, 6.0  ;;  %v2692_v52 = vadd.f32 %v2660_v42, %v6438_v55  ;;  %v3397_v29 = vadd.f32 %v3365_v24, %v6459_v27  ;;  %v6596_v58 = vadd.s32 4294967295, %v953_v31 }
 0x154   : > { %7897 = vst [vmem:[#allocation65_spill] sm:$0xff] %v6591_v1  ;;  %v7731_v34 = vrot.slane %v6575_v47, 1  ;;  %v6600_v51 = vadd.f32 %v6418_v59, %v619_v46  ;;  %v6602_v39 = vadd.f32 %v2129_v37, %v1712_v50  ;;  %v6605_v36 = vmul.f32 %v5703_v57, %v2237_v19 }
 0x155   : > { %7898 = vst [vmem:[#allocation66_spill] sm:$0xff] %v6596_v58  ;;  %v796_v8 = vmul.f32 0.16666667, %v764_v17  ;;  %v1079_v55 = vand.u32 15, %v6591_v1  ;;  %v2994_v42 = vadd.f32 %v2962_v0, %v2673_v28  ;;  %v3699_v27 = vadd.f32 %v3667_v49, %v3378_v10 }
 0x156   : > { %v683_v24 = vadd.f32 3.0, %v6600_v51  ;;  %v665_v31 = vadd.f32 %v6418_v59, %v664_v45  ;;  %v4339_v35 = vadd.f32 %v4307_v54, %v4018_v15  ;;  %vm2322_vm6 = vcmp.lt.s32.totalorder %v6582_v16, 16 }
 0x157   : > { %v6611_v46 = vmul.f32 %v796_v8, %v663_v21  ;;  %v6613_v37 = vadd.s32 4294967295, %v1079_v55  ;;  %v6616_v19 = vadd.s32 232, %v5545_v43  ;;  %v7901_v50 = vrot.slane %v6575_v47, 7 }
 0x158   : > { %vm1360_vm7 = vcmp.ge.s32.totalorder %v6596_v58, 0  ;;  %v6627_v15 = vsel %vm2214_vm1, %v2191_v12, %v7731_v34  ;;  %v701_v21 = vadd.f32 3.0, %v665_v31  ;;  %v6633_v49 = vadd.f32 %v6418_v59, %v622_v11 }
 0x159   : > { %7899 = vst [vmem:[#allocation67_spill] sm:$0xff] %v6613_v37  ;;  %v1305_v28 = vsel %vm1283_vm0, %v1260_v61, %v7901_v50  ;;  %v7732_v10 = vrot.slane %v6611_v46, 7  ;;  %vm1378_vm9 = vcmp.ge.s32.totalorder %v6613_v37, 0  ;;  %v7733_v0 = vrot.slane %v6611_v46, 1 }
 0x15a   : > { %7900 = vst [vmem:[#allocation68_spill] sm:$0xff] %v6616_v19  ;;  %v2148_v61 = vmul.f32 %v5558_v56, %v6611_v46  ;;  %v3046_v54 = vmul.f32 %v5686_v20, %v6611_v46  ;;  %v715_v17 = vmax.f32 %v683_v24, 0.0  ;;  %v733_v45 = vmax.f32 %v701_v21, 0.0 }
 0x15b   : > { %v7902_v12 = vrot.slane %v6500_v23, 7  ;;  %v7903_v11 = vrot.slane %v6500_v23, 1  ;;  %v4006_v50 = vmul.f32 %v5693_v32, %v6611_v46  ;;  %v1072_v24 = vand.u32 15, %v6616_v19 }
 0x15c   : > { %v747_v1 = vmin.f32 %v715_v17, 6.0  ;;  %v765_v41 = vmin.f32 %v733_v45, 6.0  ;;  %v3988_v4 = vmul.f32 %v5693_v32, %v6575_v47 }
 0x15d   : > { %v1287_v8 = vsel %vm1283_vm0, %v7902_v12, %v7732_v10  ;;  %v2218_v55 = vsel %vm2214_vm1, %v7903_v11, %v7733_v0  ;;  %v6668_v25 = vadd.s32 1, %v1072_v24 }
 0x15e   : > { %v1698_v21 = vsel %vm1378_vm9, %v1287_v8, 0.0  ;;  %v2948_v34 = vsel %vm1376_vm5, %v1287_v8, 0.0  ;;  %v3333_v12 = vsel %vm2338_vm4, %v2218_v55, 0.0  ;;  %v3653_v23 = vsel %vm1374_vm12, %v1287_v8, 0.0 }
 0x15f   : > { %v1731_v10 = vmul.f32 %v5565_v63, %v1698_v21  ;;  %v2981_v11 = vmul.f32 %v5696_v33, %v2948_v34  ;;  %v3366_v0 = vmul.f32 %v5703_v57, %v3333_v12  ;;  %v3686_v3 = vmul.f32 %v5706_v30, %v3653_v23 }
 0x160   : > { %v4293_v19 = vsel %vm2336_vm13, %v2218_v55, 0.0  ;;  %v6674_v21 = vadd.f32 %v6572_v60, %v2994_v42  ;;  %v797_v34 = vmul.f32 0.16666667, %v765_v41  ;;  %vm2340_vm12 = vcmp.lt.s32.totalorder %v6668_v25, 16 }
 0x161   : > { %v6670_v38 = vadd.f32 %v2148_v61, %v1731_v10  ;;  %v3013_v37 = vadd.f32 %v2981_v11, %v2692_v52  ;;  %v3718_v22 = vadd.f32 %v3686_v3, %v3397_v29  ;;  %v4326_v8 = vmul.f32 %v6050_v9, %v4293_v19 }
 0x162   : > { %v3398_v12 = vadd.f32 %v3366_v0, %v6551_v7  ;;  %v2628_v52 = vsel %vm2340_vm12, %v2218_v55, 0.0  ;;  %v4019_v3 = vadd.f32 %v6580_v14, %v3699_v27  ;;  %v1680_v60 = vsel %vm1360_vm7, %v1305_v28, 0.0 }
 0x163   : > { %v6678_v26 = vadd.f32 %v3046_v54, %v3013_v37  ;;  %v4038_v17 = vadd.f32 %v4006_v50, %v3718_v22  ;;  %v6681_v45 = vadd.f32 %v4326_v8, %v6553_v5  ;;  %v2610_v41 = vsel %vm2322_vm6, %v6627_v15, 0.0  ;;  %v667_v8 = vpop.f32.mrf.mxu1 }
 0x164   : > { %v779_v29 = vmul.f32 0.16666667, %v747_v1  ;;  %v2930_v7 = vsel %vm1358_vm3, %v1305_v28, 0.0  ;;  %v6693_v42 = vmul.f32 %v797_v34, %v665_v31  ;;  %v2661_v5 = vmul.f32 %v5653_v53, %v2628_v52 }
 0x165   : > { %7904 = vst [vmem:[#allocation69_spill] sm:$0xff] %v6681_v45  ;;  %v684_v37 = vadd.f32 3.0, %v6633_v49  ;;  %v6698_v19 = vadd.f32 %v6436_v18, %v4339_v35  ;;  %v2130_v14 = vmul.f32 %v5558_v56, %v6575_v47  ;;  %v2674_v27 = vadd.f32 %v6585_v40, %v6508_v44 }
 0x166   : > { %v3315_v1 = vsel %vm2320_vm8, %v6627_v15, 0.0  ;;  %v1713_v31 = vmul.f32 %v5565_v63, %v1680_v60  ;;  %v3028_v10 = vmul.f32 %v5686_v20, %v6575_v47  ;;  %v3379_v0 = vadd.f32 %v6605_v36, %v6546_v2 }
 0x167   : > { %7905 = vst [vmem:[#allocation70_spill] sm:$0xff] %v6698_v19  ;;  %v3635_v35 = vsel %vm1356_vm10, %v1305_v28, 0.0  ;;  %v2643_v61 = vmul.f32 %v5653_v53, %v2610_v41  ;;  %v2963_v54 = vmul.f32 %v5696_v33, %v2930_v7  ;;  %v6717_v44 = vmul.f32 %v779_v29, %v6600_v51 }
 0x168   : > { %v7743_v40 = vrot.slane %v6693_v42, 7  ;;  %v3348_v55 = vmul.f32 %v5703_v57, %v3315_v1  ;;  %v7742_v50 = vrot.slane %v6693_v42, 1  ;;  %v2693_v24 = vadd.f32 %v2661_v5, %v6541_v13 }
 0x169   : > { %v716_v23 = vmax.f32 %v684_v37, 0.0  ;;  %v3668_v2 = vmul.f32 %v5706_v30, %v3635_v35  ;;  %v4275_v36 = vsel %vm2318_vm11, %v6627_v15, 0.0  ;;  %v7906_v51 = vrot.slane %v6611_v46, 7 }
 0x16a   : > { %v2149_v13 = vmul.f32 %v5558_v56, %v6693_v42  ;;  %v7907_v22 = vrot.slane %v6611_v46, 1  ;;  %v1262_v34 = vrot.slane %v6717_v44, 7  ;;  %v2193_v52 = vrot.slane %v6717_v44, 1 }
 0x16b   : > { %v1286_v28 = vsel %vm1283_vm0, %v7906_v51, %v7743_v40  ;;  %v3047_v60 = vmul.f32 %v5686_v20, %v6693_v42  ;;  %v748_v5 = vmin.f32 %v716_v23, 6.0  ;;  %v2995_v37 = vadd.f32 %v2963_v54, %v2674_v27 }
 0x16c   : > { %v1732_v11 = vmul.f32 %v5565_v63, %v1286_v28  ;;  %v2217_v48 = vsel %vm2214_vm1, %v7907_v22, %v7742_v50  ;;  %v2982_v15 = vmul.f32 %v5696_v33, %v1286_v28  ;;  %v3687_v41 = vmul.f32 %v5706_v30, %v1286_v28 }
 0x16d   : > { %v4327_v46 = vmul.f32 %v6050_v9, %v2217_v48  ;;  %v4308_v1 = vmul.f32 %v6050_v9, %v4275_v36  ;;  %v4007_v51 = vmul.f32 %v5693_v32, %v6693_v42  ;;  %v3700_v22 = vadd.f32 %v3668_v2, %v3379_v0 }
 0x16e   : > { %v6750_v29 = vadd.f32 %v2149_v13, %v1732_v11  ;;  %v3014_v7 = vadd.f32 %v2982_v15, %v2693_v24  ;;  %v3719_v35 = vadd.f32 %v3687_v41, %v3398_v12  ;;  %v846_v28 = vadd.s32 104, %v5545_v43 }
 0x16f   : > { %v6758_v40 = vadd.f32 %v4327_v46, %v4038_v17  ;;  %v7909_v24 = vrot.slane %v6575_v47, 7  ;;  %v7910_v12 = vrot.slane %v6575_v47, 1  ;;  %v668_v17 = vadd.f32 %v6418_v59, %v667_v8 }
 0x170   : > { %v6756_v50 = vadd.f32 %v3047_v60, %v3014_v7  ;;  %v6773_v54 = vadd.f32 %v4007_v51, %v3719_v35  ;;  %v780_v23 = vmul.f32 0.16666667, %v748_v5  ;;  %v847_v2 = vadd.s32 112, %v5545_v43 }
 0x171   : > { %7908 = vst [vmem:[#allocation71_spill] sm:$0xff] %v6758_v40  ;;  %v1304_v27 = vsel %vm1283_vm0, %v7909_v24, %v1262_v34  ;;  %v2235_v0 = vsel %vm2214_vm1, %v7910_v12, %v2193_v52  ;;  %v2662_v36 = vmul.f32 %v5653_v53, %v2217_v48  ;;  %v3367_v11 = vmul.f32 %v5703_v57, %v2217_v48 }
 0x172   : > { %v2162_v13 = vadd.f32 %v2130_v14, %v1713_v31  ;;  %v3060_v15 = vadd.f32 %v3028_v10, %v2995_v37  ;;  %v4340_v60 = vadd.f32 %v4308_v1, %v4019_v3  ;;  %v702_v41 = vadd.f32 3.0, %v668_v17  ;;  %v669_v10 = vpop.f32.mrf.mxu1 }
 0x173   : > { %v2675_v47 = vadd.f32 %v2643_v61, %v6602_v39  ;;  %v2964_v7 = vmul.f32 %v5696_v33, %v1304_v27  ;;  %v3669_v46 = vmul.f32 %v5706_v30, %v1304_v27  ;;  %v4309_v35 = vmul.f32 %v6050_v9, %v2235_v0 }
 0x174   : > { %v4020_v8 = vadd.f32 %v3988_v4, %v3700_v22  ;;  %v3380_v5 = vadd.f32 %v3348_v55, %v6674_v21  ;;  %v734_v51 = vmax.f32 %v702_v41, 0.0  ;;  %v6785_v24 = vadd.f32 %v2662_v36, %v6670_v38  ;;  %v624_v36 = vpop.f32.mrf.mxu0 }
 0x175   : > { %v6788_v14 = vmul.f32 %v780_v23, %v6633_v49  ;;  %v960_v3 = vand.u32 15, %v846_v28  ;;  %v967_v31 = vand.u32 15, %v847_v2  ;;  %v3399_v39 = vadd.f32 %v3367_v11, %v6678_v26 }
 0x176   : > { %v6792_v61 = vadd.f32 %v6436_v18, %v4340_v60  ;;  %v1714_v48 = vmul.f32 %v5565_v63, %v1304_v27  ;;  %v2131_v21 = vmul.f32 %v5558_v56, %v6717_v44  ;;  %v6798_v55 = vadd.s32 248, %v5545_v43 }
 0x177   : > { %v2644_v38 = vmul.f32 %v5653_v53, %v2235_v0  ;;  %v2996_v49 = vadd.f32 %v2964_v7, %v2675_v47  ;;  %v3701_v4 = vadd.f32 %v3669_v46, %v3380_v5  ;;  %v4341_v37 = vadd.f32 %v4309_v35, %v4020_v8 }
 0x178   : > { %7911 = vst [vmem:[#allocation72_spill] sm:$0xff] %v6792_v61  ;;  %v3029_v26 = vmul.f32 %v5686_v20, %v6717_v44  ;;  %v3349_v1 = vmul.f32 %v5703_v57, %v2235_v0  ;;  %v766_v22 = vmin.f32 %v734_v51, 6.0  ;;  %v6805_v28 = vadd.f32 %v6418_v59, %v669_v10 }
 0x179   : > { %v3989_v27 = vmul.f32 %v5693_v32, %v6717_v44  ;;  %v7745_v12 = vrot.slane %v6788_v14, 7  ;;  %v6810_v23 = vadd.s32 4294967295, %v967_v31  ;;  %v6812_v2 = vadd.s32 1, %v960_v3 }
 0x17a   : > { %v6814_v11 = vadd.f32 %v2131_v21, %v1714_v48  ;;  %v7744_v60 = vrot.slane %v6788_v14, 1  ;;  %v798_v41 = vmul.f32 0.16666667, %v766_v22  ;;  %v1086_v0 = vand.u32 15, %v6798_v55 }
 0x17b   : > { %7912 = vst [vmem:[#allocation73_spill] sm:$0xff] %v6810_v23  ;;  %v6818_v47 = vadd.f32 %v3029_v26, %v2996_v49  ;;  %v6820_v7 = vadd.f32 %v3989_v27, %v3701_v4  ;;  %v6823_v46 = vadd.f32 %v6436_v18, %v4341_v37  ;;  %v6825_v35 = vadd.f32 %v2644_v38, %v2162_v13 }
 0x17c   : > { %7913 = vst [vmem:[#allocation74_spill] sm:$0xff] %v6812_v2  ;;  %v6827_v8 = vadd.f32 %v3349_v1, %v3060_v15  ;;  %v6829_v5 = vmul.f32 %v798_v41, %v668_v17  ;;  %v6832_v51 = vadd.f32 %v6418_v59, %v624_v36  ;;  %v703_v3 = vadd.f32 3.0, %v6805_v28  ;;  %v5360_v36 = vld [vmem:[%s7652_s5 + $0x30] sm:$0xff] }
 0x17d   : > { %7914 = vst [vmem:[#allocation75_spill] sm:$0xff] %v6823_v46  ;;  %v1303_v31 = vsel %vm1283_vm0, %v1262_v34, %v7745_v12  ;;  %vm1362_vm10 = vcmp.ge.s32.totalorder %v6810_v23, 0  ;;  %vm2324_vm11 = vcmp.lt.s32.totalorder %v6812_v2, 16  ;;  %v835_v13 = vadd.s32 16, %v5545_v43  ;;  %4509 = vmatpush.bf16.msrb.mxu1 %v5360_v36  ;;  %v7947_v36 = vld [vmem:[#allocation55_spill] sm:$0xff] }
 0x17e   : > { %v2234_v17 = vsel %vm2214_vm1, %v2193_v52, %v7744_v60  ;;  %v1281_v15 = vrot.slane %v6829_v5, 7  ;;  %v7746_v10 = vrot.slane %v6829_v5, 1  ;;  %v6852_v48 = vadd.s32 1, %v1086_v0 }
 0x17f   : > { %v6856_v34 = vmul.f32 %v5558_v56, %v6788_v14  ;;  %v6860_v21 = vmul.f32 %v5686_v20, %v6788_v14  ;;  %v6864_v44 = vmul.f32 %v5693_v32, %v6788_v14  ;;  %v735_v38 = vmax.f32 %v703_v3, 0.0 }
 0x180   : > { %v1682_v52 = vsel %vm1362_vm10, %v1303_v31, 0.0  ;;  %v7915_v49 = vrot.slane %v6693_v42, 7  ;;  %v7916_v37 = vrot.slane %v6693_v42, 1  ;;  %v685_v1 = vadd.f32 3.0, %v6832_v51 }
 0x181   : > { %v2612_v22 = vsel %vm2324_vm11, %v2234_v17, 0.0  ;;  %v2932_v27 = vsel %vm1360_vm7, %v1303_v31, 0.0  ;;  %vm2342_vm13 = vcmp.lt.s32.totalorder %v6852_v48, 16  ;;  %v3048_v60 = vmul.f32 %v5686_v20, %v6829_v5  ;;  %v7935_v48 = vld [vmem:[#allocation45_spill] sm:$0xff] }
 0x182   : > { %v1285_v4 = vsel %vm1283_vm0, %v7915_v49, %v1281_v15  ;;  %v2216_v26 = vsel %vm2214_vm1, %v7916_v37, %v7746_v10  ;;  %v883_v37 = vand.u32 15, %v835_v13  ;;  %v767_v40 = vmin.f32 %v735_v38, 6.0 }
 0x183   : > { %v2950_v41 = vsel %vm1378_vm9, %v1285_v4, 0.0  ;;  %v3655_v3 = vsel %vm1376_vm5, %v1285_v4, 0.0  ;;  %v4295_v10 = vsel %vm2338_vm4, %v2216_v26, 0.0  ;;  %v1446_v45 = vadd.s32 4294967279, %v835_v13 }
 0x184   : > { %v2983_v42 = vmul.f32 %v5696_v33, %v2950_v41  ;;  %v3688_v49 = vmul.f32 %v5706_v30, %v3655_v3  ;;  %v4008_v4 = vmul.f32 %v5693_v32, %v6829_v5  ;;  %v4328_v0 = vmul.f32 %v6050_v9, %v4295_v10 }
 0x185   : > { %v3317_v41 = vsel %vm2322_vm6, %v2234_v17, 0.0  ;;  %v2630_v3 = vsel %vm2342_vm13, %v2216_v26, 0.0  ;;  %v869_v61 = vand.u32 15, %v5545_v43  ;;  %v1701_v12 = vmul.f32 0.0, %v5565_v63 }
 0x186   : > { %v3015_v46 = vadd.f32 %v2983_v42, %v6785_v24  ;;  %v3720_v2 = vadd.f32 %v3688_v49, %v3399_v39  ;;  %v6909_v24 = vadd.f32 %v4328_v0, %v6773_v54  ;;  %v6911_v39 = vadd.s32 4294967295, %v883_v37 }
 0x187   : > { %v6914_v9 = vmul.f32 %v5565_v63, %v1682_v52  ;;  %v6917_v10 = vmul.f32 %v5653_v53, %v2612_v22  ;;  %v799_v42 = vmul.f32 0.16666667, %v767_v40  ;;  %v2118_v49 = vmul.f32 0.0, %v5558_v56  ;;  %v7921_v40 = vld [vmem:[#allocation20_spill] sm:$0xff] }
 0x188   : > { %v6904_v38 = vadd.f32 %v3048_v60, %v3015_v46  ;;  %v6906_v13 = vadd.f32 %v4008_v4, %v3720_v2  ;;  %7920 = vst [vmem:[#allocation67_spill] sm:$0xff] %v6909_v24  ;;  %v6921_v16 = vmul.f32 %v5696_v33, %v2932_v27  ;;  %v2663_v2 = vmul.f32 %v5653_v53, %v2630_v3 }
 0x189   : > { %v717_v60 = vmax.f32 %v685_v1, 0.0  ;;  %vm1478_vm4 = vcmp.ge.s32.totalorder %v1446_v45, 0  ;;  %v3335_v54 = vsel %vm2340_vm12, %v2216_v26, 0.0  ;;  %v6927_v46 = vmul.f32 %v799_v42, %v6805_v28  ;;  %v7930_v42 = vld [vmem:[#allocation37_spill] sm:$0xff] }
 0x18a   : > { %v1316_v52 = vadd.s32 4294967295, %v869_v61  ;;  %v2150_v37 = vadd.f32 %v2118_v49, %v1701_v12  ;;  %v6930_v22 = vmul.f32 %v5703_v57, %v3317_v41  ;;  %vm1350_vm5 = vcmp.ge.s32.totalorder %v6911_v39, 0  ;;  %v7924_v41 = vld [vmem:[#allocation3_spill] sm:$0xff] }
 0x18b   : > { %v2376_v27 = vadd.s32 4294967281, %v7921_v40  ;;  %v2632_v4 = vmul.f32 0.0, %v5653_v53  ;;  %v6937_v45 = vsel %vm1358_vm3, %v1303_v31, 0.0  ;;  %v6941_v26 = vsel %vm2320_vm8, %v2234_v17, 0.0  ;;  %vm6946_vm15 = vmand %vm1350_vm5, %vm1478_vm4  ;;  %v6964_v40 = vpop.f32.mrf.mxu0 }
 0x18c   : > { %v1282_v61 = vrot.slane %v6927_v46, 7  ;;  %v2213_v1 = vrot.slane %v6927_v46, 1  ;;  %v3368_v31 = vmul.f32 %v5703_v57, %v3335_v54  ;;  %v749_v0 = vmin.f32 %v717_v60, 6.0 }
 0x18d   : > { %vm2408_vm3 = vcmp.ge.s32.totalorder %v2376_v27, 0  ;;  %v2695_v62 = vadd.f32 %v2663_v2, %v6750_v29  ;;  %v7925_v3 = vrot.slane %v7924_v41, 7  ;;  %vm1348_vm8 = vcmp.ge.s32.totalorder %v1316_v52, 0 }
 0x18e   : > { %v1284_v17 = vsel %vm1283_vm0, %v1281_v15, %v1282_v61  ;;  %vm2440_vm4 = vmand %vm2312_vm14, %vm2408_vm3  ;;  %v2664_v49 = vadd.f32 %v2632_v4, %v2150_v37  ;;  %v7927_v29 = vrot.slane %v6829_v5, 1  ;;  %v7928_v2 = vrot.slane %v7924_v41, 1 }
 0x18f   : > { %v1315_v12 = vsel %vm1283_vm0, %v1282_v61, %v7925_v3  ;;  %v2696_v27 = vadd.s32 4294967295, %v5545_v43  ;;  %v2922_v28 = vsel %vm1350_vm5, %v7929_v6, 0.0  ;;  %v2984_v5 = vmul.f32 %v5696_v33, %v1284_v17 }
 0x190   : > { %v1670_v60 = vsel %vm6946_vm15, %v1315_v12, 0.0  ;;  %v2215_v15 = vsel %vm2214_vm1, %v7927_v29, %v2213_v1  ;;  %v6976_v54 = vsel %vm2214_vm1, %v2213_v1, %v7928_v2  ;;  %v2955_v41 = vmul.f32 %v5696_v33, %v2922_v28 }
 0x191   : > { %v1703_v4 = vmul.f32 %v5565_v63, %v1670_v60  ;;  %v2600_v61 = vsel %vm2440_vm4, %v6976_v54, 0.0  ;;  %vm2728_vm14 = vcmp.ge.s32.totalorder %v2696_v27, 0  ;;  %v3049_v1 = vmul.f32 %v5686_v20, %v6927_v46 }
 0x192   : > { %v2633_v3 = vmul.f32 %v5653_v53, %v2600_v61  ;;  %vm2760_vm15 = vmand %vm1348_vm8, %vm2728_vm14  ;;  %v3016_v60 = vadd.f32 %v2984_v5, %v2695_v62  ;;  %v3113_v2 = vadd.s32 1, %v6798_v55  ;;  %v3369_v24 = vmul.f32 %v5703_v57, %v2215_v15  ;;  %v7931_v61 = vld [vmem:[#allocation65_spill] sm:$0xff]  ;;  %v7932_v53 = vld [vmem:[#allocation2_spill] sm:$0xff] }
 0x193   : > { %v2152_v29 = vadd.f32 %v7930_v42, %v1703_v4  ;;  %v2920_v23 = vsel %vm2760_vm15, %v1315_v12, 0.0  ;;  %v3400_v19 = vadd.f32 %v3368_v31, %v6756_v50  ;;  %v3433_v27 = vadd.s32 15, %v7931_v61  ;;  %v7933_v4 = vld [vmem:[#allocation8_spill] sm:$0xff]  ;;  %v629_v39 = vpop.f32.mrf.mxu0 }
 0x194   : > { %v2665_v58 = vadd.f32 %v2633_v3, %v2150_v37  ;;  %v2953_v63 = vmul.f32 %v5696_v33, %v2920_v23  ;;  %v3081_v20 = vadd.f32 %v3049_v1, %v3016_v60  ;;  %vm3209_vm3 = vcmp.lt.s32.totalorder %v3113_v2, 256  ;;  %v7936_v3 = vld [vmem:[#allocation38_spill] sm:$0xff]  ;;  %v7938_v1 = vld [vmem:[#allocation49_spill] sm:$0xff] }
 0x195   : > { %v2666_v28 = vadd.f32 %v7932_v53, %v2152_v29  ;;  %vm3241_vm4 = vmand %vm2342_vm13, %vm3209_vm3  ;;  %v3401_v55 = vadd.f32 %v3369_v24, %v6904_v38  ;;  %vm3529_vm14 = vcmp.lt.s32.totalorder %v3433_v27, 256  ;;  %v3627_v37 = vsel %vm1348_vm8, %v7929_v6, 0.0  ;;  %v7934_v53 = vld [vmem:[#allocation27_spill] sm:$0xff]  ;;  %v7939_v2 = vld [vmem:[#allocation14_spill] sm:$0xff] }
 0x196   : > { %v2986_v42 = vadd.f32 %v7933_v4, %v2665_v58  ;;  %v2985_v50 = vadd.f32 %v2953_v63, %v2664_v49  ;;  %v3337_v62 = vsel %vm3241_vm4, %v6976_v54, 0.0  ;;  %vm3561_vm15 = vmand %vm1378_vm9, %vm3529_vm14  ;;  %v3629_v58 = vsel %vm1350_vm5, %v7934_v53, 0.0  ;;  %v7937_v6 = vld [vmem:[#allocation11_spill] sm:$0xff] }
 0x197   : > { %v2987_v31 = vadd.f32 %v2955_v41, %v2666_v28  ;;  %v781_v23 = vmul.f32 0.16666667, %v749_v0  ;;  %v3370_v38 = vmul.f32 %v5703_v57, %v3337_v62  ;;  %v3657_v24 = vsel %vm3561_vm15, %v1315_v12, 0.0  ;;  %v7940_v27 = vld [vmem:[#allocation23_spill] sm:$0xff] }
 0x198   : > { %v3051_v5 = vadd.f32 %v7935_v48, %v2986_v42  ;;  %v3050_v52 = vadd.f32 %v7936_v3, %v2985_v50  ;;  %v3660_v49 = vmul.f32 %v5706_v30, %v3627_v37  ;;  %v3689_v41 = vmul.f32 %v5706_v30, %v1284_v17  ;;  %v7941_v37 = vld [vmem:[#allocation22_spill] sm:$0xff] }
 0x199   : > { %v3052_v63 = vadd.f32 %v7937_v6, %v2987_v31  ;;  %v7019_v29 = vadd.f32 %v3370_v38, %v3081_v20  ;;  %v3662_v60 = vmul.f32 %v5706_v30, %v3629_v58  ;;  %v3690_v12 = vmul.f32 %v5706_v30, %v3657_v24  ;;  %v7942_v31 = vld [vmem:[#allocation68_spill] sm:$0xff]  ;;  %v7944_v24 = vld [vmem:[#allocation50_spill] sm:$0xff] }
 0x19a   : > { %v3372_v0 = vadd.f32 %v7938_v1, %v3051_v5  ;;  %v3371_v61 = vadd.f32 %v7939_v2, %v3050_v52  ;;  %v3721_v4 = vadd.f32 %v3689_v41, %v3400_v19  ;;  %v4009_v17 = vmul.f32 %v5693_v32, %v6927_v46  ;;  %v7037_v19 = vld [vmem:[%s7650_s3 + $0x8] ss:$0 sm:$0xff]  ;;  %v7945_v52 = vld [vmem:[#allocation25_spill] sm:$0xff] }
 0x19b   : > { %v3373_v28 = vadd.f32 %v7940_v27, %v3052_v63  ;;  %v7028_v42 = vmul.f32 %v781_v23, %v6832_v51  ;;  %v7031_v20 = vadd.f32 %v3690_v12, %v3401_v55  ;;  %v4073_v62 = vadd.s32 17, %v7942_v31  ;;  %v7943_v23 = vld [vmem:[#allocation19_spill] sm:$0xff]  ;;  %v7946_v63 = vld [vmem:[#allocation58_spill] sm:$0xff]  ;;  %v632_v12 = vpop.f32.mrf.mxu0 }
 0x19c   : > { %v3693_v50 = vadd.f32 %v7941_v37, %v3372_v0  ;;  %v3692_v53 = vadd.f32 %v3660_v49, %v3371_v61  ;;  %v4041_v48 = vadd.f32 %v4009_v17, %v3721_v4  ;;  %v4329_v46 = vmul.f32 %v7037_v19, %v2215_v15  ;;  %v7948_v0 = vld [vmem:[#allocation59_spill] sm:$0xff] }
 0x19d   : > { %v3694_v58 = vadd.f32 %v3662_v60, %v3373_v28  ;;  %v7042_v51 = vadd.f32 %v6856_v34, %v6914_v9  ;;  %vm4169_vm9 = vcmp.lt.s32.totalorder %v4073_v62, 256  ;;  %v628_v55 = vadd.f32 %v6418_v59, %v6964_v40 }
 0x19e   : > { %v4013_v5 = vadd.f32 %v7943_v23, %v3693_v50  ;;  %v3670_v38 = vmul.f32 %v5706_v30, %v6937_v45  ;;  %v4012_v3 = vadd.f32 %v7944_v24, %v3692_v53  ;;  %vm4201_vm13 = vmand %vm2340_vm12, %vm4169_vm9  ;;  %v7054_v15 = vadd.f32 %v4329_v46, %v6906_v13 }
 0x19f   : > { %v4014_v6 = vadd.f32 %v7945_v52, %v3694_v58  ;;  %v4310_v34 = vmul.f32 %v7037_v19, %v6941_v26  ;;  %v4297_v9 = vsel %vm4201_vm13, %v6976_v54, 0.0  ;;  %v686_v49 = vadd.f32 3.0, %v628_v55 }
 0x1a0   : > { %v4334_v40 = vadd.f32 %v7946_v63, %v4013_v5  ;;  %v1264_v45 = vrot.slane %v7028_v42, 7  ;;  %v4330_v41 = vmul.f32 %v7037_v19, %v4297_v9  ;;  %v4333_v1 = vadd.f32 %v7947_v36, %v4012_v3  ;;  %v7953_v36 = vld [vmem:[#allocation5_spill] sm:$0xff] }
 0x1a1   : > { %v4335_v25 = vadd.f32 %v7948_v0, %v4014_v6  ;;  %v2997_v13 = vadd.f32 %v6921_v16, %v6825_v35  ;;  %v718_v26 = vmax.f32 %v686_v49, 0.0  ;;  %v848_v54 = vadd.s32 120, %v5545_v43  ;;  %v7951_v6 = vld [vmem:[#allocation61_spill] sm:$0xff] }
 0x1a2   : > { %v7067_v60 = vadd.f32 %v6436_v18, %v4334_v40  ;;  %v7070_v2 = vadd.f32 %v4330_v41, %v4041_v48  ;;  %v7073_v61 = vadd.f32 %v6436_v18, %v4333_v1  ;;  %v849_v28 = vadd.s32 128, %v5545_v43 }
 0x1a3   : > { %v7076_v27 = vadd.f32 %v6436_v18, %v4335_v25  ;;  %v3702_v4 = vadd.f32 %v3670_v38, %v6827_v8  ;;  %v4342_v16 = vadd.f32 %v4310_v34, %v6820_v7  ;;  %v750_v35 = vmin.f32 %v718_v26, 6.0  ;;  %v5359_v8 = vld [vmem:[%s7652_s5 + $0x28] sm:$0xff]  ;;  %v7954_v25 = vld [vmem:[#allocation18_spill] sm:$0xff] }
 0x1a4   : > { %v630_v17 = vadd.f32 %v6418_v59, %v629_v39  ;;  %v7949_v37 = vrot.slane %v6788_v14, 7  ;;  %v2195_v31 = vrot.slane %v7028_v42, 1  ;;  %v4401_v62 = vadd.f32 %v7067_v60, %v7073_v61  ;;  %4510 = vmatpush.bf16.msrb.mxu1 %v5359_v8 }
 0x1a5   : > { %v633_v53 = vadd.f32 %v6418_v59, %v632_v12  ;;  %v7094_v7 = vadd.f32 %v6860_v21, %v2997_v13  ;;  %v2677_v39 = vadd.f32 %v6917_v10, %v6814_v11  ;;  %v782_v58 = vmul.f32 0.16666667, %v750_v35  ;;  %v7955_v12 = vld [vmem:[#allocation63_spill] sm:$0xff] }
 0x1a6   : > { %v1302_v50 = vsel %vm1283_vm0, %v7949_v37, %v1264_v45  ;;  %v687_v48 = vadd.f32 3.0, %v630_v17  ;;  %v4402_v46 = vadd.f32 %v4401_v62, %v7076_v27  ;;  %v974_v23 = vand.u32 15, %v848_v54  ;;  %v7956_v35 = vld [vmem:[#allocation15_spill] sm:$0xff] }
 0x1a7   : > { %v981_v5 = vand.u32 15, %v849_v28  ;;  %v688_v38 = vadd.f32 3.0, %v633_v53  ;;  %v4022_v59 = vadd.f32 %v6864_v44, %v3702_v4  ;;  %v2966_v24 = vmul.f32 %v5696_v33, %v1302_v50 }
 0x1a8   : > { %v3382_v3 = vadd.f32 %v6930_v22, %v6818_v47  ;;  %v7103_v21 = vmul.f32 %v782_v58, %v628_v55  ;;  %v7106_v52 = vadd.f32 %v6436_v18, %v4342_v16  ;;  %v7950_v11 = vrot.slane %v6788_v14, 1  ;;  %v7952_v55 = vld [vmem:[#allocation39_spill] sm:$0xff] }
 0x1a9   : > { %v4403_v34 = vadd.f32 %v4402_v46, %v7951_v6  ;;  %v719_v9 = vmax.f32 %v687_v48, 0.0  ;;  %v3671_v44 = vmul.f32 %v5706_v30, %v1302_v50  ;;  %v720_v47 = vmax.f32 %v688_v38, 0.0 }
 0x1aa   : > { %v2233_v10 = vsel %vm2214_vm1, %v7950_v11, %v2195_v31  ;;  %v1265_v63 = vrot.slane %v7103_v21, 7  ;;  %v2196_v40 = vrot.slane %v7103_v21, 1  ;;  %v2133_v22 = vmul.f32 %v5558_v56, %v7028_v42  ;;  %v7961_v11 = vld [vmem:[#allocation72_spill] sm:$0xff] }
 0x1ab   : > { %v4404_v49 = vadd.f32 %v4403_v34, %v7952_v55  ;;  %v7119_v41 = vadd.s32 4294967295, %v981_v5  ;;  %v7121_v14 = vadd.s32 1, %v974_v23  ;;  %v1716_v1 = vmul.f32 %v7953_v36, %v1302_v50 }
 0x1ac   : > { %v2998_v0 = vadd.f32 %v2966_v24, %v2677_v39  ;;  %v3031_v13 = vmul.f32 %v7954_v25, %v7028_v42  ;;  %v4311_v26 = vmul.f32 %v7037_v19, %v2233_v10  ;;  %v3991_v54 = vmul.f32 %v5693_v32, %v7028_v42  ;;  %v7957_v42 = vld [vmem:[#allocation70_spill] sm:$0xff] }
 0x1ad   : > { %v4405_v28 = vadd.f32 %v4404_v49, %v7955_v12  ;;  %v1301_v4 = vsel %vm1283_vm0, %v1264_v45, %v1265_v63  ;;  %v751_v16 = vmin.f32 %v719_v9, 6.0  ;;  %v2646_v37 = vmul.f32 %v7956_v35, %v2233_v10 }
 0x1ae   : > { %v3703_v62 = vadd.f32 %v3671_v44, %v3382_v3  ;;  %v2232_v50 = vsel %vm2214_vm1, %v2195_v31, %v2196_v40  ;;  %v752_v8 = vmin.f32 %v720_v47, 6.0  ;;  %v3351_v39 = vmul.f32 %v5703_v57, %v2233_v10 }
 0x1af   : > { %vm1364_vm12 = vcmp.ge.s32.totalorder %v7119_v41, 0  ;;  %vm2326_vm5 = vcmp.lt.s32.totalorder %v7121_v14, 16  ;;  %v4406_v58 = vadd.f32 %v4405_v28, %v7957_v42  ;;  %v2165_v48 = vadd.f32 %v2133_v22, %v1716_v1 }
 0x1b0   : > { %v3063_v46 = vadd.f32 %v3031_v13, %v2998_v0  ;;  %v4343_v23 = vadd.f32 %v4311_v26, %v4022_v59  ;;  %v2934_v5 = vsel %vm1362_vm10, %v1301_v4, 0.0  ;;  %v3639_v24 = vsel %vm1360_vm7, %v1301_v4, 0.0  ;;  %v7963_v0 = vld [vmem:[#allocation75_spill] sm:$0xff] }
 0x1b1   : > { %v4279_v31 = vsel %vm2322_vm6, %v2232_v50, 0.0  ;;  %v4407_v10 = vadd.f32 %v4406_v58, %v7961_v11  ;;  %v783_v34 = vmul.f32 0.16666667, %v751_v16  ;;  %v4023_v9 = vadd.f32 %v3991_v54, %v3703_v62  ;;  %v634_v62 = vpop.f32.mrf.mxu0 }
 0x1b2   : > { %v1684_v44 = vsel %vm1364_vm12, %v1301_v4, 0.0  ;;  %v2614_v47 = vsel %vm2326_vm5, %v2232_v50, 0.0  ;;  %v784_v59 = vmul.f32 0.16666667, %v752_v8  ;;  %v2967_v22 = vmul.f32 %v5696_v33, %v2934_v5 }
 0x1b3   : > { %v3319_v1 = vsel %vm2324_vm11, %v2232_v50, 0.0  ;;  %v4408_v13 = vadd.f32 %v4407_v10, %v7963_v0  ;;  %v7154_v26 = vmul.f32 %v783_v34, %v630_v17  ;;  %v7157_v28 = vadd.f32 %v6436_v18, %v4343_v23 }
 0x1b4   : > { %v3672_v54 = vmul.f32 %v5706_v30, %v3639_v24  ;;  %v4312_v4 = vmul.f32 %v7037_v19, %v4279_v31  ;;  %v7161_v16 = vmul.f32 %v784_v59, %v633_v53  ;;  %v2678_v8 = vadd.f32 %v2646_v37, %v7042_v51 }
 0x1b5   : > { %v3383_v58 = vadd.f32 %v3351_v39, %v7094_v7  ;;  %v1266_v50 = vrot.slane %v7154_v26, 7  ;;  %v2197_v5 = vrot.slane %v7154_v26, 1  ;;  %v1717_v17 = vmul.f32 %v7953_v36, %v1684_v44  ;;  %v5410_v7 = vld [vmem:[%s7649_s2] ss:$0 sm:$0xff] }
 0x1b6   : > { %v2647_v18 = vmul.f32 %v7956_v35, %v2614_v47  ;;  %v3352_v23 = vmul.f32 %v5703_v57, %v3319_v1  ;;  %v7764_v38 = vrot.slane %v7161_v16, 7  ;;  %v2999_v24 = vadd.f32 %v2967_v22, %v2678_v8  ;;  %v7199_v8 = vld [vmem:[%s7651_s4] ss:$0 sm:$0xff] }
 0x1b7   : > { %v4409_v53 = vadd.f32 %v4408_v13, %v7106_v52  ;;  %v1300_v51 = vsel %vm1283_vm0, %v1265_v63, %v1266_v50  ;;  %v7177_v37 = vadd.f32 %v5410_v7, %v634_v62  ;;  %v2134_v39 = vmul.f32 %v5558_v56, %v7103_v21 }
 0x1b8   : > { %v3704_v3 = vadd.f32 %v3672_v54, %v3383_v58  ;;  %v4344_v31 = vadd.f32 %v4312_v4, %v4023_v9  ;;  %v2231_v10 = vsel %vm2214_vm1, %v2196_v40, %v2197_v5  ;;  %v3032_v34 = vmul.f32 %v7954_v25, %v7103_v21 }
 0x1b9   : > { %v3673_v44 = vmul.f32 %v5706_v30, %v1300_v51  ;;  %v1299_v63 = vsel %vm1283_vm0, %v1266_v50, %v7764_v38  ;;  %v7763_v47 = vrot.slane %v7161_v16, 1  ;;  %v2166_v59 = vadd.f32 %v2134_v39, %v1717_v17 }
 0x1ba   : > { %v3992_v22 = vmul.f32 %v5693_v32, %v7103_v21  ;;  %v2679_v9 = vadd.f32 %v2647_v18, %v2165_v48  ;;  %v3384_v1 = vadd.f32 %v3352_v23, %v3063_v46  ;;  %v3064_v13 = vadd.f32 %v3032_v34, %v2999_v24 }
 0x1bb   : > { %v4410_v40 = vadd.f32 %v4409_v53, %v7157_v28  ;;  %v4313_v54 = vmul.f32 %v7037_v19, %v2231_v10  ;;  %v689_v4 = vadd.f32 3.0, %v7177_v37  ;;  %v7202_v58 = vadd.f32 %v7199_v8, %v4344_v31 }
 0x1bc   : > { %v4024_v62 = vadd.f32 %v3992_v22, %v3704_v3  ;;  %v2135_v21 = vmul.f32 %v5558_v56, %v7154_v26  ;;  %v2936_v48 = vsel %vm1364_vm12, %v1299_v63, 0.0  ;;  %v2648_v46 = vmul.f32 %v7956_v35, %v2231_v10  ;;  %v7965_v22 = vld [vmem:[#allocation35_spill] sm:$0xff] }
 0x1bd   : > { %v3705_v50 = vadd.f32 %v3673_v44, %v3384_v1  ;;  %v3993_v17 = vmul.f32 %v5693_v32, %v7154_v26  ;;  %v2230_v18 = vsel %vm2214_vm1, %v2197_v5, %v7763_v47  ;;  %v1718_v23 = vmul.f32 %v7953_v36, %v1300_v51 }
 0x1be   : > { %v2968_v24 = vmul.f32 %v5696_v33, %v1300_v51  ;;  %v3353_v53 = vmul.f32 %v5703_v57, %v2231_v10  ;;  %v3641_v7 = vsel %vm1362_vm10, %v1299_v63, 0.0  ;;  %v4411_v39 = vadd.f32 %v4410_v40, %v7202_v58 }
 0x1bf   : > { %v4345_v3 = vadd.f32 %v4313_v54, %v4024_v62  ;;  %v1686_v34 = vsel %vm1366_vm2, %v1299_v63, 0.0  ;;  %v2969_v44 = vmul.f32 %v5696_v33, %v2936_v48  ;;  %vm7966_vm6 = vcmp.lt.s32.totalorder %v7965_v22, 16 }
 0x1c0   : > { %v2616_v5 = vsel %vm7966_vm6, %v2230_v18, 0.0  ;;  %v3674_v1 = vmul.f32 %v5706_v30, %v3641_v7  ;;  %v4281_v51 = vsel %vm2324_vm11, %v2230_v18, 0.0  ;;  %v721_v10 = vmax.f32 %v689_v4, 0.0  ;;  %v5358_v7 = vld [vmem:[%s7652_s5 + $0x20] sm:$0xff] }
 0x1c1   : > { %v4025_v47 = vadd.f32 %v3993_v17, %v3705_v50  ;;  %v2680_v45 = vadd.f32 %v2648_v46, %v2166_v59  ;;  %v3321_v40 = vsel %vm2326_vm5, %v2230_v18, 0.0  ;;  %v4314_v54 = vmul.f32 %v7037_v19, %v4281_v51  ;;  %4511 = vmatpush.bf16.msrb.mxu1 %v5358_v7  ;;  %v7968_v7 = vld [vmem:[#allocation4_spill] sm:$0xff] }
 0x1c2   : > { %v3000_v62 = vadd.f32 %v2968_v24, %v2679_v9  ;;  %v1719_v63 = vmul.f32 %v7953_v36, %v1686_v34  ;;  %v3385_v48 = vadd.f32 %v3353_v53, %v3064_v13  ;;  %v753_v38 = vmin.f32 %v721_v10, 6.0  ;;  %v5357_v13 = vld [vmem:[%s7652_s5 + $0x18] sm:$0xff]  ;;  %v7967_v34 = vld [vmem:[#allocation31_spill] sm:$0xff] }
 0x1c3   : > { %v7237_v49 = vadd.f32 %v7199_v8, %v4345_v3  ;;  %v2649_v4 = vmul.f32 %v7956_v35, %v2616_v5  ;;  %v3001_v59 = vadd.f32 %v2969_v44, %v2680_v45  ;;  %v4346_v46 = vadd.f32 %v4314_v54, %v4025_v47  ;;  %v5356_v54 = vld [vmem:[%s7652_s5 + $0x10] sm:$0xff] }
 0x1c4   : > { %v3033_v50 = vmul.f32 %v7954_v25, %v7154_v26  ;;  %v3354_v9 = vmul.f32 %v5703_v57, %v3321_v40  ;;  %v3706_v17 = vadd.f32 %v3674_v1, %v3385_v48  ;;  %v785_v18 = vmul.f32 0.16666667, %v753_v38 }
 0x1c5   : > { %v2167_v24 = vadd.f32 %v2135_v21, %v1718_v23  ;;  %v4412_v53 = vadd.f32 %v4411_v39, %v7237_v49  ;;  %v2136_v3 = vmul.f32 %v5558_v56, %v7161_v16  ;;  %v3034_v47 = vmul.f32 %v7954_v25, %v7161_v16  ;;  %4512 = vmatpush.bf16.msrb.mxu1 %v5357_v13 }
 0x1c6   : > { %v7253_v26 = vmul.f32 %v5706_v30, %v7967_v34  ;;  %v3065_v44 = vadd.f32 %v3033_v50, %v3000_v62  ;;  %v3994_v38 = vmul.f32 %v5693_v32, %v7161_v16  ;;  %v817_v5 = vmul.f32 %v785_v18, %v7177_v37  ;;  %v7973_v18 = vld [vmem:[#allocation34_spill] sm:$0xff] }
 0x1c7   : > { %v2168_v1 = vadd.f32 %v2136_v3, %v1719_v63  ;;  %v3066_v21 = vadd.f32 %v3034_v47, %v3001_v59  ;;  %v7259_v23 = vadd.f32 %v7199_v8, %v4346_v46  ;;  %v2681_v39 = vadd.f32 %v2649_v4, %v2167_v24 }
 0x1c8   : > { %v4026_v51 = vadd.f32 %v3994_v38, %v3706_v17  ;;  %v1268_v10 = vrot.slane %v817_v5, 7  ;;  %v2199_v45 = vrot.slane %v817_v5, 1  ;;  %v3386_v40 = vadd.f32 %v3354_v9, %v3065_v44  ;;  %v5355_v38 = vld [vmem:[%s7652_s5 + $0x8] sm:$0xff] }
 0x1c9   : > { %v2137_v62 = vmul.f32 %v5558_v56, %v817_v5  ;;  %v3035_v48 = vmul.f32 %v7954_v25, %v817_v5  ;;  %v3995_v37 = vmul.f32 %v5693_v32, %v817_v5  ;;  %v7268_v63 = vadd.f32 %v4412_v53, %v7259_v23  ;;  %v7975_v53 = vld [vmem:[#allocation36_spill] sm:$0xff]  ;;  %4513 = vmatpush.bf16.msrb.mxu1 %v5356_v54 }
 0x1ca   : > { %v7969_v4 = vrot.slane %v7968_v7, 7  ;;  %v7970_v46 = vrot.slane %v7161_v16, 7  ;;  %v7971_v9 = vrot.slane %v7968_v7, 1  ;;  %v7972_v25 = vrot.slane %v7161_v16, 1 }
 0x1cb   : > { %vm7974_vm7 = vcmp.ge.s32.totalorder %v7973_v18, 0  ;;  %vm7976_vm10 = vcmp.lt.s32.totalorder %v7975_v53, 16 }
 0x1cc   : > { %v1297_v59 = vsel %vm1283_vm0, %v1268_v10, %v7969_v4  ;;  %v1298_v50 = vsel %vm1283_vm0, %v7970_v46, %v1268_v10  ;;  %v2228_v56 = vsel %vm2214_vm1, %v2199_v45, %v7971_v9  ;;  %v2229_v17 = vsel %vm2214_vm1, %v7972_v25, %v2199_v45  ;;  %vm7977_vm0 = vmmov %vm7966_vm6 }
 0x1cd   : > { %v1688_v13 = vsel %vm7974_vm7, %v1297_v59, 0.0  ;;  %v1720_v24 = vmul.f32 %v7953_v36, %v1298_v50  ;;  %v2618_v3 = vsel %vm7976_vm10, %v2228_v56, 0.0  ;;  %v2650_v47 = vmul.f32 %v7956_v35, %v2229_v17  ;;  %4514 = vmatpush.bf16.msrb.mxu1 %v5355_v38  ;;  %v7984_v38 = vld [vmem:[#allocation46_spill] sm:$0xff]  ;;  %vm7989_vm1 = vmmov %vm7976_vm10 }
 0x1ce   : > { %v1721_v34 = vmul.f32 %v7953_v36, %v1688_v13  ;;  %v2651_v44 = vmul.f32 %v7956_v35, %v2618_v3  ;;  %v2938_v16 = vsel %vm1366_vm2, %v1297_v59, 0.0  ;;  %v2970_v43 = vmul.f32 %v5696_v33, %v1298_v50  ;;  %v7978_v36 = vld [vmem:[#allocation40_spill] sm:$0xff]  ;;  %v7981_v3 = vld [vmem:[#allocation41_spill] sm:$0xff] }
 0x1cf   : > { %v2169_v5 = vadd.f32 %v2137_v62, %v1720_v24  ;;  %v2682_v10 = vadd.f32 %v2650_v47, %v2168_v1  ;;  %v2971_v45 = vmul.f32 %v5696_v33, %v2938_v16  ;;  %v3323_v7 = vsel %vm7977_vm0, %v2228_v56, 0.0  ;;  %v7979_v1 = vld [vmem:[#allocation10_spill] sm:$0xff]  ;;  %v7980_v24 = vld [vmem:[#allocation9_spill] sm:$0xff] }
 0x1d0   : > { %v2170_v4 = vadd.f32 %v7978_v36, %v1721_v34  ;;  %v3002_v35 = vadd.f32 %v2970_v43, %v2681_v39  ;;  %v3355_v31 = vmul.f32 %v5703_v57, %v2229_v17  ;;  %v3356_v46 = vmul.f32 %v5703_v57, %v3323_v7  ;;  %v5354_v39 = vld [vmem:[%s7652_s5] sm:$0xff]  ;;  %v7985_v7 = vld [vmem:[#allocation12_spill] sm:$0xff] }
 0x1d1   : > { %v2683_v9 = vadd.f32 %v2651_v44, %v2169_v5  ;;  %v3003_v54 = vadd.f32 %v2971_v45, %v2682_v10  ;;  %v3643_v25 = vsel %vm1364_vm12, %v1297_v59, 0.0  ;;  %v3675_v62 = vmul.f32 %v5706_v30, %v1298_v50  ;;  %v7982_v59 = vld [vmem:[#allocation17_spill] sm:$0xff]  ;;  %v7983_v16 = vld [vmem:[#allocation6_spill] sm:$0xff]  ;;  %4515 = vmatpush.bf16.msrb.mxu1 %v5354_v39 }
 0x1d2   : > { %v2684_v18 = vadd.f32 %v7979_v1, %v2170_v4  ;;  %v3067_v33 = vadd.f32 %v3035_v48, %v3002_v35  ;;  %v3387_v13 = vadd.f32 %v3355_v31, %v3066_v21  ;;  %v3676_v22 = vmul.f32 %v5706_v30, %v3643_v25  ;;  %v7986_v4 = vld [vmem:[#allocation47_spill] sm:$0xff]  ;;  %v7987_v35 = vld [vmem:[#allocation42_spill] sm:$0xff]  ;;  %v7988_v31 = vld [vmem:[#allocation32_spill] sm:$0xff] }
 0x1d3   : > { %v3004_v57 = vadd.f32 %v7980_v24, %v2683_v9  ;;  %v3068_v47 = vadd.f32 %v7981_v3, %v3003_v54  ;;  %v3707_v34 = vadd.f32 %v3675_v62, %v3386_v40  ;;  %v4283_v41 = vsel %vm2326_vm5, %v2228_v56, 0.0  ;;  %v7991_v54 = vld [vmem:[#allocation52_spill] sm:$0xff] }
 0x1d4   : > { %v3005_v50 = vadd.f32 %v7982_v59, %v2684_v18  ;;  %v3388_v44 = vadd.f32 %v3356_v46, %v3067_v33  ;;  %v3708_v48 = vadd.f32 %v3676_v22, %v3387_v13  ;;  %v4315_v21 = vmul.f32 %v7037_v19, %v2229_v17  ;;  %v7990_v17 = vld [vmem:[#allocation53_spill] sm:$0xff]  ;;  %v7993_v18 = vld [vmem:[#allocation7_spill] sm:$0xff]  ;;  %v7994_v13 = vld [vmem:[#allocation48_spill] sm:$0xff] }
 0x1d5   : > { %v3069_v43 = vadd.f32 %v7983_v16, %v3004_v57  ;;  %v3389_v5 = vadd.f32 %v7984_v38, %v3068_v47  ;;  %v4027_v10 = vadd.f32 %v3995_v37, %v3707_v34  ;;  %v4316_v45 = vmul.f32 %v7037_v19, %v4283_v41  ;;  %v7992_v37 = vld [vmem:[#allocation57_spill] sm:$0xff]  ;;  %v7997_v3 = vld [vmem:[#allocation24_spill] sm:$0xff] }
 0x1d6   : > { %v3070_v36 = vadd.f32 %v7985_v7, %v3005_v50  ;;  %v3709_v40 = vadd.f32 %v7986_v4, %v3388_v44  ;;  %v4028_v14 = vadd.f32 %v7987_v35, %v3708_v48  ;;  %v4347_v56 = vadd.f32 %v4315_v21, %v4026_v51  ;;  %v7995_v51 = vld [vmem:[#allocation26_spill] sm:$0xff]  ;;  %v7996_v57 = vld [vmem:[#allocation29_spill] sm:$0xff]  ;;  %v7998_v34 = vld [vmem:[#allocation16_spill] sm:$0xff] }
 0x1d7   : > { %v4287_v46 = vsel %vm7989_vm1, %v7988_v31, 0.0  ;;  %v3390_v9 = vadd.f32 %v7990_v17, %v3069_v43  ;;  %v3710_v25 = vadd.f32 %v7991_v54, %v3389_v5  ;;  %v4348_v62 = vadd.f32 %v4316_v45, %v4027_v10  ;;  %v7999_v50 = vld [vmem:[#allocation54_spill] sm:$0xff]  ;;  %v8000_v43 = vld [vmem:[#allocation21_spill] sm:$0xff]  ;;  %v8001_v10 = vld [vmem:[#allocation43_spill] sm:$0xff] }
 0x1d8   : > { %v3391_v1 = vadd.f32 %v7992_v37, %v3070_v36  ;;  %v4029_v33 = vadd.f32 %v7993_v18, %v3709_v40  ;;  %v4349_v22 = vadd.f32 %v7994_v13, %v4028_v14  ;;  %v7335_v24 = vadd.f32 %v7199_v8, %v4347_v56  ;;  %v8002_v54 = vld [vmem:[#allocation44_spill] sm:$0xff]  ;;  %v8003_v37 = vld [vmem:[#allocation51_spill] sm:$0xff] }
 0x1d9   : > { %v4319_v39 = vmul.f32 %v7037_v19, %v7995_v51  ;;  %v4000_v53 = vmul.f32 %v5693_v32, %v7996_v57  ;;  %v3711_v47 = vadd.f32 %v7997_v3, %v3390_v9  ;;  %v4030_v41 = vadd.f32 %v7998_v34, %v3710_v25  ;;  %v8006_v34 = vld [vmem:[#allocation69_spill] sm:$0xff] }
 0x1da   : > { %v3712_v59 = vadd.f32 %v7253_v26, %v3391_v1  ;;  %v4350_v44 = vadd.f32 %v7999_v50, %v4029_v33  ;;  %v7346_v48 = vadd.f32 %v7199_v8, %v4348_v62  ;;  %v4414_v21 = vadd.f32 %v7268_v63, %v7335_v24  ;;  %v8004_v33 = vld [vmem:[#allocation60_spill] sm:$0xff] }
 0x1db   : > { %v4320_v16 = vmul.f32 %v7037_v19, %v4287_v46  ;;  %v4031_v38 = vadd.f32 %v8000_v43, %v3711_v47  ;;  %v4351_v5 = vadd.f32 %v4319_v39, %v4030_v41  ;;  %v4321_v45 = vmul.f32 %v7037_v19, %v8001_v10  ;;  %v8005_v39 = vld [vmem:[#allocation62_spill] sm:$0xff] }
 0x1dc   : > { %v4032_v7 = vadd.f32 %v4000_v53, %v3712_v59  ;;  %v7355_v36 = vadd.f32 %v7199_v8, %v4349_v22  ;;  %v4415_v26 = vadd.f32 %v4414_v21, %v7346_v48  ;;  %v7359_v40 = vadd.f32 %v7199_v8, %v4350_v44  ;;  %v8007_v21 = vld [vmem:[#allocation71_spill] sm:$0xff] }
 0x1dd   : > { %v4352_v4 = vadd.f32 %v4320_v16, %v4031_v38  ;;  %v7363_v14 = vadd.f32 %v7199_v8, %v4351_v5  ;;  %v7376_v25 = vadd.f32 %v7199_v8, %v8002_v54  ;;  %v7381_v1 = vadd.f32 %v7199_v8, %v8003_v37  ;;  %v5368_v16 = vld [vmem:[%s7654_s7 + $0x30] sm:$0xff]  ;;  %v8008_v38 = vld [vmem:[#allocation67_spill] sm:$0xff]  ;;  %v5365_v54 = vld [vmem:[%s7654_s7 + $0x18] sm:$0xff] }
 0x1de   : > { %v4416_v63 = vadd.f32 %v4415_v26, %v7355_v36  ;;  %v4353_v35 = vadd.f32 %v4321_v45, %v4032_v7  ;;  %v7386_v13 = vadd.f32 %v7199_v8, %v8004_v33  ;;  %v3691_v22 = vmul.f32 0.0, %v5706_v30  ;;  %v5369_v30 = vld [vmem:[%s7654_s7 + $0x38] sm:$0xff]  ;;  %v5367_v7 = vld [vmem:[%s7654_s7 + $0x28] sm:$0xff] }
 0x1df   : > { %v7367_v31 = vadd.f32 %v7199_v8, %v4352_v4  ;;  %v7392_v57 = vadd.f32 %v7199_v8, %v8005_v39  ;;  %v4010_v53 = vmul.f32 0.0, %v5693_v32  ;;  %v7399_v41 = vadd.f32 %v7199_v8, %v8006_v34  ;;  %4591 = vmatpush.bf16.msra.mxu2 %v5369_v30  ;;  %v5377_v34 = vld [vmem:[%s7656_s9 + $0x38] sm:$0xff] }
 0x1e0   : > { %v4417_v56 = vadd.f32 %v4416_v63, %v7359_v40  ;;  %v7372_v9 = vadd.f32 %v7199_v8, %v4353_v35  ;;  %v3723_v47 = vadd.f32 %v3691_v22, %v7019_v29  ;;  %v4331_v44 = vmul.f32 0.0, %v7037_v19  ;;  %5386 = vmatpush.bf16.msra.mxu3 %v5377_v34 }
 0x1e1   : > { %v4042_v50 = vadd.f32 %v4010_v53, %v7031_v20  ;;  %v7409_v32 = vadd.f32 %v7199_v8, %v8007_v21  ;;  %v7417_v5 = vadd.f32 %v7199_v8, %v8008_v38  ;;  %v7422_v19 = vadd.f32 %v7199_v8, %v7054_v15  ;;  %v5374_v38 = vld [vmem:[%s7656_s9 + $0x20] sm:$0xff] }
 0x1e2   : > { %v4418_v46 = vadd.f32 %v4417_v56, %v7363_v14  ;;  %v4043_v43 = vadd.f32 %v4010_v53, %v3723_v47  ;;  %v7430_v26 = vadd.f32 %v7199_v8, %v7070_v2  ;;  %v5366_v56 = vld [vmem:[%s7654_s7 + $0x20] sm:$0xff] }
 0x1e3   : > { %v4363_v10 = vadd.f32 %v4331_v44, %v4042_v50  ;;  %4592 = vmatpush.bf16.msra.mxu2 %v5368_v16  ;;  %v5362_v47 = vld [vmem:[%s7654_s7] sm:$0xff]  ;;  %v5376_v16 = vld [vmem:[%s7656_s9 + $0x30] sm:$0xff] }
 0x1e4   : > { %v4419_v17 = vadd.f32 %v4418_v46, %v7367_v31  ;;  %v4364_v4 = vadd.f32 %v4331_v44, %v4043_v43  ;;  %5387 = vmatpush.bf16.msra.mxu3 %v5376_v16  ;;  %v5375_v43 = vld [vmem:[%s7656_s9 + $0x28] sm:$0xff] }
 0x1e5   : > { %v7434_v35 = vadd.f32 %v7199_v8, %v4363_v10  ;;  %v5372_v10 = vld [vmem:[%s7656_s9 + $0x10] sm:$0xff] }
 0x1e6   : > { %v4420_v62 = vadd.f32 %v4419_v17, %v7372_v9  ;;  %v7441_v46 = vadd.f32 %v7199_v8, %v4364_v4 }
 0x1e7   : > { %4593 = vmatpush.bf16.msra.mxu2 %v5367_v7  ;;  %v5371_v7 = vld [vmem:[%s7656_s9 + $0x8] sm:$0xff] }
 0x1e8   : > { %v4421_v18 = vadd.f32 %v4420_v62, %v7376_v25  ;;  %5388 = vmatpush.bf16.msra.mxu3 %v5375_v43 }
 0x1ea   : > { %v4422_v51 = vadd.f32 %v4421_v18, %v7381_v1  ;;  %v5364_v18 = vld [vmem:[%s7654_s7 + $0x10] sm:$0xff] }
 0x1eb   : > { %4594 = vmatpush.bf16.msra.mxu2 %v5366_v56 }
 0x1ec   : > { %v4423_v3 = vadd.f32 %v4422_v51, %v7386_v13  ;;  %5389 = vmatpush.bf16.msra.mxu3 %v5374_v38 }
 0x1ee   : > { %v4424_v59 = vadd.f32 %v4423_v3, %v7392_v57  ;;  %v5363_v3 = vld [vmem:[%s7654_s7 + $0x8] sm:$0xff] }
 0x1ef   : > { %4595 = vmatpush.bf16.msra.mxu2 %v5365_v54 }
 0x1f0   : > { %v4425_v29 = vadd.f32 %v4424_v59, %v7399_v41  ;;  %v5405_v59 = vld [vmem:[%s7653_s6] ss:$0 sm:$0xff] }
 0x1f2   : > { %v4426_v20 = vadd.f32 %v4425_v29, %v7409_v32 }
 0x1f3   : > { %4596 = vmatpush.bf16.msra.mxu2 %v5364_v18 }
 0x1f4   : > { %v4427_v45 = vadd.f32 %v4426_v20, %v7417_v5  ;;  %v5373_v20 = vld [vmem:[%s7656_s9 + $0x18] sm:$0xff] }
 0x1f5   : > { %5390 = vmatpush.bf16.msra.mxu3 %v5373_v20 }
 0x1f6   : > { %v4428_v63 = vadd.f32 %v4427_v45, %v7422_v19  ;;  %v5406_v45 = vld [vmem:[%s7655_s8] ss:$0 sm:$0xff] }
 0x1f7   : > { %4597 = vmatpush.bf16.msra.mxu2 %v5363_v3 }
 0x1f8   : > { %v4429_v15 = vadd.f32 %v4428_v63, %v7430_v26 }
 0x1f9   : > { %5391 = vmatpush.bf16.msra.mxu3 %v5372_v10 }
 0x1fa   : > { %v4430_v17 = vadd.f32 %v4429_v15, %v7434_v35  ;;  %v5370_v15 = vld [vmem:[%s7656_s9] sm:$0xff] }
 0x1fb   : > { %4598 = vmatpush.bf16.msra.mxu2 %v5362_v47 }
 0x1fc   : > { %v4431_v2 = vadd.f32 %v4430_v17, %v7441_v46 }
 0x1fd   : > { %5392 = vmatpush.bf16.msra.mxu3 %v5371_v7 }
 0x1fe   : > { %v4432_v62 = vrot.slane %v4431_v2, 4 }
 0x1ff   : > { %4885 = vmatpush.bf16.msrb.mxu2 %v5377_v34 }
 0x200   : > { %v4433_v37 = vadd.f32 %v4432_v62, %v4431_v2 }
 0x201   : > { %5393 = vmatpush.bf16.msra.mxu3 %v5370_v15 }
 0x202   : > { %v4434_v33 = vrot.slane %v4433_v37, 2 }
 0x203   : > { %4886 = vmatpush.bf16.msrb.mxu2 %v5376_v16 }
 0x204   : > { %v4435_v22 = vadd.f32 %v4434_v33, %v4433_v37 }
 0x206   : > { %v4436_v8 = vrot.slane %v4435_v22, 1 }
 0x207   : > { %4887 = vmatpush.bf16.msrb.mxu2 %v5375_v43 }
 0x208   : > { %v4437_v51 = vadd.f32 %v4436_v8, %v4435_v22 }
 0x20a   : > { %v4438_v39 = vmul.f32 0.00390625, %v4437_v51 }
 0x20b   : > { %4888 = vmatpush.bf16.msrb.mxu2 %v5374_v38 }
 0x20c   : > { %v4439_v53 = vpack.c.bf16 %v4438_v39, %v4438_v39 }
 0x20e   : > { %4516 = vmatmul.bf16.vlgmr.msrb.gmra.mxu1 %v4439_v53 }
 0x20f   : > { %4889 = vmatpush.bf16.msrb.mxu2 %v5373_v20 }
 0x213   : > { %4890 = vmatpush.bf16.msrb.mxu2 %v5372_v10 }
 0x217   : > { %4891 = vmatpush.bf16.msrb.mxu2 %v5371_v7 }
 0x21b   : > { %4892 = vmatpush.bf16.msrb.mxu2 %v5370_v15 }
 0x28b   : > { %v4517_v30 = vpop.f32.mrf.mxu1 }
 0x28c   : > { %v4518_v50 = vadd.f32 %v5405_v59, %v4517_v30 }
 0x28e   : > { %v4521_v44 = vmax.f32 %v4518_v50, 0.0 }
 0x290   : > { %v4522_v21 = vpack.c.bf16 %v4521_v44, %v4521_v44 }
 0x292   : > { %4599 = vmatmul.bf16.vlgmr.msra.gmra.mxu2 %v4522_v21 }
 0x293   : > { %v4519_v29 = vpop.f32.mrf.mxu1 }
 0x315   : > { %v4600_v4 = vpop.f32.mrf.mxu2 }
 0x316   : > { %v4601_v63 = vadd.f32 %v5406_v45, %v4600_v4 }
 0x318   : > { %v4604_v56 = vadd.f32 3.0, %v4601_v63 }
 0x31a   : > { %v4605_v17 = vmax.f32 %v4604_v56, 0.0 }
 0x31c   : > { %v4606_v2 = vmin.f32 %v4605_v17, 6.0 }
 0x31d   : > { %v4602_v54 = vpop.f32.mrf.mxu2 }
 0x31e   : > { %v4607_v62 = vmul.f32 0.16666667, %v4606_v2 }
 0x320   : > { %v7487_v37 = vperm.slane %v4607_v62, 0 }
 0x322   : > { %v4609_v18 = vmul.f32 %v7487_v37, %v7073_v61  ;;  %v4610_v33 = vmul.f32 %v7487_v37, %v7067_v60  ;;  %v4623_v22 = vmul.f32 %v7487_v37, %v7335_v24  ;;  %v4624_v8 = vmul.f32 %v7487_v37, %v7346_v48 }
 0x323   : > { %v4611_v47 = vmul.f32 %v7487_v37, %v7076_v27  ;;  %v4612_v34 = vmul.f32 %v7487_v37, %v7951_v6  ;;  %v4625_v24 = vmul.f32 %v7487_v37, %v7355_v36  ;;  %v4626_v48 = vmul.f32 %v7487_v37, %v7359_v40 }
 0x324   : > { %v4641_v51 = vadd.f32 3.0, %v4609_v18  ;;  %v4642_v39 = vadd.f32 3.0, %v4610_v33  ;;  %v4655_v53 = vadd.f32 3.0, %v4623_v22  ;;  %v4656_v3 = vadd.f32 3.0, %v4624_v8 }
 0x325   : > { %v4643_v16 = vadd.f32 3.0, %v4611_v47  ;;  %v4644_v43 = vadd.f32 3.0, %v4612_v34  ;;  %v4657_v10 = vadd.f32 3.0, %v4625_v24  ;;  %v4658_v45 = vadd.f32 3.0, %v4626_v48 }
 0x326   : > { %v4673_v61 = vmax.f32 %v4641_v51, 0.0  ;;  %v4674_v59 = vmax.f32 %v4642_v39, 0.0  ;;  %v4687_v30 = vmax.f32 %v4655_v53, 0.0  ;;  %v4688_v60 = vmax.f32 %v4656_v3, 0.0 }
 0x327   : > { %v4675_v56 = vmax.f32 %v4643_v16, 0.0  ;;  %v4676_v17 = vmax.f32 %v4644_v43, 0.0  ;;  %v4689_v2 = vmax.f32 %v4657_v10, 0.0  ;;  %v4690_v54 = vmax.f32 %v4658_v45, 0.0 }
 0x328   : > { %v4705_v50 = vmin.f32 %v4673_v61, 6.0  ;;  %v4706_v44 = vmin.f32 %v4674_v59, 6.0  ;;  %v4719_v21 = vmin.f32 %v4687_v30, 6.0  ;;  %v4720_v29 = vmin.f32 %v4688_v60, 6.0 }
 0x329   : > { %v4707_v62 = vmin.f32 %v4675_v56, 6.0  ;;  %v4708_v51 = vmin.f32 %v4676_v17, 6.0  ;;  %v4721_v39 = vmin.f32 %v4689_v2, 6.0  ;;  %v4722_v53 = vmin.f32 %v4690_v54, 6.0 }
 0x32a   : > { %v4737_v27 = vmul.f32 0.16666667, %v4705_v50  ;;  %v4738_v38 = vmul.f32 0.16666667, %v4706_v44  ;;  %v4751_v20 = vmul.f32 0.16666667, %v4719_v21  ;;  %v4627_v59 = vmul.f32 %v7487_v37, %v7363_v14 }
 0x32b   : > { %v4752_v6 = vmul.f32 0.16666667, %v4720_v29  ;;  %v4739_v3 = vmul.f32 0.16666667, %v4707_v62  ;;  %v4740_v61 = vmul.f32 0.16666667, %v4708_v51  ;;  %v4628_v30 = vmul.f32 %v7487_v37, %v7367_v31 }
 0x32c   : > { %v4769_v7 = vmul.f32 %v4737_v27, %v4609_v18  ;;  %v4770_v4 = vmul.f32 %v4738_v38, %v4610_v33  ;;  %v4783_v63 = vmul.f32 %v4751_v20, %v4623_v22  ;;  %v4613_v18 = vmul.f32 %v7487_v37, %v7952_v55 }
 0x32d   : > { %v4784_v15 = vmul.f32 %v4752_v6, %v4624_v8  ;;  %v4614_v33 = vmul.f32 %v7487_v37, %v7955_v12  ;;  %v4753_v22 = vmul.f32 0.16666667, %v4721_v39  ;;  %v4754_v8 = vmul.f32 0.16666667, %v4722_v53 }
 0x32e   : > { %v4801_v36 = vpack.c.bf16 %v4770_v4, %v4769_v7  ;;  %v4771_v60 = vmul.f32 %v4739_v3, %v4611_v47  ;;  %v4772_v50 = vmul.f32 %v4740_v61, %v4612_v34  ;;  %v4645_v44 = vadd.f32 3.0, %v4613_v18 }
 0x32f   : > { %v4808_v40 = vpack.c.bf16 %v4784_v15, %v4783_v63  ;;  %v4646_v21 = vadd.f32 3.0, %v4614_v33  ;;  %v4785_v29 = vmul.f32 %v4753_v22, %v4625_v24  ;;  %v4786_v16 = vmul.f32 %v4754_v8, %v4626_v48 }
 0x330   : > { %4893 = vmatmul.bf16.vlgmr.msrb.gmra.mxu2 %v4801_v36  ;;  %v4659_v43 = vadd.f32 3.0, %v4627_v59  ;;  %v4660_v27 = vadd.f32 3.0, %v4628_v30  ;;  %v4802_v55 = vpack.c.bf16 %v4772_v50, %v4771_v60  ;;  %v4677_v38 = vmax.f32 %v4645_v44, 0.0 }
 0x331   : > { %4928 = vmatmul.bf16.vlgmr.msra.gmra.mxu3 %v4808_v40  ;;  %v4678_v20 = vmax.f32 %v4646_v21, 0.0  ;;  %v4809_v12 = vpack.c.bf16 %v4786_v16, %v4785_v29  ;;  %v4615_v24 = vmul.f32 %v7487_v37, %v7957_v42  ;;  %v4616_v48 = vmul.f32 %v7487_v37, %v7961_v11 }
 0x332   : > { %v4691_v6 = vmax.f32 %v4659_v43, 0.0  ;;  %v4692_v10 = vmax.f32 %v4660_v27, 0.0  ;;  %v4709_v14 = vmin.f32 %v4677_v38, 6.0  ;;  %v4629_v15 = vmul.f32 %v7487_v37, %v7372_v9 }
 0x333   : > { %v4710_v45 = vmin.f32 %v4678_v20, 6.0  ;;  %v4630_v36 = vmul.f32 %v7487_v37, %v7376_v25  ;;  %v4647_v40 = vadd.f32 3.0, %v4615_v24  ;;  %v4648_v2 = vadd.f32 3.0, %v4616_v48 }
 0x334   : > { %v4723_v7 = vmin.f32 %v4691_v6, 6.0  ;;  %v4724_v31 = vmin.f32 %v4692_v10, 6.0  ;;  %v4741_v47 = vmul.f32 0.16666667, %v4709_v14  ;;  %v4661_v51 = vadd.f32 3.0, %v4629_v15 }
 0x335   : > { %v4742_v34 = vmul.f32 0.16666667, %v4710_v45  ;;  %v4662_v39 = vadd.f32 3.0, %v4630_v36  ;;  %v4679_v53 = vmax.f32 %v4647_v40, 0.0  ;;  %v4680_v3 = vmax.f32 %v4648_v2, 0.0 }
 0x336   : > { %v4755_v4 = vmul.f32 0.16666667, %v4723_v7  ;;  %v4756_v63 = vmul.f32 0.16666667, %v4724_v31  ;;  %v4773_v56 = vmul.f32 %v4741_v47, %v4613_v18  ;;  %v4693_v61 = vmax.f32 %v4661_v51, 0.0 }
 0x337   : > { %v4774_v17 = vmul.f32 %v4742_v34, %v4614_v33  ;;  %v4694_v22 = vmax.f32 %v4662_v39, 0.0  ;;  %v4711_v9 = vmin.f32 %v4679_v53, 6.0  ;;  %v4712_v8 = vmin.f32 %v4680_v3, 6.0 }
 0x338   : > { %v4787_v54 = vmul.f32 %v4755_v4, %v4627_v59  ;;  %v4788_v62 = vmul.f32 %v4756_v63, %v4628_v30  ;;  %v4725_v60 = vmin.f32 %v4693_v61, 6.0  ;;  %v4617_v59 = vmul.f32 %v7487_v37, %v7963_v0 }
 0x339   : > { %v4803_v42 = vpack.c.bf16 %v4774_v17, %v4773_v56  ;;  %v4726_v25 = vmin.f32 %v4694_v22, 6.0  ;;  %v4743_v18 = vmul.f32 0.16666667, %v4711_v9  ;;  %v4744_v33 = vmul.f32 0.16666667, %v4712_v8 }
 0x33a   : > { %v4810_v11 = vpack.c.bf16 %v4788_v62, %v4787_v54  ;;  %v4618_v30 = vmul.f32 %v7487_v37, %v7106_v52  ;;  %v4757_v50 = vmul.f32 0.16666667, %v4725_v60  ;;  %v4631_v21 = vmul.f32 %v7487_v37, %v7381_v1 }
 0x33b   : > { %v4758_v44 = vmul.f32 0.16666667, %v4726_v25  ;;  %v4632_v29 = vmul.f32 %v7487_v37, %v7386_v13  ;;  %v4775_v16 = vmul.f32 %v4743_v18, %v4615_v24  ;;  %v4776_v43 = vmul.f32 %v4744_v33, %v4616_v48 }
 0x33c   : > { %v4649_v27 = vadd.f32 3.0, %v4617_v59  ;;  %v4789_v38 = vmul.f32 %v4757_v50, %v4629_v15  ;;  %v4619_v48 = vmul.f32 %v7487_v37, %v7157_v28  ;;  %v4620_v4 = vmul.f32 %v7487_v37, %v7202_v58 }
 0x33d   : > { %v4790_v20 = vmul.f32 %v4758_v44, %v4630_v36  ;;  %v4664_v6 = vadd.f32 3.0, %v4632_v29  ;;  %v4804_v0 = vpack.c.bf16 %v4776_v43, %v4775_v16  ;;  %v4633_v36 = vmul.f32 %v7487_v37, %v7392_v57 }
 0x33e   : > { %v4681_v10 = vmax.f32 %v4649_v27, 0.0  ;;  %v4634_v56 = vmul.f32 %v7487_v37, %v7399_v41  ;;  %v4651_v2 = vadd.f32 3.0, %v4619_v48  ;;  %v4652_v54 = vadd.f32 3.0, %v4620_v4 }
 0x33f   : > { %v4811_v52 = vpack.c.bf16 %v4790_v20, %v4789_v38  ;;  %v4696_v7 = vmax.f32 %v4664_v6, 0.0  ;;  %v4665_v39 = vadd.f32 3.0, %v4633_v36  ;;  %v4621_v25 = vmul.f32 %v7487_v37, %v7237_v49 }
 0x340   : > { %4898 = vmatmul.bf16.gmra.mxu2 %v4802_v55  ;;  %v4650_v55 = vadd.f32 3.0, %v4618_v30  ;;  %v4713_v1 = vmin.f32 %v4681_v10, 6.0  ;;  %v4683_v53 = vmax.f32 %v4651_v2, 0.0  ;;  %v4684_v3 = vmax.f32 %v4652_v54, 0.0 }
 0x341   : > { %4933 = vmatmul.bf16.gmra.mxu3 %v4809_v12  ;;  %v4663_v12 = vadd.f32 3.0, %v4631_v21  ;;  %v4728_v13 = vmin.f32 %v4696_v7, 6.0  ;;  %v4622_v18 = vmul.f32 %v7487_v37, %v7259_v23  ;;  %v4636_v50 = vmul.f32 %v7487_v37, %v7417_v5 }
 0x342   : > { %v4682_v14 = vmax.f32 %v4650_v55, 0.0  ;;  %v4745_v34 = vmul.f32 0.16666667, %v4713_v1  ;;  %v4715_v57 = vmin.f32 %v4683_v53, 6.0  ;;  %v4716_v22 = vmin.f32 %v4684_v3, 6.0 }
 0x343   : > { %v4695_v45 = vmax.f32 %v4663_v12, 0.0  ;;  %v4760_v15 = vmul.f32 0.16666667, %v4728_v13  ;;  %v4654_v16 = vadd.f32 3.0, %v4622_v18  ;;  %v4668_v38 = vadd.f32 3.0, %v4636_v50 }
 0x344   : > { %v4714_v31 = vmin.f32 %v4682_v14, 6.0  ;;  %v4777_v17 = vmul.f32 %v4745_v34, %v4617_v59  ;;  %v4747_v8 = vmul.f32 0.16666667, %v4715_v57  ;;  %v4748_v60 = vmul.f32 0.16666667, %v4716_v22 }
 0x345   : > { %v4727_v47 = vmin.f32 %v4695_v45, 6.0  ;;  %v4792_v51 = vmul.f32 %v4760_v15, %v4632_v29  ;;  %v4653_v29 = vadd.f32 3.0, %v4621_v25  ;;  %v4686_v12 = vmax.f32 %v4654_v16, 0.0 }
 0x346   : > { %v4746_v24 = vmul.f32 0.16666667, %v4714_v31  ;;  %v4779_v44 = vmul.f32 %v4747_v8, %v4619_v48  ;;  %v4637_v31 = vmul.f32 %v7487_v37, %v7422_v19  ;;  %v4639_v19 = vmul.f32 %v7487_v37, %v7434_v35  ;;  %v387_v8 = vld [vmem:[%s5518_s21] sm:$0xff]  }
 0x347   : > { %v4759_v63 = vmul.f32 0.16666667, %v4727_v47  ;;  %v4685_v20 = vmax.f32 %v4653_v29, 0.0  ;;  %v4718_v10 = vmin.f32 %v4686_v12, 6.0  ;;  %v4638_v47 = vmul.f32 %v7487_v37, %v7430_v26  ;;  %v403_v12 = vld [vmem:[%s5518_s21 + $0x40] sm:$0xff]  }
 0x348   : > { %v4778_v40 = vmul.f32 %v4746_v24, %v4618_v30  ;;  %v4635_v30 = vmul.f32 %v7487_v37, %v7409_v32  ;;  %v4640_v26 = vmul.f32 %v7487_v37, %v7441_v46  ;;  %v7557_v46 = vld [vmem:[%s7657_s10] ss:$0 sm:$0xff]  ;;  %v401_v37 = vld [vmem:[%s5518_s21 + $0x38] sm:$0xff]  }
 0x349   : > { %v4791_v62 = vmul.f32 %v4759_v63, %v4631_v21  ;;  %v4780_v21 = vmul.f32 %v4748_v60, %v4620_v4  ;;  %v4717_v32 = vmin.f32 %v4685_v20, 6.0  ;;  %v4750_v45 = vmul.f32 0.16666667, %v4718_v10  ;;  %v389_v20 = vld [vmem:[%s5518_s21 + $0x8] sm:$0xff]  }
 0x34a   : > { %v4805_v28 = vpack.c.bf16 %v4778_v40, %v4777_v17  ;;  %v4667_v55 = vadd.f32 3.0, %v4635_v30  ;;  %v4669_v4 = vadd.f32 3.0, %v4637_v31  ;;  %v4670_v63 = vadd.f32 3.0, %v4638_v47 }
 0x34b   : > { %v4812_v58 = vpack.c.bf16 %v4792_v51, %v4791_v62  ;;  %v4806_v49 = vpack.c.bf16 %v4780_v21, %v4779_v44  ;;  %v4782_v34 = vmul.f32 %v4750_v45, %v4622_v18  ;;  %v4974_v60 = vunpack.c.l.bf16 %v387_v8 }
 0x34c   : > { %v4699_v6 = vmax.f32 %v4667_v55, 0.0  ;;  %v4702_v17 = vmax.f32 %v4670_v63, 0.0  ;;  %v4988_v18 = vunpack.c.l.bf16 %v401_v37  ;;  %v4975_v21 = vunpack.c.h.bf16 %v387_v8 }
 0x34d   : > { %v4989_v16 = vunpack.c.h.bf16 %v401_v37  ;;  %v4977_v45 = vunpack.c.h.bf16 %v389_v20 }
 0x34e   : > { %v4731_v14 = vmin.f32 %v4699_v6, 6.0  ;;  %v4734_v2 = vmin.f32 %v4702_v17, 6.0 }
 0x350   : > { %4903 = vmatmul.bf16.gmra.mxu2 %v4803_v42  ;;  %v4666_v42 = vadd.f32 3.0, %v4634_v56  ;;  %v4763_v7 = vmul.f32 0.16666667, %v4731_v14  ;;  %v4766_v62 = vmul.f32 0.16666667, %v4734_v2 }
 0x351   : > { %4938 = vmatmul.bf16.gmra.mxu3 %v4810_v11  ;;  %v4697_v11 = vmax.f32 %v4665_v39, 0.0 }
 0x352   : > { %v4698_v61 = vmax.f32 %v4666_v42, 0.0  ;;  %v4795_v24 = vmul.f32 %v4763_v7, %v4635_v30  ;;  %v4798_v39 = vmul.f32 %v4766_v62, %v4638_v47  ;;  %v4671_v42 = vadd.f32 3.0, %v4639_v19 }
 0x353   : > { %v4729_v9 = vmin.f32 %v4697_v11, 6.0 }
 0x354   : > { %v4730_v41 = vmin.f32 %v4698_v61, 6.0  ;;  %v4703_v3 = vmax.f32 %v4671_v42, 0.0 }
 0x355   : > { %v4761_v33 = vmul.f32 0.16666667, %v4729_v9 }
 0x356   : > { %v4762_v59 = vmul.f32 0.16666667, %v4730_v41  ;;  %v4735_v11 = vmin.f32 %v4703_v3, 6.0  ;;  %v393_v3 = vld [vmem:[%s5518_s21 + $0x18] sm:$0xff]  }
 0x357   : > { %v4793_v43 = vmul.f32 %v4761_v33, %v4633_v36  ;;  %v4981_v37 = vunpack.c.h.bf16 %v393_v3 }
 0x358   : > { %v4794_v27 = vmul.f32 %v4762_v59, %v4634_v56  ;;  %v4701_v56 = vmax.f32 %v4669_v4, 0.0  ;;  %v4767_v57 = vmul.f32 0.16666667, %v4735_v11  ;;  %v405_v4 = vld [vmem:[%s5518_s21 + $0x48] sm:$0xff]   ;;  %v4980_v11 = vunpack.c.l.bf16 %v393_v3 }
 0x35a   : > { %v4813_v23 = vpack.c.bf16 %v4794_v27, %v4793_v43  ;;  %v4733_v40 = vmin.f32 %v4701_v56, 6.0  ;;  %v4799_v9 = vmul.f32 %v4767_v57, %v4639_v19 }
 0x35c   : > { %v4765_v54 = vmul.f32 0.16666667, %v4733_v40 }
 0x35e   : > { %v4797_v51 = vmul.f32 %v4765_v54, %v4637_v31 }
 0x360   : > { %4908 = vmatmul.bf16.gmra.mxu2 %v4804_v0  ;;  %v4700_v0 = vmax.f32 %v4668_v38, 0.0  ;;  %v4815_v53 = vpack.c.bf16 %v4798_v39, %v4797_v51 }
 0x361   : > { %4943 = vmatmul.bf16.gmra.mxu3 %v4811_v52  ;;  %v4749_v52 = vmul.f32 0.16666667, %v4717_v32 }
 0x362   : > { %v4732_v5 = vmin.f32 %v4700_v0, 6.0  ;;  %v4990_v0 = vunpack.c.l.bf16 %v403_v12 }
 0x363   : > { %v4781_v13 = vmul.f32 %v4749_v52, %v4621_v25 }
 0x364   : > { %v4764_v1 = vmul.f32 0.16666667, %v4732_v5 }
 0x365   : > { %v4807_v15 = vpack.c.bf16 %v4782_v34, %v4781_v13 }
 0x366   : > { %v4796_v48 = vmul.f32 %v4764_v1, %v4636_v50  ;;  %v4991_v1 = vunpack.c.h.bf16 %v403_v12 }
 0x368   : > { %v4814_v36 = vpack.c.bf16 %v4796_v48, %v4795_v24  ;;  %v391_v48 = vld [vmem:[%s5518_s21 + $0x10] sm:$0xff]  }
 0x369   : > { %v4978_v63 = vunpack.c.l.bf16 %v391_v48  ;;  %v4979_v62 = vunpack.c.h.bf16 %v391_v48 }
 0x370   : > { %4913 = vmatmul.bf16.gmra.mxu2 %v4805_v28  ;;  %v4672_v28 = vadd.f32 3.0, %v4640_v26 }
 0x371   : > { %4948 = vmatmul.bf16.gmra.mxu3 %v4812_v58 }
 0x372   : > { %v4704_v58 = vmax.f32 %v4672_v28, 0.0 }
 0x374   : > { %v4736_v61 = vmin.f32 %v4704_v58, 6.0  ;;  %v407_v58 = vld [vmem:[%s5518_s21 + $0x50] sm:$0xff]  }
 0x375   : > { %v4994_v57 = vunpack.c.l.bf16 %v407_v58 }
 0x376   : > { %v4768_v22 = vmul.f32 0.16666667, %v4736_v61 }
 0x378   : > { %v4800_v35 = vmul.f32 %v4768_v22, %v4640_v26  ;;  %v4993_v26 = vunpack.c.h.bf16 %v405_v4 }
 0x37a   : > { %v4816_v41 = vpack.c.bf16 %v4800_v35, %v4799_v9 }
 0x380   : > { %4918 = vmatmul.bf16.gmra.mxu2 %v4806_v49 }
 0x381   : > { %4953 = vmatmul.bf16.gmra.mxu3 %v4813_v23  ;;  %v4976_v23 = vunpack.c.l.bf16 %v389_v20 }
 0x390   : > { %4923 = vmatmul.bf16.gmra.mxu2 %v4807_v15 }
 0x391   : > { %4958 = vmatmul.bf16.gmra.mxu3 %v4814_v36  ;;  %v4992_v36 = vunpack.c.l.bf16 %v405_v4 }
 0x3a1   : > { %4963 = vmatmul.bf16.gmra.mxu3 %v4815_v53 }
 0x3b1   : > { %4968 = vmatmul.bf16.gmra.mxu3 %v4816_v41 }
 0x3b3   : > { %v4894_v25 = vpop.f32.mrf.mxu2 }
 0x3b4   : > { %v4895_v33 = vadd.f32 %v7557_v46, %v4894_v25  ;;  %v4929_v59 = vpop.f32.mrf.mxu3  ;;  %v4995_v25 = vunpack.c.h.bf16 %v407_v58 }
 0x3b5   : > { %v4930_v30 = vadd.f32 %v7557_v46, %v4929_v59 }
 0x3b6   : > { %v5006_v50 = vadd.f32 %v4974_v60, %v4895_v33 }
 0x3b7   : > { %v5020_v44 = vadd.f32 %v4988_v18, %v4930_v30 }
 0x3b8   : > { %5038 = vst [vmem:[%s7565_s12] sm:$0xff] %v5006_v50 }
 0x3b9   : > { %5052 = vst [vmem:[%s7565_s12 + $0x70] sm:$0xff] %v5020_v44  ;;  %v395_v44 = vld [vmem:[%s5518_s21 + $0x20] sm:$0xff]  }
 0x3ba   : > { %v4983_v12 = vunpack.c.h.bf16 %v395_v44 }
 0x3bb   : > { %v4896_v29 = vpop.f32.mrf.mxu2 }
 0x3bc   : > { %v4897_v43 = vadd.f32 %v7557_v46, %v4896_v29  ;;  %v4931_v27 = vpop.f32.mrf.mxu3  ;;  %v4982_v29 = vunpack.c.l.bf16 %v395_v44  ;;  %v417_v44 = vld [vmem:[%s5518_s21 + $0x78] sm:$0xff]  }
 0x3bd   : > { %v4932_v55 = vadd.f32 %v7557_v46, %v4931_v27 }
 0x3be   : > { %v5007_v38 = vadd.f32 %v4975_v21, %v4897_v43  ;;  %v409_v21 = vld [vmem:[%s5518_s21 + $0x58] sm:$0xff]  }
 0x3bf   : > { %v5021_v49 = vadd.f32 %v4989_v16, %v4932_v55  ;;  %v4996_v43 = vunpack.c.l.bf16 %v409_v21 }
 0x3c0   : > { %5039 = vst [vmem:[%s7565_s12 + $0x8] sm:$0xff] %v5007_v38 }
 0x3c1   : > { %5053 = vst [vmem:[%s7565_s12 + $0x78] sm:$0xff] %v5021_v49 }
 0x3c3   : > { %v4899_v6 = vpop.f32.mrf.mxu2 }
 0x3c4   : > { %v4900_v32 = vadd.f32 %v7557_v46, %v4899_v6  ;;  %v4934_v10 = vpop.f32.mrf.mxu3  ;;  %v4997_v6 = vunpack.c.h.bf16 %v409_v21  ;;  %v5004_v21 = vunpack.c.l.bf16 %v417_v44 }
 0x3c5   : > { %v4935_v14 = vadd.f32 %v7557_v46, %v4934_v10 }
 0x3c6   : > { %v5008_v5 = vadd.f32 %v4976_v23, %v4900_v32 }
 0x3c7   : > { %v5022_v52 = vadd.f32 %v4990_v0, %v4935_v14 }
 0x3c8   : > { %5040 = vst [vmem:[%s7565_s12 + $0x10] sm:$0xff] %v5008_v5 }
 0x3c9   : > { %5054 = vst [vmem:[%s7565_s12 + $0x80] sm:$0xff] %v5022_v52  ;;  %v397_v52 = vld [vmem:[%s5518_s21 + $0x28] sm:$0xff]  }
 0x3ca   : > { %v4985_v4 = vunpack.c.h.bf16 %v397_v52 }
 0x3cb   : > { %v4901_v7 = vpop.f32.mrf.mxu2 }
 0x3cc   : > { %v4902_v31 = vadd.f32 %v7557_v46, %v4901_v7  ;;  %v4936_v47 = vpop.f32.mrf.mxu3  ;;  %v4984_v7 = vunpack.c.l.bf16 %v397_v52 }
 0x3cd   : > { %v4937_v13 = vadd.f32 %v7557_v46, %v4936_v47 }
 0x3ce   : > { %v5009_v34 = vadd.f32 %v4977_v45, %v4902_v31  ;;  %v411_v45 = vld [vmem:[%s5518_s21 + $0x60] sm:$0xff]  }
 0x3cf   : > { %v5023_v24 = vadd.f32 %v4991_v1, %v4937_v13  ;;  %v4998_v31 = vunpack.c.l.bf16 %v411_v45 }
 0x3d0   : > { %5041 = vst [vmem:[%s7565_s12 + $0x18] sm:$0xff] %v5009_v34 }
 0x3d1   : > { %5055 = vst [vmem:[%s7565_s12 + $0x88] sm:$0xff] %v5023_v24 }
 0x3d3   : > { %v4904_v15 = vpop.f32.mrf.mxu2 }
 0x3d4   : > { %v4905_v56 = vadd.f32 %v7557_v46, %v4904_v15  ;;  %v4939_v17 = vpop.f32.mrf.mxu3  ;;  %v4999_v15 = vunpack.c.h.bf16 %v411_v45 }
 0x3d5   : > { %v4940_v40 = vadd.f32 %v7557_v46, %v4939_v17 }
 0x3d6   : > { %v5010_v2 = vadd.f32 %v4978_v63, %v4905_v56 }
 0x3d7   : > { %v5024_v54 = vadd.f32 %v4992_v36, %v4940_v40 }
 0x3d8   : > { %5042 = vst [vmem:[%s7565_s12 + $0x20] sm:$0xff] %v5010_v2 }
 0x3d9   : > { %5056 = vst [vmem:[%s7565_s12 + $0x90] sm:$0xff] %v5024_v54  ;;  %v399_v54 = vld [vmem:[%s5518_s21 + $0x30] sm:$0xff]  }
 0x3da   : > { %v4987_v58 = vunpack.c.h.bf16 %v399_v54 }
 0x3db   : > { %v4906_v19 = vpop.f32.mrf.mxu2 }
 0x3dc   : > { %v4907_v51 = vadd.f32 %v7557_v46, %v4906_v19  ;;  %v4941_v39 = vpop.f32.mrf.mxu3  ;;  %v4986_v19 = vunpack.c.l.bf16 %v399_v54 }
 0x3dd   : > { %v4942_v42 = vadd.f32 %v7557_v46, %v4941_v39 }
 0x3de   : > { %v5011_v28 = vadd.f32 %v4979_v62, %v4907_v51  ;;  %v413_v62 = vld [vmem:[%s5518_s21 + $0x68] sm:$0xff]  }
 0x3df   : > { %v5025_v53 = vadd.f32 %v4993_v26, %v4942_v42  ;;  %v5000_v51 = vunpack.c.l.bf16 %v413_v62 }
 0x3e0   : > { %5043 = vst [vmem:[%s7565_s12 + $0x28] sm:$0xff] %v5011_v28 }
 0x3e1   : > { %5057 = vst [vmem:[%s7565_s12 + $0x98] sm:$0xff] %v5025_v53 }
 0x3e3   : > { %v4909_v61 = vpop.f32.mrf.mxu2 }
 0x3e4   : > { %v4910_v22 = vadd.f32 %v7557_v46, %v4909_v61  ;;  %v4944_v9 = vpop.f32.mrf.mxu3  ;;  %v5001_v61 = vunpack.c.h.bf16 %v413_v62 }
 0x3e5   : > { %v4945_v35 = vadd.f32 %v7557_v46, %v4944_v9 }
 0x3e6   : > { %v5012_v41 = vadd.f32 %v4980_v11, %v4910_v22 }
 0x3e7   : > { %v5026_v8 = vadd.f32 %v4994_v57, %v4945_v35 }
 0x3e8   : > { %5044 = vst [vmem:[%s7565_s12 + $0x30] sm:$0xff] %v5012_v41 }
 0x3e9   : > { %5058 = vst [vmem:[%s7565_s12 + $0xa0] sm:$0xff] %v5026_v8  ;;  %v415_v8 = vld [vmem:[%s5518_s21 + $0x70] sm:$0xff]  }
 0x3eb   : > { %v4911_v60 = vpop.f32.mrf.mxu2 }
 0x3ec   : > { %v4912_v18 = vadd.f32 %v7557_v46, %v4911_v60  ;;  %v4946_v33 = vpop.f32.mrf.mxu3 }
 0x3ed   : > { %v4947_v59 = vadd.f32 %v7557_v46, %v4946_v33  ;;  %v5003_v33 = vunpack.c.h.bf16 %v415_v8 }
 0x3ee   : > { %v5013_v30 = vadd.f32 %v4981_v37, %v4912_v18  ;;  %v5002_v37 = vunpack.c.l.bf16 %v415_v8 }
 0x3ef   : > { %v5027_v50 = vadd.f32 %v4995_v25, %v4947_v59 }
 0x3f0   : > { %5045 = vst [vmem:[%s7565_s12 + $0x38] sm:$0xff] %v5013_v30 }
 0x3f1   : > { %5059 = vst [vmem:[%s7565_s12 + $0xa8] sm:$0xff] %v5027_v50 }
 0x3f3   : > { %v4914_v16 = vpop.f32.mrf.mxu2 }
 0x3f4   : > { %v4915_v27 = vadd.f32 %v7557_v46, %v4914_v16  ;;  %v4949_v55 = vpop.f32.mrf.mxu3 }
 0x3f5   : > { %v4950_v38 = vadd.f32 %v7557_v46, %v4949_v55 }
 0x3f6   : > { %v5014_v49 = vadd.f32 %v4982_v29, %v4915_v27  ;;  %v5005_v27 = vunpack.c.h.bf16 %v417_v44 }
 0x3f7   : > { %v5028_v20 = vadd.f32 %v4996_v43, %v4950_v38 }
 0x3f8   : > { %5046 = vst [vmem:[%s7565_s12 + $0x40] sm:$0xff] %v5014_v49 }
 0x3f9   : > { %5060 = vst [vmem:[%s7565_s12 + $0xb0] sm:$0xff] %v5028_v20 }
 0x3fb   : > { %v4916_v23 = vpop.f32.mrf.mxu2 }
 0x3fc   : > { %v4917_v0 = vadd.f32 %v7557_v46, %v4916_v23  ;;  %v4951_v32 = vpop.f32.mrf.mxu3 }
 0x3fd   : > { %v4952_v10 = vadd.f32 %v7557_v46, %v4951_v32 }
 0x3fe   : > { %v5015_v14 = vadd.f32 %v4983_v12, %v4917_v0 }
 0x3ff   : > { %v5029_v5 = vadd.f32 %v4997_v6, %v4952_v10 }
 0x400   : > { %5047 = vst [vmem:[%s7565_s12 + $0x48] sm:$0xff] %v5015_v14 }
 0x401   : > { %5061 = vst [vmem:[%s7565_s12 + $0xb8] sm:$0xff] %v5029_v5 }
 0x403   : > { %v4919_v1 = vpop.f32.mrf.mxu2 }
 0x404   : > { %v4920_v47 = vadd.f32 %v7557_v46, %v4919_v1  ;;  %v4954_v13 = vpop.f32.mrf.mxu3 }
 0x405   : > { %v4955_v34 = vadd.f32 %v7557_v46, %v4954_v13 }
 0x406   : > { %v5016_v24 = vadd.f32 %v4984_v7, %v4920_v47 }
 0x407   : > { %v5030_v48 = vadd.f32 %v4998_v31, %v4955_v34 }
 0x408   : > { %5048 = vst [vmem:[%s7565_s12 + $0x50] sm:$0xff] %v5016_v24 }
 0x409   : > { %5062 = vst [vmem:[%s7565_s12 + $0xc0] sm:$0xff] %v5030_v48 }
 0x40b   : > { %v4921_v63 = vpop.f32.mrf.mxu2 }
 0x40c   : > { %v4922_v36 = vadd.f32 %v7557_v46, %v4921_v63  ;;  %v4956_v56 = vpop.f32.mrf.mxu3 }
 0x40d   : > { %v4957_v17 = vadd.f32 %v7557_v46, %v4956_v56 }
 0x40e   : > { %v5017_v40 = vadd.f32 %v4985_v4, %v4922_v36 }
 0x40f   : > { %v5031_v2 = vadd.f32 %v4999_v15, %v4957_v17 }
 0x410   : > { %5049 = vst [vmem:[%s7565_s12 + $0x58] sm:$0xff] %v5017_v40 }
 0x411   : > { %5063 = vst [vmem:[%s7565_s12 + $0xc8] sm:$0xff] %v5031_v2 }
 0x413   : > { %v4924_v26 = vpop.f32.mrf.mxu2 }
 0x414   : > { %v4925_v39 = vadd.f32 %v7557_v46, %v4924_v26  ;;  %v4959_v42 = vpop.f32.mrf.mxu3 }
 0x415   : > { %v4960_v28 = vadd.f32 %v7557_v46, %v4959_v42 }
 0x416   : > { %v5018_v53 = vadd.f32 %v4986_v19, %v4925_v39 }
 0x417   : > { %v5032_v3 = vadd.f32 %v5000_v51, %v4960_v28 }
 0x418   : > { %5050 = vst [vmem:[%s7565_s12 + $0x60] sm:$0xff] %v5018_v53 }
 0x419   : > { %5064 = vst [vmem:[%s7565_s12 + $0xd0] sm:$0xff] %v5032_v3 }
 0x41b   : > { %v4926_v11 = vpop.f32.mrf.mxu2 }
 0x41c   : > { %v4927_v57 = vadd.f32 %v7557_v46, %v4926_v11  ;;  %v4961_v22 = vpop.f32.mrf.mxu3 }
 0x41d   : > { %v4962_v9 = vadd.f32 %v7557_v46, %v4961_v22 }
 0x41e   : > { %v5019_v35 = vadd.f32 %v4987_v58, %v4927_v57 }
 0x41f   : > { %v5033_v41 = vadd.f32 %v5001_v61, %v4962_v9 }
 0x420   : > { %5051 = vst [vmem:[%s7565_s12 + $0x68] sm:$0xff] %v5019_v35 }
 0x421   : > { %5065 = vst [vmem:[%s7565_s12 + $0xd8] sm:$0xff] %v5033_v41 }
 0x424   : > { %v4964_v60 = vpop.f32.mrf.mxu3 }
 0x425   : > { %v4965_v25 = vadd.f32 %v7557_v46, %v4964_v60 }
 0x427   : > { %v5034_v18 = vadd.f32 %v5002_v37, %v4965_v25 }
 0x429   : > { %5066 = vst [vmem:[%s7565_s12 + $0xe0] sm:$0xff] %v5034_v18 }
 0x42c   : > { %v4966_v59 = vpop.f32.mrf.mxu3 }
 0x42d   : > { %v4967_v30 = vadd.f32 %v7557_v46, %v4966_v59 }
 0x42f   : > { %v5035_v50 = vadd.f32 %v5003_v33, %v4967_v30 }
 0x431   : > { %5067 = vst [vmem:[%s7565_s12 + $0xe8] sm:$0xff] %v5035_v50 }
 0x434   : > { %v4969_v29 = vpop.f32.mrf.mxu3 }
 0x435   : > { %v4970_v16 = vadd.f32 %v7557_v46, %v4969_v29 }
 0x437   : > { %v5036_v43 = vadd.f32 %v5004_v21, %v4970_v16 }
 0x439   : > { %5068 = vst [vmem:[%s7565_s12 + $0xf0] sm:$0xff] %v5036_v43 }
 0x43c   : > { %v4971_v55 = vpop.f32.mrf.mxu3 }
 0x43d   : > { %v4972_v38 = vadd.f32 %v7557_v46, %v4971_v55 }
 0x43f   : > { %v5037_v49 = vadd.f32 %v5005_v27, %v4972_v38 }
 0x441   : > { %5069 = vst [vmem:[%s7565_s12 + $0xf8] sm:$0xff] %v5037_v49 }
 0x442 PF: > { %s21_s17 = sadd.s32 1, %s5418_s17  }
 0x443   : > { %p18_p4 = scmp.ge.s32.totalorder %s21_s17, 4  }
 0x445   :  { %20 = sbr.rel (!%p18_p4) target bundleno = 1 (0x1), region = 94 }

</bundles_post_ra>
